<compile_context>
chip_gen: v5e
topology: v5e:2x2
jax: 0.10.0
libtpu: 0.0.40
codegen_flags: <defaults>
</compile_context>

<pallas_src>
import jax
import jax.numpy as jnp
from jax.experimental import pallas as pl
from jax.experimental.pallas import tpu as pltpu


def _gru_attention(x_btf, wih, whh, bih, bhh, wa, ba, va):
    """GRU over axis 1 of x_btf=(B, T, F) + additive attention. Returns (B, H).

    PyTorch nn.GRU gate order (r | z | n):
        r = sigmoid(x W_ir + b_ir + h W_hr + b_hr)
        z = sigmoid(x W_iz + b_iz + h W_hz + b_hz)
        n = tanh  (x W_in + b_in + r * (h W_hn + b_hn))
        h' = (1 - z) n + z h
    HAN attention: u_t = tanh(h_t W_a + b_a); a = softmax_t(u_t . v); out = sum a_t h_t
    """
    B, T, F = x_btf.shape
    H = whh.shape[0]

    # ---- hoisted input projection: one matmul for all timesteps -------------
    gi = jnp.dot(x_btf.reshape(B * T, F), wih,
                 preferred_element_type=jnp.float32) + bih            # (B*T, 3H)
    # Gate split done once, outside the recurrence (indexed by t inside).
    gi_r = gi[:, 0:H].reshape(B, T, H)
    gi_z = gi[:, H:2 * H].reshape(B, T, H)
    gi_n = gi[:, 2 * H:3 * H].reshape(B, T, H)

    bhh_b = jnp.broadcast_to(bhh, (B, 3 * H))                          # hoisted

    h = jnp.zeros((B, H), jnp.float32)
    h_all = jnp.zeros((T, B, H), jnp.float32)
    t_ids = jax.lax.broadcasted_iota(jnp.int32, (T, 1, 1), 0)

    # ---- serial recurrence, fully unrolled (T is a compile-time constant) ---
    for t in range(T):
        gh = jnp.dot(h, whh, preferred_element_type=jnp.float32) + bhh_b   # (B,3H)
        r = jax.nn.sigmoid(gi_r[:, t, :] + gh[:, 0:H])
        z = jax.nn.sigmoid(gi_z[:, t, :] + gh[:, H:2 * H])
        n = jnp.tanh(gi_n[:, t, :] + r * gh[:, 2 * H:3 * H])
        h = (1.0 - z) * n + z * h
        # Masked select (pure VPU) places h_t into the (T,B,H) stack; avoids
        # unaligned sublane concatenation.
        h_all = jnp.where(t_ids == t, h[None, :, :], h_all)

    # ---- deferred additive attention (one batched matmul + softmax) ---------
    h2 = h_all.reshape(T * B, H)
    u = jnp.tanh(jnp.dot(h2, wa, preferred_element_type=jnp.float32) + ba)  # (T*B,H)
    # VPU multiply + lane reduction instead of a 1-lane-wide MXU matmul.
    s = jnp.sum(u * va, axis=-1, keepdims=True).reshape(T, B, 1)            # scores
    m = jnp.max(s, axis=0, keepdims=True)
    e = jnp.exp(s - m)
    denom = jnp.sum(e, axis=0)                                              # (B,1)
    pooled = jnp.sum(e * h_all, axis=0)                                     # (B,H)
    return pooled * pl.reciprocal(denom, approx=True)


def _mash_rnn_kernel(x_ref,
                     wih_s_ref, whh_s_ref, bih_s_ref, bhh_s_ref,
                     wa_s_ref, ba_s_ref, va_s_ref,
                     wih_p_ref, whh_p_ref, bih_p_ref, bhh_p_ref,
                     wa_p_ref, ba_p_ref, va_p_ref,
                     out_ref):
    S, T, _E = x_ref.shape
    H = whh_s_ref.shape[0]

    # Sentence encoder: batch = sentences (S), time = words (T).
    sentences = _gru_attention(
        x_ref[...], wih_s_ref[...], whh_s_ref[...], bih_s_ref[...],
        bhh_s_ref[...], wa_s_ref[...], ba_s_ref[...], va_s_ref[...])        # (S, H)

    # Paragraph encoder: batch = 1, time = sentences (S); consumes the sentence
    # vectors while they are still in VMEM / vregs (no HBM round trip).
    paragraph = _gru_attention(
        sentences[None, :, :], wih_p_ref[...], whh_p_ref[...], bih_p_ref[...],
        bhh_p_ref[...], wa_p_ref[...], ba_p_ref[...], va_p_ref[...])        # (1, H)

    # mash = cat([sum(Sentences, -1), Paragraphs], dim=0), laid out as a
    # (1, S + H) row written with two static lane-slice stores.
    sent_sum_row = jnp.sum(jnp.transpose(sentences), axis=0, keepdims=True)  # (1, S)
    out_ref[:, 0:S] = sent_sum_row
    out_ref[:, S:S + H] = paragraph


def mash_rnn_forward(X, sent_params, para_params):
    """MashRNN.forward:
         Sentences  = SentenceEncoder(X)          -> (S, H)
         Paragraphs = ParagraphEncoder(Sentences) -> (H,)
         return cat([sum(Sentences, -1), Paragraphs], dim=0) -> (S + H,)
    """
    S, T, E = X.shape
    H = sent_params["whh"].shape[0]
    vmem = pl.BlockSpec(memory_space=pltpu.MemorySpace.VMEM)
    order = ("wih", "whh", "bih", "bhh", "wa", "ba", "va")
    args = (X,) + tuple(sent_params[k] for k in order) \
                + tuple(para_params[k] for k in order)
    out = pl.pallas_call(
        _mash_rnn_kernel,
        out_shape=jax.ShapeDtypeStruct((1, S + H), jnp.float32),
        in_specs=[vmem] * len(args),
        out_specs=vmem,
    )(*args)
    return out[0]


def init_gru_attn_params(key, input_dim, hidden_dim):
    ks = jax.random.split(key, 7)
    s = 1.0 / float(hidden_dim) ** 0.5
    u = lambda k, shape: jax.random.uniform(k, shape, jnp.float32, -s, s)
    return {
        "wih": u(ks[0], (input_dim, 3 * hidden_dim)),
        "whh": u(ks[1], (hidden_dim, 3 * hidden_dim)),
        "bih": u(ks[2], (1, 3 * hidden_dim)),
        "bhh": u(ks[3], (1, 3 * hidden_dim)),
        "wa": u(ks[4], (hidden_dim, hidden_dim)),
        "ba": u(ks[5], (1, hidden_dim)),
        "va": u(ks[6], (1, hidden_dim)),   # row vector: VPU-mult + lane-reduce score
    }


def mash_rnn_reference(X, sent_params, para_params):
    """Pure-JAX reference (same math, no Pallas) for a correctness sanity check."""
    hp = jax.lax.Precision.HIGHEST

    def encode(x_btf, p):
        B, T, F = x_btf.shape
        H = p["whh"].shape[0]
        gi_all = jnp.einsum("btf,fg->btg", x_btf, p["wih"], precision=hp) + p["bih"]
        h = jnp.zeros((B, H), jnp.float32)
        hs = []
        for t in range(T):
            gi = gi_all[:, t, :]
            gh = jnp.dot(h, p["whh"], precision=hp) + p["bhh"]
            r = jax.nn.sigmoid(gi[:, :H] + gh[:, :H])
            z = jax.nn.sigmoid(gi[:, H:2 * H] + gh[:, H:2 * H])
            n = jnp.tanh(gi[:, 2 * H:] + r * gh[:, 2 * H:])
            h = (1.0 - z) * n + z * h
            hs.append(h)
        hst = jnp.stack(hs, axis=0)                                        # (T,B,H)
        u = jnp.tanh(jnp.einsum("tbh,hk->tbk", hst, p["wa"], precision=hp) + p["ba"])
        scores = jnp.sum(u * p["va"], axis=-1, keepdims=True)              # (T,B,1)
        w = jax.nn.softmax(scores, axis=0)
        return jnp.sum(w * hst, axis=0)                                    # (B,H)

    sent = encode(X, sent_params)
    para = encode(sent[None, :, :], para_params)
    return jnp.concatenate([jnp.sum(sent, axis=-1), para[0]], axis=0)


if __name__ == "__main__":
    S, T, E, H = 8, 8, 32, 32   # sentences, words/sentence, embed dim, hidden dim

    key = jax.random.PRNGKey(0)
    kx, kp_sent, kp_para = jax.random.split(key, 3)

    X = jax.random.normal(kx, (S, T, E), jnp.float32)
    sent_params = init_gru_attn_params(kp_sent, E, H)
    para_params = init_gru_attn_params(kp_para, H, H)

    fwd = jax.jit(mash_rnn_forward)
    out = fwd(X, sent_params, para_params)
    jax.block_until_ready(out)

    assert out.shape == (S + H,), out.shape
    assert bool(jnp.all(jnp.isfinite(out)))

    ref = mash_rnn_reference(X, sent_params, para_params)
    max_err = float(jnp.max(jnp.abs(out - ref)))
    assert jnp.allclose(out, ref, rtol=5e-2, atol=5e-2), max_err

    print("KERNEL_OK")
</pallas_src>

<mosaic_0001>
module attributes {stable_mosaic.version = 11 : i64} {
  func.func @_mash_rnn_kernel(%arg0: memref<8x8x32xf32, #tpu.memory_space<vmem>>, %arg1: memref<32x96xf32, #tpu.memory_space<vmem>>, %arg2: memref<32x96xf32, #tpu.memory_space<vmem>>, %arg3: memref<1x96xf32, #tpu.memory_space<vmem>>, %arg4: memref<1x96xf32, #tpu.memory_space<vmem>>, %arg5: memref<32x32xf32, #tpu.memory_space<vmem>>, %arg6: memref<1x32xf32, #tpu.memory_space<vmem>>, %arg7: memref<1x32xf32, #tpu.memory_space<vmem>>, %arg8: memref<32x96xf32, #tpu.memory_space<vmem>>, %arg9: memref<32x96xf32, #tpu.memory_space<vmem>>, %arg10: memref<1x96xf32, #tpu.memory_space<vmem>>, %arg11: memref<1x96xf32, #tpu.memory_space<vmem>>, %arg12: memref<32x32xf32, #tpu.memory_space<vmem>>, %arg13: memref<1x32xf32, #tpu.memory_space<vmem>>, %arg14: memref<1x32xf32, #tpu.memory_space<vmem>>, %arg15: memref<1x40xf32, #tpu.memory_space<vmem>>) attributes {dimension_semantics = [], scalar_prefetch = 0 : i64, scratch_operands = 0 : i64, tpu.core_type = #tpu.core_type<tc>} {
    %c0 = arith.constant 0 : index
    %c0_0 = arith.constant 0 : index
    %c0_1 = arith.constant 0 : index
    %0 = vector.load %arg0[%c0, %c0_0, %c0_1] : memref<8x8x32xf32, #tpu.memory_space<vmem>>, vector<8x8x32xf32>
    %c0_2 = arith.constant 0 : index
    %c0_3 = arith.constant 0 : index
    %1 = vector.load %arg1[%c0_2, %c0_3] : memref<32x96xf32, #tpu.memory_space<vmem>>, vector<32x96xf32>
    %c0_4 = arith.constant 0 : index
    %c0_5 = arith.constant 0 : index
    %2 = vector.load %arg2[%c0_4, %c0_5] : memref<32x96xf32, #tpu.memory_space<vmem>>, vector<32x96xf32>
    %c0_6 = arith.constant 0 : index
    %c0_7 = arith.constant 0 : index
    %3 = vector.load %arg3[%c0_6, %c0_7] : memref<1x96xf32, #tpu.memory_space<vmem>>, vector<1x96xf32>
    %c0_8 = arith.constant 0 : index
    %c0_9 = arith.constant 0 : index
    %4 = vector.load %arg4[%c0_8, %c0_9] : memref<1x96xf32, #tpu.memory_space<vmem>>, vector<1x96xf32>
    %c0_10 = arith.constant 0 : index
    %c0_11 = arith.constant 0 : index
    %5 = vector.load %arg5[%c0_10, %c0_11] : memref<32x32xf32, #tpu.memory_space<vmem>>, vector<32x32xf32>
    %c0_12 = arith.constant 0 : index
    %c0_13 = arith.constant 0 : index
    %6 = vector.load %arg6[%c0_12, %c0_13] : memref<1x32xf32, #tpu.memory_space<vmem>>, vector<1x32xf32>
    %c0_14 = arith.constant 0 : index
    %c0_15 = arith.constant 0 : index
    %7 = vector.load %arg7[%c0_14, %c0_15] : memref<1x32xf32, #tpu.memory_space<vmem>>, vector<1x32xf32>
    %8 = vector.shape_cast %0 : vector<8x8x32xf32> to vector<64x32xf32>
    %cst = arith.constant dense<0.000000e+00> : vector<64x96xf32>
    %9 = tpu.matmul %8, %1, %cst {dimension_numbers = #tpu.dot_dimension_numbers<[1], [0], [0], [1], [0, 0, 1, 1], [], []>} : vector<64x32xf32>, vector<32x96xf32>, vector<64x96xf32> -> vector<64x96xf32>
    %10 = vector.broadcast %3 : vector<1x96xf32> to vector<64x96xf32>
    %11 = arith.addf %9, %10 : vector<64x96xf32>
    %12 = vector.extract_strided_slice %11 {offsets = [0, 0], sizes = [64, 32], strides = [1, 1]} : vector<64x96xf32> to vector<64x32xf32>
    %13 = vector.shape_cast %12 : vector<64x32xf32> to vector<8x8x32xf32>
    %14 = vector.extract_strided_slice %11 {offsets = [0, 32], sizes = [64, 32], strides = [1, 1]} : vector<64x96xf32> to vector<64x32xf32>
    %15 = vector.shape_cast %14 : vector<64x32xf32> to vector<8x8x32xf32>
    %16 = vector.extract_strided_slice %11 {offsets = [0, 64], sizes = [64, 32], strides = [1, 1]} : vector<64x96xf32> to vector<64x32xf32>
    %17 = vector.shape_cast %16 : vector<64x32xf32> to vector<8x8x32xf32>
    %18 = vector.shape_cast %4 : vector<1x96xf32> to vector<1x96xf32>
    %19 = vector.broadcast %18 : vector<1x96xf32> to vector<8x96xf32>
    %cst_16 = arith.constant 0.000000e+00 : f32
    %20 = vector.broadcast %cst_16 : f32 to vector<8x32xf32>
    %cst_17 = arith.constant 0.000000e+00 : f32
    %21 = vector.broadcast %cst_17 : f32 to vector<8x8x32xf32>
    %22 = tpu.iota {dimensions = array<i32: 0>} : vector<8x1x1xi32>
    %cst_18 = arith.constant dense<0.000000e+00> : vector<8x96xf32>
    %23 = tpu.matmul %20, %2, %cst_18 {dimension_numbers = #tpu.dot_dimension_numbers<[1], [0], [0], [1], [0, 0, 1, 1], [], []>} : vector<8x32xf32>, vector<32x96xf32>, vector<8x96xf32> -> vector<8x96xf32>
    %24 = arith.addf %23, %19 : vector<8x96xf32>
    %25 = vector.extract_strided_slice %13 {offsets = [0, 0, 0], sizes = [8, 1, 32], strides = [1, 1, 1]} : vector<8x8x32xf32> to vector<8x1x32xf32>
    %26 = vector.shape_cast %25 : vector<8x1x32xf32> to vector<8x32xf32>
    %27 = vector.extract_strided_slice %24 {offsets = [0, 0], sizes = [8, 32], strides = [1, 1]} : vector<8x96xf32> to vector<8x32xf32>
    %28 = arith.addf %26, %27 : vector<8x32xf32>
    %29 = arith.negf %28 : vector<8x32xf32>
    %30 = math.exp %29 : vector<8x32xf32>
    %cst_19 = arith.constant 1.000000e+00 : f32
    %31 = vector.broadcast %cst_19 : f32 to vector<8x32xf32>
    %32 = arith.addf %31, %30 : vector<8x32xf32>
    %33 = arith.divf %31, %32 : vector<8x32xf32>
    %34 = vector.extract_strided_slice %15 {offsets = [0, 0, 0], sizes = [8, 1, 32], strides = [1, 1, 1]} : vector<8x8x32xf32> to vector<8x1x32xf32>
    %35 = vector.shape_cast %34 : vector<8x1x32xf32> to vector<8x32xf32>
    %36 = vector.extract_strided_slice %24 {offsets = [0, 32], sizes = [8, 32], strides = [1, 1]} : vector<8x96xf32> to vector<8x32xf32>
    %37 = arith.addf %35, %36 : vector<8x32xf32>
    %38 = arith.negf %37 : vector<8x32xf32>
    %39 = math.exp %38 : vector<8x32xf32>
    %cst_20 = arith.constant 1.000000e+00 : f32
    %40 = vector.broadcast %cst_20 : f32 to vector<8x32xf32>
    %41 = arith.addf %40, %39 : vector<8x32xf32>
    %42 = arith.divf %40, %41 : vector<8x32xf32>
    %43 = vector.extract_strided_slice %17 {offsets = [0, 0, 0], sizes = [8, 1, 32], strides = [1, 1, 1]} : vector<8x8x32xf32> to vector<8x1x32xf32>
    %44 = vector.shape_cast %43 : vector<8x1x32xf32> to vector<8x32xf32>
    %45 = vector.extract_strided_slice %24 {offsets = [0, 64], sizes = [8, 32], strides = [1, 1]} : vector<8x96xf32> to vector<8x32xf32>
    %46 = arith.mulf %33, %45 : vector<8x32xf32>
    %47 = arith.addf %44, %46 : vector<8x32xf32>
    %48 = math.tanh %47 : vector<8x32xf32>
    %cst_21 = arith.constant 1.000000e+00 : f32
    %49 = vector.broadcast %cst_21 : f32 to vector<8x32xf32>
    %50 = arith.subf %49, %42 : vector<8x32xf32>
    %51 = arith.mulf %50, %48 : vector<8x32xf32>
    %52 = arith.mulf %42, %20 : vector<8x32xf32>
    %53 = arith.addf %51, %52 : vector<8x32xf32>
    %c0_i32 = arith.constant 0 : i32
    %54 = vector.broadcast %c0_i32 : i32 to vector<8x1x1xi32>
    %55 = arith.cmpi eq, %22, %54 : vector<8x1x1xi32>
    %56 = vector.shape_cast %53 : vector<8x32xf32> to vector<1x8x32xf32>
    %57 = vector.shape_cast %55 : vector<8x1x1xi1> to vector<8x1x1xi1>
    %58 = vector.broadcast %57 : vector<8x1x1xi1> to vector<8x8x32xi1>
    %59 = vector.shape_cast %56 : vector<1x8x32xf32> to vector<1x8x32xf32>
    %60 = vector.broadcast %59 : vector<1x8x32xf32> to vector<8x8x32xf32>
    %61 = arith.select %58, %60, %21 : vector<8x8x32xi1>, vector<8x8x32xf32>
    %cst_22 = arith.constant dense<0.000000e+00> : vector<8x96xf32>
    %62 = tpu.matmul %53, %2, %cst_22 {dimension_numbers = #tpu.dot_dimension_numbers<[1], [0], [0], [1], [0, 0, 1, 1], [], []>} : vector<8x32xf32>, vector<32x96xf32>, vector<8x96xf32> -> vector<8x96xf32>
    %63 = arith.addf %62, %19 : vector<8x96xf32>
    %64 = vector.extract_strided_slice %13 {offsets = [0, 1, 0], sizes = [8, 1, 32], strides = [1, 1, 1]} : vector<8x8x32xf32> to vector<8x1x32xf32>
    %65 = vector.shape_cast %64 : vector<8x1x32xf32> to vector<8x32xf32>
    %66 = vector.extract_strided_slice %63 {offsets = [0, 0], sizes = [8, 32], strides = [1, 1]} : vector<8x96xf32> to vector<8x32xf32>
    %67 = arith.addf %65, %66 : vector<8x32xf32>
    %68 = arith.negf %67 : vector<8x32xf32>
    %69 = math.exp %68 : vector<8x32xf32>
    %cst_23 = arith.constant 1.000000e+00 : f32
    %70 = vector.broadcast %cst_23 : f32 to vector<8x32xf32>
    %71 = arith.addf %70, %69 : vector<8x32xf32>
    %72 = arith.divf %70, %71 : vector<8x32xf32>
    %73 = vector.extract_strided_slice %15 {offsets = [0, 1, 0], sizes = [8, 1, 32], strides = [1, 1, 1]} : vector<8x8x32xf32> to vector<8x1x32xf32>
    %74 = vector.shape_cast %73 : vector<8x1x32xf32> to vector<8x32xf32>
    %75 = vector.extract_strided_slice %63 {offsets = [0, 32], sizes = [8, 32], strides = [1, 1]} : vector<8x96xf32> to vector<8x32xf32>
    %76 = arith.addf %74, %75 : vector<8x32xf32>
    %77 = arith.negf %76 : vector<8x32xf32>
    %78 = math.exp %77 : vector<8x32xf32>
    %cst_24 = arith.constant 1.000000e+00 : f32
    %79 = vector.broadcast %cst_24 : f32 to vector<8x32xf32>
    %80 = arith.addf %79, %78 : vector<8x32xf32>
    %81 = arith.divf %79, %80 : vector<8x32xf32>
    %82 = vector.extract_strided_slice %17 {offsets = [0, 1, 0], sizes = [8, 1, 32], strides = [1, 1, 1]} : vector<8x8x32xf32> to vector<8x1x32xf32>
    %83 = vector.shape_cast %82 : vector<8x1x32xf32> to vector<8x32xf32>
    %84 = vector.extract_strided_slice %63 {offsets = [0, 64], sizes = [8, 32], strides = [1, 1]} : vector<8x96xf32> to vector<8x32xf32>
    %85 = arith.mulf %72, %84 : vector<8x32xf32>
    %86 = arith.addf %83, %85 : vector<8x32xf32>
    %87 = math.tanh %86 : vector<8x32xf32>
    %cst_25 = arith.constant 1.000000e+00 : f32
    %88 = vector.broadcast %cst_25 : f32 to vector<8x32xf32>
    %89 = arith.subf %88, %81 : vector<8x32xf32>
    %90 = arith.mulf %89, %87 : vector<8x32xf32>
    %91 = arith.mulf %81, %53 : vector<8x32xf32>
    %92 = arith.addf %90, %91 : vector<8x32xf32>
    %c1_i32 = arith.constant 1 : i32
    %93 = vector.broadcast %c1_i32 : i32 to vector<8x1x1xi32>
    %94 = arith.cmpi eq, %22, %93 : vector<8x1x1xi32>
    %95 = vector.shape_cast %92 : vector<8x32xf32> to vector<1x8x32xf32>
    %96 = vector.shape_cast %94 : vector<8x1x1xi1> to vector<8x1x1xi1>
    %97 = vector.broadcast %96 : vector<8x1x1xi1> to vector<8x8x32xi1>
    %98 = vector.shape_cast %95 : vector<1x8x32xf32> to vector<1x8x32xf32>
    %99 = vector.broadcast %98 : vector<1x8x32xf32> to vector<8x8x32xf32>
    %100 = arith.select %97, %99, %61 : vector<8x8x32xi1>, vector<8x8x32xf32>
    %cst_26 = arith.constant dense<0.000000e+00> : vector<8x96xf32>
    %101 = tpu.matmul %92, %2, %cst_26 {dimension_numbers = #tpu.dot_dimension_numbers<[1], [0], [0], [1], [0, 0, 1, 1], [], []>} : vector<8x32xf32>, vector<32x96xf32>, vector<8x96xf32> -> vector<8x96xf32>
    %102 = arith.addf %101, %19 : vector<8x96xf32>
    %103 = vector.extract_strided_slice %13 {offsets = [0, 2, 0], sizes = [8, 1, 32], strides = [1, 1, 1]} : vector<8x8x32xf32> to vector<8x1x32xf32>
    %104 = vector.shape_cast %103 : vector<8x1x32xf32> to vector<8x32xf32>
    %105 = vector.extract_strided_slice %102 {offsets = [0, 0], sizes = [8, 32], strides = [1, 1]} : vector<8x96xf32> to vector<8x32xf32>
    %106 = arith.addf %104, %105 : vector<8x32xf32>
    %107 = arith.negf %106 : vector<8x32xf32>
    %108 = math.exp %107 : vector<8x32xf32>
    %cst_27 = arith.constant 1.000000e+00 : f32
    %109 = vector.broadcast %cst_27 : f32 to vector<8x32xf32>
    %110 = arith.addf %109, %108 : vector<8x32xf32>
    %111 = arith.divf %109, %110 : vector<8x32xf32>
    %112 = vector.extract_strided_slice %15 {offsets = [0, 2, 0], sizes = [8, 1, 32], strides = [1, 1, 1]} : vector<8x8x32xf32> to vector<8x1x32xf32>
    %113 = vector.shape_cast %112 : vector<8x1x32xf32> to vector<8x32xf32>
    %114 = vector.extract_strided_slice %102 {offsets = [0, 32], sizes = [8, 32], strides = [1, 1]} : vector<8x96xf32> to vector<8x32xf32>
    %115 = arith.addf %113, %114 : vector<8x32xf32>
    %116 = arith.negf %115 : vector<8x32xf32>
    %117 = math.exp %116 : vector<8x32xf32>
    %cst_28 = arith.constant 1.000000e+00 : f32
    %118 = vector.broadcast %cst_28 : f32 to vector<8x32xf32>
    %119 = arith.addf %118, %117 : vector<8x32xf32>
    %120 = arith.divf %118, %119 : vector<8x32xf32>
    %121 = vector.extract_strided_slice %17 {offsets = [0, 2, 0], sizes = [8, 1, 32], strides = [1, 1, 1]} : vector<8x8x32xf32> to vector<8x1x32xf32>
    %122 = vector.shape_cast %121 : vector<8x1x32xf32> to vector<8x32xf32>
    %123 = vector.extract_strided_slice %102 {offsets = [0, 64], sizes = [8, 32], strides = [1, 1]} : vector<8x96xf32> to vector<8x32xf32>
    %124 = arith.mulf %111, %123 : vector<8x32xf32>
    %125 = arith.addf %122, %124 : vector<8x32xf32>
    %126 = math.tanh %125 : vector<8x32xf32>
    %cst_29 = arith.constant 1.000000e+00 : f32
    %127 = vector.broadcast %cst_29 : f32 to vector<8x32xf32>
    %128 = arith.subf %127, %120 : vector<8x32xf32>
    %129 = arith.mulf %128, %126 : vector<8x32xf32>
    %130 = arith.mulf %120, %92 : vector<8x32xf32>
    %131 = arith.addf %129, %130 : vector<8x32xf32>
    %c2_i32 = arith.constant 2 : i32
    %132 = vector.broadcast %c2_i32 : i32 to vector<8x1x1xi32>
    %133 = arith.cmpi eq, %22, %132 : vector<8x1x1xi32>
    %134 = vector.shape_cast %131 : vector<8x32xf32> to vector<1x8x32xf32>
    %135 = vector.shape_cast %133 : vector<8x1x1xi1> to vector<8x1x1xi1>
    %136 = vector.broadcast %135 : vector<8x1x1xi1> to vector<8x8x32xi1>
    %137 = vector.shape_cast %134 : vector<1x8x32xf32> to vector<1x8x32xf32>
    %138 = vector.broadcast %137 : vector<1x8x32xf32> to vector<8x8x32xf32>
    %139 = arith.select %136, %138, %100 : vector<8x8x32xi1>, vector<8x8x32xf32>
    %cst_30 = arith.constant dense<0.000000e+00> : vector<8x96xf32>
    %140 = tpu.matmul %131, %2, %cst_30 {dimension_numbers = #tpu.dot_dimension_numbers<[1], [0], [0], [1], [0, 0, 1, 1], [], []>} : vector<8x32xf32>, vector<32x96xf32>, vector<8x96xf32> -> vector<8x96xf32>
    %141 = arith.addf %140, %19 : vector<8x96xf32>
    %142 = vector.extract_strided_slice %13 {offsets = [0, 3, 0], sizes = [8, 1, 32], strides = [1, 1, 1]} : vector<8x8x32xf32> to vector<8x1x32xf32>
    %143 = vector.shape_cast %142 : vector<8x1x32xf32> to vector<8x32xf32>
    %144 = vector.extract_strided_slice %141 {offsets = [0, 0], sizes = [8, 32], strides = [1, 1]} : vector<8x96xf32> to vector<8x32xf32>
    %145 = arith.addf %143, %144 : vector<8x32xf32>
    %146 = arith.negf %145 : vector<8x32xf32>
    %147 = math.exp %146 : vector<8x32xf32>
    %cst_31 = arith.constant 1.000000e+00 : f32
    %148 = vector.broadcast %cst_31 : f32 to vector<8x32xf32>
    %149 = arith.addf %148, %147 : vector<8x32xf32>
    %150 = arith.divf %148, %149 : vector<8x32xf32>
    %151 = vector.extract_strided_slice %15 {offsets = [0, 3, 0], sizes = [8, 1, 32], strides = [1, 1, 1]} : vector<8x8x32xf32> to vector<8x1x32xf32>
    %152 = vector.shape_cast %151 : vector<8x1x32xf32> to vector<8x32xf32>
    %153 = vector.extract_strided_slice %141 {offsets = [0, 32], sizes = [8, 32], strides = [1, 1]} : vector<8x96xf32> to vector<8x32xf32>
    %154 = arith.addf %152, %153 : vector<8x32xf32>
    %155 = arith.negf %154 : vector<8x32xf32>
    %156 = math.exp %155 : vector<8x32xf32>
    %cst_32 = arith.constant 1.000000e+00 : f32
    %157 = vector.broadcast %cst_32 : f32 to vector<8x32xf32>
    %158 = arith.addf %157, %156 : vector<8x32xf32>
    %159 = arith.divf %157, %158 : vector<8x32xf32>
    %160 = vector.extract_strided_slice %17 {offsets = [0, 3, 0], sizes = [8, 1, 32], strides = [1, 1, 1]} : vector<8x8x32xf32> to vector<8x1x32xf32>
    %161 = vector.shape_cast %160 : vector<8x1x32xf32> to vector<8x32xf32>
    %162 = vector.extract_strided_slice %141 {offsets = [0, 64], sizes = [8, 32], strides = [1, 1]} : vector<8x96xf32> to vector<8x32xf32>
    %163 = arith.mulf %150, %162 : vector<8x32xf32>
    %164 = arith.addf %161, %163 : vector<8x32xf32>
    %165 = math.tanh %164 : vector<8x32xf32>
    %cst_33 = arith.constant 1.000000e+00 : f32
    %166 = vector.broadcast %cst_33 : f32 to vector<8x32xf32>
    %167 = arith.subf %166, %159 : vector<8x32xf32>
    %168 = arith.mulf %167, %165 : vector<8x32xf32>
    %169 = arith.mulf %159, %131 : vector<8x32xf32>
    %170 = arith.addf %168, %169 : vector<8x32xf32>
    %c3_i32 = arith.constant 3 : i32
    %171 = vector.broadcast %c3_i32 : i32 to vector<8x1x1xi32>
    %172 = arith.cmpi eq, %22, %171 : vector<8x1x1xi32>
    %173 = vector.shape_cast %170 : vector<8x32xf32> to vector<1x8x32xf32>
    %174 = vector.shape_cast %172 : vector<8x1x1xi1> to vector<8x1x1xi1>
    %175 = vector.broadcast %174 : vector<8x1x1xi1> to vector<8x8x32xi1>
    %176 = vector.shape_cast %173 : vector<1x8x32xf32> to vector<1x8x32xf32>
    %177 = vector.broadcast %176 : vector<1x8x32xf32> to vector<8x8x32xf32>
    %178 = arith.select %175, %177, %139 : vector<8x8x32xi1>, vector<8x8x32xf32>
    %cst_34 = arith.constant dense<0.000000e+00> : vector<8x96xf32>
    %179 = tpu.matmul %170, %2, %cst_34 {dimension_numbers = #tpu.dot_dimension_numbers<[1], [0], [0], [1], [0, 0, 1, 1], [], []>} : vector<8x32xf32>, vector<32x96xf32>, vector<8x96xf32> -> vector<8x96xf32>
    %180 = arith.addf %179, %19 : vector<8x96xf32>
    %181 = vector.extract_strided_slice %13 {offsets = [0, 4, 0], sizes = [8, 1, 32], strides = [1, 1, 1]} : vector<8x8x32xf32> to vector<8x1x32xf32>
    %182 = vector.shape_cast %181 : vector<8x1x32xf32> to vector<8x32xf32>
    %183 = vector.extract_strided_slice %180 {offsets = [0, 0], sizes = [8, 32], strides = [1, 1]} : vector<8x96xf32> to vector<8x32xf32>
    %184 = arith.addf %182, %183 : vector<8x32xf32>
    %185 = arith.negf %184 : vector<8x32xf32>
    %186 = math.exp %185 : vector<8x32xf32>
    %cst_35 = arith.constant 1.000000e+00 : f32
    %187 = vector.broadcast %cst_35 : f32 to vector<8x32xf32>
    %188 = arith.addf %187, %186 : vector<8x32xf32>
    %189 = arith.divf %187, %188 : vector<8x32xf32>
    %190 = vector.extract_strided_slice %15 {offsets = [0, 4, 0], sizes = [8, 1, 32], strides = [1, 1, 1]} : vector<8x8x32xf32> to vector<8x1x32xf32>
    %191 = vector.shape_cast %190 : vector<8x1x32xf32> to vector<8x32xf32>
    %192 = vector.extract_strided_slice %180 {offsets = [0, 32], sizes = [8, 32], strides = [1, 1]} : vector<8x96xf32> to vector<8x32xf32>
    %193 = arith.addf %191, %192 : vector<8x32xf32>
    %194 = arith.negf %193 : vector<8x32xf32>
    %195 = math.exp %194 : vector<8x32xf32>
    %cst_36 = arith.constant 1.000000e+00 : f32
    %196 = vector.broadcast %cst_36 : f32 to vector<8x32xf32>
    %197 = arith.addf %196, %195 : vector<8x32xf32>
    %198 = arith.divf %196, %197 : vector<8x32xf32>
    %199 = vector.extract_strided_slice %17 {offsets = [0, 4, 0], sizes = [8, 1, 32], strides = [1, 1, 1]} : vector<8x8x32xf32> to vector<8x1x32xf32>
    %200 = vector.shape_cast %199 : vector<8x1x32xf32> to vector<8x32xf32>
    %201 = vector.extract_strided_slice %180 {offsets = [0, 64], sizes = [8, 32], strides = [1, 1]} : vector<8x96xf32> to vector<8x32xf32>
    %202 = arith.mulf %189, %201 : vector<8x32xf32>
    %203 = arith.addf %200, %202 : vector<8x32xf32>
    %204 = math.tanh %203 : vector<8x32xf32>
    %cst_37 = arith.constant 1.000000e+00 : f32
    %205 = vector.broadcast %cst_37 : f32 to vector<8x32xf32>
    %206 = arith.subf %205, %198 : vector<8x32xf32>
    %207 = arith.mulf %206, %204 : vector<8x32xf32>
    %208 = arith.mulf %198, %170 : vector<8x32xf32>
    %209 = arith.addf %207, %208 : vector<8x32xf32>
    %c4_i32 = arith.constant 4 : i32
    %210 = vector.broadcast %c4_i32 : i32 to vector<8x1x1xi32>
    %211 = arith.cmpi eq, %22, %210 : vector<8x1x1xi32>
    %212 = vector.shape_cast %209 : vector<8x32xf32> to vector<1x8x32xf32>
    %213 = vector.shape_cast %211 : vector<8x1x1xi1> to vector<8x1x1xi1>
    %214 = vector.broadcast %213 : vector<8x1x1xi1> to vector<8x8x32xi1>
    %215 = vector.shape_cast %212 : vector<1x8x32xf32> to vector<1x8x32xf32>
    %216 = vector.broadcast %215 : vector<1x8x32xf32> to vector<8x8x32xf32>
    %217 = arith.select %214, %216, %178 : vector<8x8x32xi1>, vector<8x8x32xf32>
    %cst_38 = arith.constant dense<0.000000e+00> : vector<8x96xf32>
    %218 = tpu.matmul %209, %2, %cst_38 {dimension_numbers = #tpu.dot_dimension_numbers<[1], [0], [0], [1], [0, 0, 1, 1], [], []>} : vector<8x32xf32>, vector<32x96xf32>, vector<8x96xf32> -> vector<8x96xf32>
    %219 = arith.addf %218, %19 : vector<8x96xf32>
    %220 = vector.extract_strided_slice %13 {offsets = [0, 5, 0], sizes = [8, 1, 32], strides = [1, 1, 1]} : vector<8x8x32xf32> to vector<8x1x32xf32>
    %221 = vector.shape_cast %220 : vector<8x1x32xf32> to vector<8x32xf32>
    %222 = vector.extract_strided_slice %219 {offsets = [0, 0], sizes = [8, 32], strides = [1, 1]} : vector<8x96xf32> to vector<8x32xf32>
    %223 = arith.addf %221, %222 : vector<8x32xf32>
    %224 = arith.negf %223 : vector<8x32xf32>
    %225 = math.exp %224 : vector<8x32xf32>
    %cst_39 = arith.constant 1.000000e+00 : f32
    %226 = vector.broadcast %cst_39 : f32 to vector<8x32xf32>
    %227 = arith.addf %226, %225 : vector<8x32xf32>
    %228 = arith.divf %226, %227 : vector<8x32xf32>
    %229 = vector.extract_strided_slice %15 {offsets = [0, 5, 0], sizes = [8, 1, 32], strides = [1, 1, 1]} : vector<8x8x32xf32> to vector<8x1x32xf32>
    %230 = vector.shape_cast %229 : vector<8x1x32xf32> to vector<8x32xf32>
    %231 = vector.extract_strided_slice %219 {offsets = [0, 32], sizes = [8, 32], strides = [1, 1]} : vector<8x96xf32> to vector<8x32xf32>
    %232 = arith.addf %230, %231 : vector<8x32xf32>
    %233 = arith.negf %232 : vector<8x32xf32>
    %234 = math.exp %233 : vector<8x32xf32>
    %cst_40 = arith.constant 1.000000e+00 : f32
    %235 = vector.broadcast %cst_40 : f32 to vector<8x32xf32>
    %236 = arith.addf %235, %234 : vector<8x32xf32>
    %237 = arith.divf %235, %236 : vector<8x32xf32>
    %238 = vector.extract_strided_slice %17 {offsets = [0, 5, 0], sizes = [8, 1, 32], strides = [1, 1, 1]} : vector<8x8x32xf32> to vector<8x1x32xf32>
    %239 = vector.shape_cast %238 : vector<8x1x32xf32> to vector<8x32xf32>
    %240 = vector.extract_strided_slice %219 {offsets = [0, 64], sizes = [8, 32], strides = [1, 1]} : vector<8x96xf32> to vector<8x32xf32>
    %241 = arith.mulf %228, %240 : vector<8x32xf32>
    %242 = arith.addf %239, %241 : vector<8x32xf32>
    %243 = math.tanh %242 : vector<8x32xf32>
    %cst_41 = arith.constant 1.000000e+00 : f32
    %244 = vector.broadcast %cst_41 : f32 to vector<8x32xf32>
    %245 = arith.subf %244, %237 : vector<8x32xf32>
    %246 = arith.mulf %245, %243 : vector<8x32xf32>
    %247 = arith.mulf %237, %209 : vector<8x32xf32>
    %248 = arith.addf %246, %247 : vector<8x32xf32>
    %c5_i32 = arith.constant 5 : i32
    %249 = vector.broadcast %c5_i32 : i32 to vector<8x1x1xi32>
    %250 = arith.cmpi eq, %22, %249 : vector<8x1x1xi32>
    %251 = vector.shape_cast %248 : vector<8x32xf32> to vector<1x8x32xf32>
    %252 = vector.shape_cast %250 : vector<8x1x1xi1> to vector<8x1x1xi1>
    %253 = vector.broadcast %252 : vector<8x1x1xi1> to vector<8x8x32xi1>
    %254 = vector.shape_cast %251 : vector<1x8x32xf32> to vector<1x8x32xf32>
    %255 = vector.broadcast %254 : vector<1x8x32xf32> to vector<8x8x32xf32>
    %256 = arith.select %253, %255, %217 : vector<8x8x32xi1>, vector<8x8x32xf32>
    %cst_42 = arith.constant dense<0.000000e+00> : vector<8x96xf32>
    %257 = tpu.matmul %248, %2, %cst_42 {dimension_numbers = #tpu.dot_dimension_numbers<[1], [0], [0], [1], [0, 0, 1, 1], [], []>} : vector<8x32xf32>, vector<32x96xf32>, vector<8x96xf32> -> vector<8x96xf32>
    %258 = arith.addf %257, %19 : vector<8x96xf32>
    %259 = vector.extract_strided_slice %13 {offsets = [0, 6, 0], sizes = [8, 1, 32], strides = [1, 1, 1]} : vector<8x8x32xf32> to vector<8x1x32xf32>
    %260 = vector.shape_cast %259 : vector<8x1x32xf32> to vector<8x32xf32>
    %261 = vector.extract_strided_slice %258 {offsets = [0, 0], sizes = [8, 32], strides = [1, 1]} : vector<8x96xf32> to vector<8x32xf32>
    %262 = arith.addf %260, %261 : vector<8x32xf32>
    %263 = arith.negf %262 : vector<8x32xf32>
    %264 = math.exp %263 : vector<8x32xf32>
    %cst_43 = arith.constant 1.000000e+00 : f32
    %265 = vector.broadcast %cst_43 : f32 to vector<8x32xf32>
    %266 = arith.addf %265, %264 : vector<8x32xf32>
    %267 = arith.divf %265, %266 : vector<8x32xf32>
    %268 = vector.extract_strided_slice %15 {offsets = [0, 6, 0], sizes = [8, 1, 32], strides = [1, 1, 1]} : vector<8x8x32xf32> to vector<8x1x32xf32>
    %269 = vector.shape_cast %268 : vector<8x1x32xf32> to vector<8x32xf32>
    %270 = vector.extract_strided_slice %258 {offsets = [0, 32], sizes = [8, 32], strides = [1, 1]} : vector<8x96xf32> to vector<8x32xf32>
    %271 = arith.addf %269, %270 : vector<8x32xf32>
    %272 = arith.negf %271 : vector<8x32xf32>
    %273 = math.exp %272 : vector<8x32xf32>
    %cst_44 = arith.constant 1.000000e+00 : f32
    %274 = vector.broadcast %cst_44 : f32 to vector<8x32xf32>
    %275 = arith.addf %274, %273 : vector<8x32xf32>
    %276 = arith.divf %274, %275 : vector<8x32xf32>
    %277 = vector.extract_strided_slice %17 {offsets = [0, 6, 0], sizes = [8, 1, 32], strides = [1, 1, 1]} : vector<8x8x32xf32> to vector<8x1x32xf32>
    %278 = vector.shape_cast %277 : vector<8x1x32xf32> to vector<8x32xf32>
    %279 = vector.extract_strided_slice %258 {offsets = [0, 64], sizes = [8, 32], strides = [1, 1]} : vector<8x96xf32> to vector<8x32xf32>
    %280 = arith.mulf %267, %279 : vector<8x32xf32>
    %281 = arith.addf %278, %280 : vector<8x32xf32>
    %282 = math.tanh %281 : vector<8x32xf32>
    %cst_45 = arith.constant 1.000000e+00 : f32
    %283 = vector.broadcast %cst_45 : f32 to vector<8x32xf32>
    %284 = arith.subf %283, %276 : vector<8x32xf32>
    %285 = arith.mulf %284, %282 : vector<8x32xf32>
    %286 = arith.mulf %276, %248 : vector<8x32xf32>
    %287 = arith.addf %285, %286 : vector<8x32xf32>
    %c6_i32 = arith.constant 6 : i32
    %288 = vector.broadcast %c6_i32 : i32 to vector<8x1x1xi32>
    %289 = arith.cmpi eq, %22, %288 : vector<8x1x1xi32>
    %290 = vector.shape_cast %287 : vector<8x32xf32> to vector<1x8x32xf32>
    %291 = vector.shape_cast %289 : vector<8x1x1xi1> to vector<8x1x1xi1>
    %292 = vector.broadcast %291 : vector<8x1x1xi1> to vector<8x8x32xi1>
    %293 = vector.shape_cast %290 : vector<1x8x32xf32> to vector<1x8x32xf32>
    %294 = vector.broadcast %293 : vector<1x8x32xf32> to vector<8x8x32xf32>
    %295 = arith.select %292, %294, %256 : vector<8x8x32xi1>, vector<8x8x32xf32>
    %cst_46 = arith.constant dense<0.000000e+00> : vector<8x96xf32>
    %296 = tpu.matmul %287, %2, %cst_46 {dimension_numbers = #tpu.dot_dimension_numbers<[1], [0], [0], [1], [0, 0, 1, 1], [], []>} : vector<8x32xf32>, vector<32x96xf32>, vector<8x96xf32> -> vector<8x96xf32>
    %297 = arith.addf %296, %19 : vector<8x96xf32>
    %298 = vector.extract_strided_slice %13 {offsets = [0, 7, 0], sizes = [8, 1, 32], strides = [1, 1, 1]} : vector<8x8x32xf32> to vector<8x1x32xf32>
    %299 = vector.shape_cast %298 : vector<8x1x32xf32> to vector<8x32xf32>
    %300 = vector.extract_strided_slice %297 {offsets = [0, 0], sizes = [8, 32], strides = [1, 1]} : vector<8x96xf32> to vector<8x32xf32>
    %301 = arith.addf %299, %300 : vector<8x32xf32>
    %302 = arith.negf %301 : vector<8x32xf32>
    %303 = math.exp %302 : vector<8x32xf32>
    %cst_47 = arith.constant 1.000000e+00 : f32
    %304 = vector.broadcast %cst_47 : f32 to vector<8x32xf32>
    %305 = arith.addf %304, %303 : vector<8x32xf32>
    %306 = arith.divf %304, %305 : vector<8x32xf32>
    %307 = vector.extract_strided_slice %15 {offsets = [0, 7, 0], sizes = [8, 1, 32], strides = [1, 1, 1]} : vector<8x8x32xf32> to vector<8x1x32xf32>
    %308 = vector.shape_cast %307 : vector<8x1x32xf32> to vector<8x32xf32>
    %309 = vector.extract_strided_slice %297 {offsets = [0, 32], sizes = [8, 32], strides = [1, 1]} : vector<8x96xf32> to vector<8x32xf32>
    %310 = arith.addf %308, %309 : vector<8x32xf32>
    %311 = arith.negf %310 : vector<8x32xf32>
    %312 = math.exp %311 : vector<8x32xf32>
    %cst_48 = arith.constant 1.000000e+00 : f32
    %313 = vector.broadcast %cst_48 : f32 to vector<8x32xf32>
    %314 = arith.addf %313, %312 : vector<8x32xf32>
    %315 = arith.divf %313, %314 : vector<8x32xf32>
    %316 = vector.extract_strided_slice %17 {offsets = [0, 7, 0], sizes = [8, 1, 32], strides = [1, 1, 1]} : vector<8x8x32xf32> to vector<8x1x32xf32>
    %317 = vector.shape_cast %316 : vector<8x1x32xf32> to vector<8x32xf32>
    %318 = vector.extract_strided_slice %297 {offsets = [0, 64], sizes = [8, 32], strides = [1, 1]} : vector<8x96xf32> to vector<8x32xf32>
    %319 = arith.mulf %306, %318 : vector<8x32xf32>
    %320 = arith.addf %317, %319 : vector<8x32xf32>
    %321 = math.tanh %320 : vector<8x32xf32>
    %cst_49 = arith.constant 1.000000e+00 : f32
    %322 = vector.broadcast %cst_49 : f32 to vector<8x32xf32>
    %323 = arith.subf %322, %315 : vector<8x32xf32>
    %324 = arith.mulf %323, %321 : vector<8x32xf32>
    %325 = arith.mulf %315, %287 : vector<8x32xf32>
    %326 = arith.addf %324, %325 : vector<8x32xf32>
    %c7_i32 = arith.constant 7 : i32
    %327 = vector.broadcast %c7_i32 : i32 to vector<8x1x1xi32>
    %328 = arith.cmpi eq, %22, %327 : vector<8x1x1xi32>
    %329 = vector.shape_cast %326 : vector<8x32xf32> to vector<1x8x32xf32>
    %330 = vector.shape_cast %328 : vector<8x1x1xi1> to vector<8x1x1xi1>
    %331 = vector.broadcast %330 : vector<8x1x1xi1> to vector<8x8x32xi1>
    %332 = vector.shape_cast %329 : vector<1x8x32xf32> to vector<1x8x32xf32>
    %333 = vector.broadcast %332 : vector<1x8x32xf32> to vector<8x8x32xf32>
    %334 = arith.select %331, %333, %295 : vector<8x8x32xi1>, vector<8x8x32xf32>
    %335 = vector.shape_cast %334 : vector<8x8x32xf32> to vector<64x32xf32>
    %cst_50 = arith.constant dense<0.000000e+00> : vector<64x32xf32>
    %336 = tpu.matmul %335, %5, %cst_50 {dimension_numbers = #tpu.dot_dimension_numbers<[1], [0], [0], [1], [0, 0, 1, 1], [], []>} : vector<64x32xf32>, vector<32x32xf32>, vector<64x32xf32> -> vector<64x32xf32>
    %337 = vector.broadcast %6 : vector<1x32xf32> to vector<64x32xf32>
    %338 = arith.addf %336, %337 : vector<64x32xf32>
    %339 = math.tanh %338 : vector<64x32xf32>
    %340 = vector.broadcast %7 : vector<1x32xf32> to vector<64x32xf32>
    %341 = arith.mulf %339, %340 : vector<64x32xf32>
    %cst_51 = arith.constant dense<0.000000e+00> : vector<64xf32>
    %342 = vector.multi_reduction <add>, %341, %cst_51 [1] : vector<64x32xf32> to vector<64xf32>
    %343 = vector.shape_cast %342 : vector<64xf32> to vector<64x1xf32>
    %344 = vector.shape_cast %343 : vector<64x1xf32> to vector<8x8x1xf32>
    %cst_52 = arith.constant dense<0xFF800000> : vector<8x1xf32>
    %345 = vector.multi_reduction <maximumf>, %344, %cst_52 [0] : vector<8x8x1xf32> to vector<8x1xf32>
    %346 = vector.shape_cast %345 : vector<8x1xf32> to vector<1x8x1xf32>
    %347 = vector.broadcast %346 : vector<1x8x1xf32> to vector<8x8x1xf32>
    %348 = arith.subf %344, %347 : vector<8x8x1xf32>
    %349 = math.exp %348 : vector<8x8x1xf32>
    %cst_53 = arith.constant dense<0.000000e+00> : vector<8x1xf32>
    %350 = vector.multi_reduction <add>, %349, %cst_53 [0] : vector<8x8x1xf32> to vector<8x1xf32>
    %351 = vector.broadcast %349 : vector<8x8x1xf32> to vector<8x8x32xf32>
    %352 = arith.mulf %351, %334 : vector<8x8x32xf32>
    %cst_54 = arith.constant dense<0.000000e+00> : vector<8x32xf32>
    %353 = vector.multi_reduction <add>, %352, %cst_54 [0] : vector<8x8x32xf32> to vector<8x32xf32>
    %354 = tpu.reciprocal %350 {approx = true} : vector<8x1xf32> -> vector<8x1xf32>
    %355 = vector.broadcast %354 : vector<8x1xf32> to vector<8x32xf32>
    %356 = arith.mulf %353, %355 : vector<8x32xf32>
    %357 = vector.shape_cast %356 : vector<8x32xf32> to vector<1x8x32xf32>
    %c0_55 = arith.constant 0 : index
    %c0_56 = arith.constant 0 : index
    %358 = vector.load %arg8[%c0_55, %c0_56] : memref<32x96xf32, #tpu.memory_space<vmem>>, vector<32x96xf32>
    %c0_57 = arith.constant 0 : index
    %c0_58 = arith.constant 0 : index
    %359 = vector.load %arg9[%c0_57, %c0_58] : memref<32x96xf32, #tpu.memory_space<vmem>>, vector<32x96xf32>
    %c0_59 = arith.constant 0 : index
    %c0_60 = arith.constant 0 : index
    %360 = vector.load %arg10[%c0_59, %c0_60] : memref<1x96xf32, #tpu.memory_space<vmem>>, vector<1x96xf32>
    %c0_61 = arith.constant 0 : index
    %c0_62 = arith.constant 0 : index
    %361 = vector.load %arg11[%c0_61, %c0_62] : memref<1x96xf32, #tpu.memory_space<vmem>>, vector<1x96xf32>
    %c0_63 = arith.constant 0 : index
    %c0_64 = arith.constant 0 : index
    %362 = vector.load %arg12[%c0_63, %c0_64] : memref<32x32xf32, #tpu.memory_space<vmem>>, vector<32x32xf32>
    %c0_65 = arith.constant 0 : index
    %c0_66 = arith.constant 0 : index
    %363 = vector.load %arg13[%c0_65, %c0_66] : memref<1x32xf32, #tpu.memory_space<vmem>>, vector<1x32xf32>
    %c0_67 = arith.constant 0 : index
    %c0_68 = arith.constant 0 : index
    %364 = vector.load %arg14[%c0_67, %c0_68] : memref<1x32xf32, #tpu.memory_space<vmem>>, vector<1x32xf32>
    %365 = vector.shape_cast %357 : vector<1x8x32xf32> to vector<8x32xf32>
    %cst_69 = arith.constant dense<0.000000e+00> : vector<8x96xf32>
    %366 = tpu.matmul %365, %358, %cst_69 {dimension_numbers = #tpu.dot_dimension_numbers<[1], [0], [0], [1], [0, 0, 1, 1], [], []>} : vector<8x32xf32>, vector<32x96xf32>, vector<8x96xf32> -> vector<8x96xf32>
    %367 = vector.broadcast %360 : vector<1x96xf32> to vector<8x96xf32>
    %368 = arith.addf %366, %367 : vector<8x96xf32>
    %369 = vector.extract_strided_slice %368 {offsets = [0, 0], sizes = [8, 32], strides = [1, 1]} : vector<8x96xf32> to vector<8x32xf32>
    %370 = vector.shape_cast %369 : vector<8x32xf32> to vector<1x8x32xf32>
    %371 = vector.extract_strided_slice %368 {offsets = [0, 32], sizes = [8, 32], strides = [1, 1]} : vector<8x96xf32> to vector<8x32xf32>
    %372 = vector.shape_cast %371 : vector<8x32xf32> to vector<1x8x32xf32>
    %373 = vector.extract_strided_slice %368 {offsets = [0, 64], sizes = [8, 32], strides = [1, 1]} : vector<8x96xf32> to vector<8x32xf32>
    %374 = vector.shape_cast %373 : vector<8x32xf32> to vector<1x8x32xf32>
    %cst_70 = arith.constant 0.000000e+00 : f32
    %375 = vector.broadcast %cst_70 : f32 to vector<1x32xf32>
    %cst_71 = arith.constant 0.000000e+00 : f32
    %376 = vector.broadcast %cst_71 : f32 to vector<8x1x32xf32>
    %377 = tpu.iota {dimensions = array<i32: 0>} : vector<8x1x1xi32>
    %cst_72 = arith.constant dense<0.000000e+00> : vector<1x96xf32>
    %378 = tpu.matmul %375, %359, %cst_72 {dimension_numbers = #tpu.dot_dimension_numbers<[1], [0], [0], [1], [0, 0, 1, 1], [], []>} : vector<1x32xf32>, vector<32x96xf32>, vector<1x96xf32> -> vector<1x96xf32>
    %379 = arith.addf %378, %361 : vector<1x96xf32>
    %380 = vector.extract_strided_slice %370 {offsets = [0, 0, 0], sizes = [1, 1, 32], strides = [1, 1, 1]} : vector<1x8x32xf32> to vector<1x1x32xf32>
    %381 = vector.shape_cast %380 : vector<1x1x32xf32> to vector<1x32xf32>
    %382 = vector.extract_strided_slice %379 {offsets = [0, 0], sizes = [1, 32], strides = [1, 1]} : vector<1x96xf32> to vector<1x32xf32>
    %383 = arith.addf %381, %382 : vector<1x32xf32>
    %384 = arith.negf %383 : vector<1x32xf32>
    %385 = math.exp %384 : vector<1x32xf32>
    %cst_73 = arith.constant 1.000000e+00 : f32
    %386 = vector.broadcast %cst_73 : f32 to vector<1x32xf32>
    %387 = arith.addf %386, %385 : vector<1x32xf32>
    %388 = arith.divf %386, %387 : vector<1x32xf32>
    %389 = vector.extract_strided_slice %372 {offsets = [0, 0, 0], sizes = [1, 1, 32], strides = [1, 1, 1]} : vector<1x8x32xf32> to vector<1x1x32xf32>
    %390 = vector.shape_cast %389 : vector<1x1x32xf32> to vector<1x32xf32>
    %391 = vector.extract_strided_slice %379 {offsets = [0, 32], sizes = [1, 32], strides = [1, 1]} : vector<1x96xf32> to vector<1x32xf32>
    %392 = arith.addf %390, %391 : vector<1x32xf32>
    %393 = arith.negf %392 : vector<1x32xf32>
    %394 = math.exp %393 : vector<1x32xf32>
    %cst_74 = arith.constant 1.000000e+00 : f32
    %395 = vector.broadcast %cst_74 : f32 to vector<1x32xf32>
    %396 = arith.addf %395, %394 : vector<1x32xf32>
    %397 = arith.divf %395, %396 : vector<1x32xf32>
    %398 = vector.extract_strided_slice %374 {offsets = [0, 0, 0], sizes = [1, 1, 32], strides = [1, 1, 1]} : vector<1x8x32xf32> to vector<1x1x32xf32>
    %399 = vector.shape_cast %398 : vector<1x1x32xf32> to vector<1x32xf32>
    %400 = vector.extract_strided_slice %379 {offsets = [0, 64], sizes = [1, 32], strides = [1, 1]} : vector<1x96xf32> to vector<1x32xf32>
    %401 = arith.mulf %388, %400 : vector<1x32xf32>
    %402 = arith.addf %399, %401 : vector<1x32xf32>
    %403 = math.tanh %402 : vector<1x32xf32>
    %cst_75 = arith.constant 1.000000e+00 : f32
    %404 = vector.broadcast %cst_75 : f32 to vector<1x32xf32>
    %405 = arith.subf %404, %397 : vector<1x32xf32>
    %406 = arith.mulf %405, %403 : vector<1x32xf32>
    %407 = arith.mulf %397, %375 : vector<1x32xf32>
    %408 = arith.addf %406, %407 : vector<1x32xf32>
    %c0_i32_76 = arith.constant 0 : i32
    %409 = vector.broadcast %c0_i32_76 : i32 to vector<8x1x1xi32>
    %410 = arith.cmpi eq, %377, %409 : vector<8x1x1xi32>
    %411 = vector.shape_cast %408 : vector<1x32xf32> to vector<1x1x32xf32>
    %412 = vector.shape_cast %410 : vector<8x1x1xi1> to vector<8x1x1xi1>
    %413 = vector.broadcast %412 : vector<8x1x1xi1> to vector<8x1x32xi1>
    %414 = vector.shape_cast %411 : vector<1x1x32xf32> to vector<1x1x32xf32>
    %415 = vector.broadcast %414 : vector<1x1x32xf32> to vector<8x1x32xf32>
    %416 = arith.select %413, %415, %376 : vector<8x1x32xi1>, vector<8x1x32xf32>
    %cst_77 = arith.constant dense<0.000000e+00> : vector<1x96xf32>
    %417 = tpu.matmul %408, %359, %cst_77 {dimension_numbers = #tpu.dot_dimension_numbers<[1], [0], [0], [1], [0, 0, 1, 1], [], []>} : vector<1x32xf32>, vector<32x96xf32>, vector<1x96xf32> -> vector<1x96xf32>
    %418 = arith.addf %417, %361 : vector<1x96xf32>
    %419 = vector.extract_strided_slice %370 {offsets = [0, 1, 0], sizes = [1, 1, 32], strides = [1, 1, 1]} : vector<1x8x32xf32> to vector<1x1x32xf32>
    %420 = vector.shape_cast %419 : vector<1x1x32xf32> to vector<1x32xf32>
    %421 = vector.extract_strided_slice %418 {offsets = [0, 0], sizes = [1, 32], strides = [1, 1]} : vector<1x96xf32> to vector<1x32xf32>
    %422 = arith.addf %420, %421 : vector<1x32xf32>
    %423 = arith.negf %422 : vector<1x32xf32>
    %424 = math.exp %423 : vector<1x32xf32>
    %cst_78 = arith.constant 1.000000e+00 : f32
    %425 = vector.broadcast %cst_78 : f32 to vector<1x32xf32>
    %426 = arith.addf %425, %424 : vector<1x32xf32>
    %427 = arith.divf %425, %426 : vector<1x32xf32>
    %428 = vector.extract_strided_slice %372 {offsets = [0, 1, 0], sizes = [1, 1, 32], strides = [1, 1, 1]} : vector<1x8x32xf32> to vector<1x1x32xf32>
    %429 = vector.shape_cast %428 : vector<1x1x32xf32> to vector<1x32xf32>
    %430 = vector.extract_strided_slice %418 {offsets = [0, 32], sizes = [1, 32], strides = [1, 1]} : vector<1x96xf32> to vector<1x32xf32>
    %431 = arith.addf %429, %430 : vector<1x32xf32>
    %432 = arith.negf %431 : vector<1x32xf32>
    %433 = math.exp %432 : vector<1x32xf32>
    %cst_79 = arith.constant 1.000000e+00 : f32
    %434 = vector.broadcast %cst_79 : f32 to vector<1x32xf32>
    %435 = arith.addf %434, %433 : vector<1x32xf32>
    %436 = arith.divf %434, %435 : vector<1x32xf32>
    %437 = vector.extract_strided_slice %374 {offsets = [0, 1, 0], sizes = [1, 1, 32], strides = [1, 1, 1]} : vector<1x8x32xf32> to vector<1x1x32xf32>
    %438 = vector.shape_cast %437 : vector<1x1x32xf32> to vector<1x32xf32>
    %439 = vector.extract_strided_slice %418 {offsets = [0, 64], sizes = [1, 32], strides = [1, 1]} : vector<1x96xf32> to vector<1x32xf32>
    %440 = arith.mulf %427, %439 : vector<1x32xf32>
    %441 = arith.addf %438, %440 : vector<1x32xf32>
    %442 = math.tanh %441 : vector<1x32xf32>
    %cst_80 = arith.constant 1.000000e+00 : f32
    %443 = vector.broadcast %cst_80 : f32 to vector<1x32xf32>
    %444 = arith.subf %443, %436 : vector<1x32xf32>
    %445 = arith.mulf %444, %442 : vector<1x32xf32>
    %446 = arith.mulf %436, %408 : vector<1x32xf32>
    %447 = arith.addf %445, %446 : vector<1x32xf32>
    %c1_i32_81 = arith.constant 1 : i32
    %448 = vector.broadcast %c1_i32_81 : i32 to vector<8x1x1xi32>
    %449 = arith.cmpi eq, %377, %448 : vector<8x1x1xi32>
    %450 = vector.shape_cast %447 : vector<1x32xf32> to vector<1x1x32xf32>
    %451 = vector.shape_cast %449 : vector<8x1x1xi1> to vector<8x1x1xi1>
    %452 = vector.broadcast %451 : vector<8x1x1xi1> to vector<8x1x32xi1>
    %453 = vector.shape_cast %450 : vector<1x1x32xf32> to vector<1x1x32xf32>
    %454 = vector.broadcast %453 : vector<1x1x32xf32> to vector<8x1x32xf32>
    %455 = arith.select %452, %454, %416 : vector<8x1x32xi1>, vector<8x1x32xf32>
    %cst_82 = arith.constant dense<0.000000e+00> : vector<1x96xf32>
    %456 = tpu.matmul %447, %359, %cst_82 {dimension_numbers = #tpu.dot_dimension_numbers<[1], [0], [0], [1], [0, 0, 1, 1], [], []>} : vector<1x32xf32>, vector<32x96xf32>, vector<1x96xf32> -> vector<1x96xf32>
    %457 = arith.addf %456, %361 : vector<1x96xf32>
    %458 = vector.extract_strided_slice %370 {offsets = [0, 2, 0], sizes = [1, 1, 32], strides = [1, 1, 1]} : vector<1x8x32xf32> to vector<1x1x32xf32>
    %459 = vector.shape_cast %458 : vector<1x1x32xf32> to vector<1x32xf32>
    %460 = vector.extract_strided_slice %457 {offsets = [0, 0], sizes = [1, 32], strides = [1, 1]} : vector<1x96xf32> to vector<1x32xf32>
    %461 = arith.addf %459, %460 : vector<1x32xf32>
    %462 = arith.negf %461 : vector<1x32xf32>
    %463 = math.exp %462 : vector<1x32xf32>
    %cst_83 = arith.constant 1.000000e+00 : f32
    %464 = vector.broadcast %cst_83 : f32 to vector<1x32xf32>
    %465 = arith.addf %464, %463 : vector<1x32xf32>
    %466 = arith.divf %464, %465 : vector<1x32xf32>
    %467 = vector.extract_strided_slice %372 {offsets = [0, 2, 0], sizes = [1, 1, 32], strides = [1, 1, 1]} : vector<1x8x32xf32> to vector<1x1x32xf32>
    %468 = vector.shape_cast %467 : vector<1x1x32xf32> to vector<1x32xf32>
    %469 = vector.extract_strided_slice %457 {offsets = [0, 32], sizes = [1, 32], strides = [1, 1]} : vector<1x96xf32> to vector<1x32xf32>
    %470 = arith.addf %468, %469 : vector<1x32xf32>
    %471 = arith.negf %470 : vector<1x32xf32>
    %472 = math.exp %471 : vector<1x32xf32>
    %cst_84 = arith.constant 1.000000e+00 : f32
    %473 = vector.broadcast %cst_84 : f32 to vector<1x32xf32>
    %474 = arith.addf %473, %472 : vector<1x32xf32>
    %475 = arith.divf %473, %474 : vector<1x32xf32>
    %476 = vector.extract_strided_slice %374 {offsets = [0, 2, 0], sizes = [1, 1, 32], strides = [1, 1, 1]} : vector<1x8x32xf32> to vector<1x1x32xf32>
    %477 = vector.shape_cast %476 : vector<1x1x32xf32> to vector<1x32xf32>
    %478 = vector.extract_strided_slice %457 {offsets = [0, 64], sizes = [1, 32], strides = [1, 1]} : vector<1x96xf32> to vector<1x32xf32>
    %479 = arith.mulf %466, %478 : vector<1x32xf32>
    %480 = arith.addf %477, %479 : vector<1x32xf32>
    %481 = math.tanh %480 : vector<1x32xf32>
    %cst_85 = arith.constant 1.000000e+00 : f32
    %482 = vector.broadcast %cst_85 : f32 to vector<1x32xf32>
    %483 = arith.subf %482, %475 : vector<1x32xf32>
    %484 = arith.mulf %483, %481 : vector<1x32xf32>
    %485 = arith.mulf %475, %447 : vector<1x32xf32>
    %486 = arith.addf %484, %485 : vector<1x32xf32>
    %c2_i32_86 = arith.constant 2 : i32
    %487 = vector.broadcast %c2_i32_86 : i32 to vector<8x1x1xi32>
    %488 = arith.cmpi eq, %377, %487 : vector<8x1x1xi32>
    %489 = vector.shape_cast %486 : vector<1x32xf32> to vector<1x1x32xf32>
    %490 = vector.shape_cast %488 : vector<8x1x1xi1> to vector<8x1x1xi1>
    %491 = vector.broadcast %490 : vector<8x1x1xi1> to vector<8x1x32xi1>
    %492 = vector.shape_cast %489 : vector<1x1x32xf32> to vector<1x1x32xf32>
    %493 = vector.broadcast %492 : vector<1x1x32xf32> to vector<8x1x32xf32>
    %494 = arith.select %491, %493, %455 : vector<8x1x32xi1>, vector<8x1x32xf32>
    %cst_87 = arith.constant dense<0.000000e+00> : vector<1x96xf32>
    %495 = tpu.matmul %486, %359, %cst_87 {dimension_numbers = #tpu.dot_dimension_numbers<[1], [0], [0], [1], [0, 0, 1, 1], [], []>} : vector<1x32xf32>, vector<32x96xf32>, vector<1x96xf32> -> vector<1x96xf32>
    %496 = arith.addf %495, %361 : vector<1x96xf32>
    %497 = vector.extract_strided_slice %370 {offsets = [0, 3, 0], sizes = [1, 1, 32], strides = [1, 1, 1]} : vector<1x8x32xf32> to vector<1x1x32xf32>
    %498 = vector.shape_cast %497 : vector<1x1x32xf32> to vector<1x32xf32>
    %499 = vector.extract_strided_slice %496 {offsets = [0, 0], sizes = [1, 32], strides = [1, 1]} : vector<1x96xf32> to vector<1x32xf32>
    %500 = arith.addf %498, %499 : vector<1x32xf32>
    %501 = arith.negf %500 : vector<1x32xf32>
    %502 = math.exp %501 : vector<1x32xf32>
    %cst_88 = arith.constant 1.000000e+00 : f32
    %503 = vector.broadcast %cst_88 : f32 to vector<1x32xf32>
    %504 = arith.addf %503, %502 : vector<1x32xf32>
    %505 = arith.divf %503, %504 : vector<1x32xf32>
    %506 = vector.extract_strided_slice %372 {offsets = [0, 3, 0], sizes = [1, 1, 32], strides = [1, 1, 1]} : vector<1x8x32xf32> to vector<1x1x32xf32>
    %507 = vector.shape_cast %506 : vector<1x1x32xf32> to vector<1x32xf32>
    %508 = vector.extract_strided_slice %496 {offsets = [0, 32], sizes = [1, 32], strides = [1, 1]} : vector<1x96xf32> to vector<1x32xf32>
    %509 = arith.addf %507, %508 : vector<1x32xf32>
    %510 = arith.negf %509 : vector<1x32xf32>
    %511 = math.exp %510 : vector<1x32xf32>
    %cst_89 = arith.constant 1.000000e+00 : f32
    %512 = vector.broadcast %cst_89 : f32 to vector<1x32xf32>
    %513 = arith.addf %512, %511 : vector<1x32xf32>
    %514 = arith.divf %512, %513 : vector<1x32xf32>
    %515 = vector.extract_strided_slice %374 {offsets = [0, 3, 0], sizes = [1, 1, 32], strides = [1, 1, 1]} : vector<1x8x32xf32> to vector<1x1x32xf32>
    %516 = vector.shape_cast %515 : vector<1x1x32xf32> to vector<1x32xf32>
    %517 = vector.extract_strided_slice %496 {offsets = [0, 64], sizes = [1, 32], strides = [1, 1]} : vector<1x96xf32> to vector<1x32xf32>
    %518 = arith.mulf %505, %517 : vector<1x32xf32>
    %519 = arith.addf %516, %518 : vector<1x32xf32>
    %520 = math.tanh %519 : vector<1x32xf32>
    %cst_90 = arith.constant 1.000000e+00 : f32
    %521 = vector.broadcast %cst_90 : f32 to vector<1x32xf32>
    %522 = arith.subf %521, %514 : vector<1x32xf32>
    %523 = arith.mulf %522, %520 : vector<1x32xf32>
    %524 = arith.mulf %514, %486 : vector<1x32xf32>
    %525 = arith.addf %523, %524 : vector<1x32xf32>
    %c3_i32_91 = arith.constant 3 : i32
    %526 = vector.broadcast %c3_i32_91 : i32 to vector<8x1x1xi32>
    %527 = arith.cmpi eq, %377, %526 : vector<8x1x1xi32>
    %528 = vector.shape_cast %525 : vector<1x32xf32> to vector<1x1x32xf32>
    %529 = vector.shape_cast %527 : vector<8x1x1xi1> to vector<8x1x1xi1>
    %530 = vector.broadcast %529 : vector<8x1x1xi1> to vector<8x1x32xi1>
    %531 = vector.shape_cast %528 : vector<1x1x32xf32> to vector<1x1x32xf32>
    %532 = vector.broadcast %531 : vector<1x1x32xf32> to vector<8x1x32xf32>
    %533 = arith.select %530, %532, %494 : vector<8x1x32xi1>, vector<8x1x32xf32>
    %cst_92 = arith.constant dense<0.000000e+00> : vector<1x96xf32>
    %534 = tpu.matmul %525, %359, %cst_92 {dimension_numbers = #tpu.dot_dimension_numbers<[1], [0], [0], [1], [0, 0, 1, 1], [], []>} : vector<1x32xf32>, vector<32x96xf32>, vector<1x96xf32> -> vector<1x96xf32>
    %535 = arith.addf %534, %361 : vector<1x96xf32>
    %536 = vector.extract_strided_slice %370 {offsets = [0, 4, 0], sizes = [1, 1, 32], strides = [1, 1, 1]} : vector<1x8x32xf32> to vector<1x1x32xf32>
    %537 = vector.shape_cast %536 : vector<1x1x32xf32> to vector<1x32xf32>
    %538 = vector.extract_strided_slice %535 {offsets = [0, 0], sizes = [1, 32], strides = [1, 1]} : vector<1x96xf32> to vector<1x32xf32>
    %539 = arith.addf %537, %538 : vector<1x32xf32>
    %540 = arith.negf %539 : vector<1x32xf32>
    %541 = math.exp %540 : vector<1x32xf32>
    %cst_93 = arith.constant 1.000000e+00 : f32
    %542 = vector.broadcast %cst_93 : f32 to vector<1x32xf32>
    %543 = arith.addf %542, %541 : vector<1x32xf32>
    %544 = arith.divf %542, %543 : vector<1x32xf32>
    %545 = vector.extract_strided_slice %372 {offsets = [0, 4, 0], sizes = [1, 1, 32], strides = [1, 1, 1]} : vector<1x8x32xf32> to vector<1x1x32xf32>
    %546 = vector.shape_cast %545 : vector<1x1x32xf32> to vector<1x32xf32>
    %547 = vector.extract_strided_slice %535 {offsets = [0, 32], sizes = [1, 32], strides = [1, 1]} : vector<1x96xf32> to vector<1x32xf32>
    %548 = arith.addf %546, %547 : vector<1x32xf32>
    %549 = arith.negf %548 : vector<1x32xf32>
    %550 = math.exp %549 : vector<1x32xf32>
    %cst_94 = arith.constant 1.000000e+00 : f32
    %551 = vector.broadcast %cst_94 : f32 to vector<1x32xf32>
    %552 = arith.addf %551, %550 : vector<1x32xf32>
    %553 = arith.divf %551, %552 : vector<1x32xf32>
    %554 = vector.extract_strided_slice %374 {offsets = [0, 4, 0], sizes = [1, 1, 32], strides = [1, 1, 1]} : vector<1x8x32xf32> to vector<1x1x32xf32>
    %555 = vector.shape_cast %554 : vector<1x1x32xf32> to vector<1x32xf32>
    %556 = vector.extract_strided_slice %535 {offsets = [0, 64], sizes = [1, 32], strides = [1, 1]} : vector<1x96xf32> to vector<1x32xf32>
    %557 = arith.mulf %544, %556 : vector<1x32xf32>
    %558 = arith.addf %555, %557 : vector<1x32xf32>
    %559 = math.tanh %558 : vector<1x32xf32>
    %cst_95 = arith.constant 1.000000e+00 : f32
    %560 = vector.broadcast %cst_95 : f32 to vector<1x32xf32>
    %561 = arith.subf %560, %553 : vector<1x32xf32>
    %562 = arith.mulf %561, %559 : vector<1x32xf32>
    %563 = arith.mulf %553, %525 : vector<1x32xf32>
    %564 = arith.addf %562, %563 : vector<1x32xf32>
    %c4_i32_96 = arith.constant 4 : i32
    %565 = vector.broadcast %c4_i32_96 : i32 to vector<8x1x1xi32>
    %566 = arith.cmpi eq, %377, %565 : vector<8x1x1xi32>
    %567 = vector.shape_cast %564 : vector<1x32xf32> to vector<1x1x32xf32>
    %568 = vector.shape_cast %566 : vector<8x1x1xi1> to vector<8x1x1xi1>
    %569 = vector.broadcast %568 : vector<8x1x1xi1> to vector<8x1x32xi1>
    %570 = vector.shape_cast %567 : vector<1x1x32xf32> to vector<1x1x32xf32>
    %571 = vector.broadcast %570 : vector<1x1x32xf32> to vector<8x1x32xf32>
    %572 = arith.select %569, %571, %533 : vector<8x1x32xi1>, vector<8x1x32xf32>
    %cst_97 = arith.constant dense<0.000000e+00> : vector<1x96xf32>
    %573 = tpu.matmul %564, %359, %cst_97 {dimension_numbers = #tpu.dot_dimension_numbers<[1], [0], [0], [1], [0, 0, 1, 1], [], []>} : vector<1x32xf32>, vector<32x96xf32>, vector<1x96xf32> -> vector<1x96xf32>
    %574 = arith.addf %573, %361 : vector<1x96xf32>
    %575 = vector.extract_strided_slice %370 {offsets = [0, 5, 0], sizes = [1, 1, 32], strides = [1, 1, 1]} : vector<1x8x32xf32> to vector<1x1x32xf32>
    %576 = vector.shape_cast %575 : vector<1x1x32xf32> to vector<1x32xf32>
    %577 = vector.extract_strided_slice %574 {offsets = [0, 0], sizes = [1, 32], strides = [1, 1]} : vector<1x96xf32> to vector<1x32xf32>
    %578 = arith.addf %576, %577 : vector<1x32xf32>
    %579 = arith.negf %578 : vector<1x32xf32>
    %580 = math.exp %579 : vector<1x32xf32>
    %cst_98 = arith.constant 1.000000e+00 : f32
    %581 = vector.broadcast %cst_98 : f32 to vector<1x32xf32>
    %582 = arith.addf %581, %580 : vector<1x32xf32>
    %583 = arith.divf %581, %582 : vector<1x32xf32>
    %584 = vector.extract_strided_slice %372 {offsets = [0, 5, 0], sizes = [1, 1, 32], strides = [1, 1, 1]} : vector<1x8x32xf32> to vector<1x1x32xf32>
    %585 = vector.shape_cast %584 : vector<1x1x32xf32> to vector<1x32xf32>
    %586 = vector.extract_strided_slice %574 {offsets = [0, 32], sizes = [1, 32], strides = [1, 1]} : vector<1x96xf32> to vector<1x32xf32>
    %587 = arith.addf %585, %586 : vector<1x32xf32>
    %588 = arith.negf %587 : vector<1x32xf32>
    %589 = math.exp %588 : vector<1x32xf32>
    %cst_99 = arith.constant 1.000000e+00 : f32
    %590 = vector.broadcast %cst_99 : f32 to vector<1x32xf32>
    %591 = arith.addf %590, %589 : vector<1x32xf32>
    %592 = arith.divf %590, %591 : vector<1x32xf32>
    %593 = vector.extract_strided_slice %374 {offsets = [0, 5, 0], sizes = [1, 1, 32], strides = [1, 1, 1]} : vector<1x8x32xf32> to vector<1x1x32xf32>
    %594 = vector.shape_cast %593 : vector<1x1x32xf32> to vector<1x32xf32>
    %595 = vector.extract_strided_slice %574 {offsets = [0, 64], sizes = [1, 32], strides = [1, 1]} : vector<1x96xf32> to vector<1x32xf32>
    %596 = arith.mulf %583, %595 : vector<1x32xf32>
    %597 = arith.addf %594, %596 : vector<1x32xf32>
    %598 = math.tanh %597 : vector<1x32xf32>
    %cst_100 = arith.constant 1.000000e+00 : f32
    %599 = vector.broadcast %cst_100 : f32 to vector<1x32xf32>
    %600 = arith.subf %599, %592 : vector<1x32xf32>
    %601 = arith.mulf %600, %598 : vector<1x32xf32>
    %602 = arith.mulf %592, %564 : vector<1x32xf32>
    %603 = arith.addf %601, %602 : vector<1x32xf32>
    %c5_i32_101 = arith.constant 5 : i32
    %604 = vector.broadcast %c5_i32_101 : i32 to vector<8x1x1xi32>
    %605 = arith.cmpi eq, %377, %604 : vector<8x1x1xi32>
    %606 = vector.shape_cast %603 : vector<1x32xf32> to vector<1x1x32xf32>
    %607 = vector.shape_cast %605 : vector<8x1x1xi1> to vector<8x1x1xi1>
    %608 = vector.broadcast %607 : vector<8x1x1xi1> to vector<8x1x32xi1>
    %609 = vector.shape_cast %606 : vector<1x1x32xf32> to vector<1x1x32xf32>
    %610 = vector.broadcast %609 : vector<1x1x32xf32> to vector<8x1x32xf32>
    %611 = arith.select %608, %610, %572 : vector<8x1x32xi1>, vector<8x1x32xf32>
    %cst_102 = arith.constant dense<0.000000e+00> : vector<1x96xf32>
    %612 = tpu.matmul %603, %359, %cst_102 {dimension_numbers = #tpu.dot_dimension_numbers<[1], [0], [0], [1], [0, 0, 1, 1], [], []>} : vector<1x32xf32>, vector<32x96xf32>, vector<1x96xf32> -> vector<1x96xf32>
    %613 = arith.addf %612, %361 : vector<1x96xf32>
    %614 = vector.extract_strided_slice %370 {offsets = [0, 6, 0], sizes = [1, 1, 32], strides = [1, 1, 1]} : vector<1x8x32xf32> to vector<1x1x32xf32>
    %615 = vector.shape_cast %614 : vector<1x1x32xf32> to vector<1x32xf32>
    %616 = vector.extract_strided_slice %613 {offsets = [0, 0], sizes = [1, 32], strides = [1, 1]} : vector<1x96xf32> to vector<1x32xf32>
    %617 = arith.addf %615, %616 : vector<1x32xf32>
    %618 = arith.negf %617 : vector<1x32xf32>
    %619 = math.exp %618 : vector<1x32xf32>
    %cst_103 = arith.constant 1.000000e+00 : f32
    %620 = vector.broadcast %cst_103 : f32 to vector<1x32xf32>
    %621 = arith.addf %620, %619 : vector<1x32xf32>
    %622 = arith.divf %620, %621 : vector<1x32xf32>
    %623 = vector.extract_strided_slice %372 {offsets = [0, 6, 0], sizes = [1, 1, 32], strides = [1, 1, 1]} : vector<1x8x32xf32> to vector<1x1x32xf32>
    %624 = vector.shape_cast %623 : vector<1x1x32xf32> to vector<1x32xf32>
    %625 = vector.extract_strided_slice %613 {offsets = [0, 32], sizes = [1, 32], strides = [1, 1]} : vector<1x96xf32> to vector<1x32xf32>
    %626 = arith.addf %624, %625 : vector<1x32xf32>
    %627 = arith.negf %626 : vector<1x32xf32>
    %628 = math.exp %627 : vector<1x32xf32>
    %cst_104 = arith.constant 1.000000e+00 : f32
    %629 = vector.broadcast %cst_104 : f32 to vector<1x32xf32>
    %630 = arith.addf %629, %628 : vector<1x32xf32>
    %631 = arith.divf %629, %630 : vector<1x32xf32>
    %632 = vector.extract_strided_slice %374 {offsets = [0, 6, 0], sizes = [1, 1, 32], strides = [1, 1, 1]} : vector<1x8x32xf32> to vector<1x1x32xf32>
    %633 = vector.shape_cast %632 : vector<1x1x32xf32> to vector<1x32xf32>
    %634 = vector.extract_strided_slice %613 {offsets = [0, 64], sizes = [1, 32], strides = [1, 1]} : vector<1x96xf32> to vector<1x32xf32>
    %635 = arith.mulf %622, %634 : vector<1x32xf32>
    %636 = arith.addf %633, %635 : vector<1x32xf32>
    %637 = math.tanh %636 : vector<1x32xf32>
    %cst_105 = arith.constant 1.000000e+00 : f32
    %638 = vector.broadcast %cst_105 : f32 to vector<1x32xf32>
    %639 = arith.subf %638, %631 : vector<1x32xf32>
    %640 = arith.mulf %639, %637 : vector<1x32xf32>
    %641 = arith.mulf %631, %603 : vector<1x32xf32>
    %642 = arith.addf %640, %641 : vector<1x32xf32>
    %c6_i32_106 = arith.constant 6 : i32
    %643 = vector.broadcast %c6_i32_106 : i32 to vector<8x1x1xi32>
    %644 = arith.cmpi eq, %377, %643 : vector<8x1x1xi32>
    %645 = vector.shape_cast %642 : vector<1x32xf32> to vector<1x1x32xf32>
    %646 = vector.shape_cast %644 : vector<8x1x1xi1> to vector<8x1x1xi1>
    %647 = vector.broadcast %646 : vector<8x1x1xi1> to vector<8x1x32xi1>
    %648 = vector.shape_cast %645 : vector<1x1x32xf32> to vector<1x1x32xf32>
    %649 = vector.broadcast %648 : vector<1x1x32xf32> to vector<8x1x32xf32>
    %650 = arith.select %647, %649, %611 : vector<8x1x32xi1>, vector<8x1x32xf32>
    %cst_107 = arith.constant dense<0.000000e+00> : vector<1x96xf32>
    %651 = tpu.matmul %642, %359, %cst_107 {dimension_numbers = #tpu.dot_dimension_numbers<[1], [0], [0], [1], [0, 0, 1, 1], [], []>} : vector<1x32xf32>, vector<32x96xf32>, vector<1x96xf32> -> vector<1x96xf32>
    %652 = arith.addf %651, %361 : vector<1x96xf32>
    %653 = vector.extract_strided_slice %370 {offsets = [0, 7, 0], sizes = [1, 1, 32], strides = [1, 1, 1]} : vector<1x8x32xf32> to vector<1x1x32xf32>
    %654 = vector.shape_cast %653 : vector<1x1x32xf32> to vector<1x32xf32>
    %655 = vector.extract_strided_slice %652 {offsets = [0, 0], sizes = [1, 32], strides = [1, 1]} : vector<1x96xf32> to vector<1x32xf32>
    %656 = arith.addf %654, %655 : vector<1x32xf32>
    %657 = arith.negf %656 : vector<1x32xf32>
    %658 = math.exp %657 : vector<1x32xf32>
    %cst_108 = arith.constant 1.000000e+00 : f32
    %659 = vector.broadcast %cst_108 : f32 to vector<1x32xf32>
    %660 = arith.addf %659, %658 : vector<1x32xf32>
    %661 = arith.divf %659, %660 : vector<1x32xf32>
    %662 = vector.extract_strided_slice %372 {offsets = [0, 7, 0], sizes = [1, 1, 32], strides = [1, 1, 1]} : vector<1x8x32xf32> to vector<1x1x32xf32>
    %663 = vector.shape_cast %662 : vector<1x1x32xf32> to vector<1x32xf32>
    %664 = vector.extract_strided_slice %652 {offsets = [0, 32], sizes = [1, 32], strides = [1, 1]} : vector<1x96xf32> to vector<1x32xf32>
    %665 = arith.addf %663, %664 : vector<1x32xf32>
    %666 = arith.negf %665 : vector<1x32xf32>
    %667 = math.exp %666 : vector<1x32xf32>
    %cst_109 = arith.constant 1.000000e+00 : f32
    %668 = vector.broadcast %cst_109 : f32 to vector<1x32xf32>
    %669 = arith.addf %668, %667 : vector<1x32xf32>
    %670 = arith.divf %668, %669 : vector<1x32xf32>
    %671 = vector.extract_strided_slice %374 {offsets = [0, 7, 0], sizes = [1, 1, 32], strides = [1, 1, 1]} : vector<1x8x32xf32> to vector<1x1x32xf32>
    %672 = vector.shape_cast %671 : vector<1x1x32xf32> to vector<1x32xf32>
    %673 = vector.extract_strided_slice %652 {offsets = [0, 64], sizes = [1, 32], strides = [1, 1]} : vector<1x96xf32> to vector<1x32xf32>
    %674 = arith.mulf %661, %673 : vector<1x32xf32>
    %675 = arith.addf %672, %674 : vector<1x32xf32>
    %676 = math.tanh %675 : vector<1x32xf32>
    %cst_110 = arith.constant 1.000000e+00 : f32
    %677 = vector.broadcast %cst_110 : f32 to vector<1x32xf32>
    %678 = arith.subf %677, %670 : vector<1x32xf32>
    %679 = arith.mulf %678, %676 : vector<1x32xf32>
    %680 = arith.mulf %670, %642 : vector<1x32xf32>
    %681 = arith.addf %679, %680 : vector<1x32xf32>
    %c7_i32_111 = arith.constant 7 : i32
    %682 = vector.broadcast %c7_i32_111 : i32 to vector<8x1x1xi32>
    %683 = arith.cmpi eq, %377, %682 : vector<8x1x1xi32>
    %684 = vector.shape_cast %681 : vector<1x32xf32> to vector<1x1x32xf32>
    %685 = vector.shape_cast %683 : vector<8x1x1xi1> to vector<8x1x1xi1>
    %686 = vector.broadcast %685 : vector<8x1x1xi1> to vector<8x1x32xi1>
    %687 = vector.shape_cast %684 : vector<1x1x32xf32> to vector<1x1x32xf32>
    %688 = vector.broadcast %687 : vector<1x1x32xf32> to vector<8x1x32xf32>
    %689 = arith.select %686, %688, %650 : vector<8x1x32xi1>, vector<8x1x32xf32>
    %690 = vector.shape_cast %689 : vector<8x1x32xf32> to vector<8x32xf32>
    %cst_112 = arith.constant dense<0.000000e+00> : vector<8x32xf32>
    %691 = tpu.matmul %690, %362, %cst_112 {dimension_numbers = #tpu.dot_dimension_numbers<[1], [0], [0], [1], [0, 0, 1, 1], [], []>} : vector<8x32xf32>, vector<32x32xf32>, vector<8x32xf32> -> vector<8x32xf32>
    %692 = vector.broadcast %363 : vector<1x32xf32> to vector<8x32xf32>
    %693 = arith.addf %691, %692 : vector<8x32xf32>
    %694 = math.tanh %693 : vector<8x32xf32>
    %695 = vector.broadcast %364 : vector<1x32xf32> to vector<8x32xf32>
    %696 = arith.mulf %694, %695 : vector<8x32xf32>
    %cst_113 = arith.constant dense<0.000000e+00> : vector<8xf32>
    %697 = vector.multi_reduction <add>, %696, %cst_113 [1] : vector<8x32xf32> to vector<8xf32>
    %698 = vector.shape_cast %697 : vector<8xf32> to vector<8x1xf32>
    %699 = vector.shape_cast %698 : vector<8x1xf32> to vector<8x1x1xf32>
    %cst_114 = arith.constant dense<0xFF800000> : vector<1x1xf32>
    %700 = vector.multi_reduction <maximumf>, %699, %cst_114 [0] : vector<8x1x1xf32> to vector<1x1xf32>
    %701 = vector.shape_cast %700 : vector<1x1xf32> to vector<1x1x1xf32>
    %702 = vector.broadcast %701 : vector<1x1x1xf32> to vector<8x1x1xf32>
    %703 = arith.subf %699, %702 : vector<8x1x1xf32>
    %704 = math.exp %703 : vector<8x1x1xf32>
    %cst_115 = arith.constant dense<0.000000e+00> : vector<1x1xf32>
    %705 = vector.multi_reduction <add>, %704, %cst_115 [0] : vector<8x1x1xf32> to vector<1x1xf32>
    %706 = vector.broadcast %704 : vector<8x1x1xf32> to vector<8x1x32xf32>
    %707 = arith.mulf %706, %689 : vector<8x1x32xf32>
    %cst_116 = arith.constant dense<0.000000e+00> : vector<1x32xf32>
    %708 = vector.multi_reduction <add>, %707, %cst_116 [0] : vector<8x1x32xf32> to vector<1x32xf32>
    %709 = tpu.reciprocal %705 {approx = true} : vector<1x1xf32> -> vector<1x1xf32>
    %710 = vector.broadcast %709 : vector<1x1xf32> to vector<1x32xf32>
    %711 = arith.mulf %708, %710 : vector<1x32xf32>
    %712 = tpu.transpose %356, [1, 0] : vector<8x32xf32> -> vector<32x8xf32>
    %cst_117 = arith.constant dense<0.000000e+00> : vector<8xf32>
    %713 = vector.multi_reduction <add>, %712, %cst_117 [0] : vector<32x8xf32> to vector<8xf32>
    %714 = vector.shape_cast %713 : vector<8xf32> to vector<1x8xf32>
    %c0_118 = arith.constant 0 : index
    %c0_119 = arith.constant 0 : index
    %715 = vector.load %arg15[%c0_118, %c0_119] : memref<1x40xf32, #tpu.memory_space<vmem>>, vector<1x8xf32>
    tpu.vector_store %arg15[%c0_118, %c0_119], %714 {strides = array<i32>} : memref<1x40xf32, #tpu.memory_space<vmem>>, vector<1x8xf32>,
    %c0_120 = arith.constant 0 : index
    %c8 = arith.constant 8 : index
    %716 = vector.load %arg15[%c0_120, %c8] : memref<1x40xf32, #tpu.memory_space<vmem>>, vector<1x32xf32>
    tpu.vector_store %arg15[%c0_120, %c8], %711 {strides = array<i32>} : memref<1x40xf32, #tpu.memory_space<vmem>>, vector<1x32xf32>,
    return
  }
}

</mosaic_0001>

<bundles_post_ra>
// kernel: mash_rnn_forward.1
= control target key start
LH: loop header
LB: loop body
LE: loop exit
PB: predicated region body
PF: predicated region fallthrough
CT: control target
= control target key end

     0   :  { %20 = vsyncpa [#allocation3], 0  ;;  %s9315_s0 = inlined_call_operand.hbm [shape: f32[8,8,32], index: 0, kind: input, shape index: {}]   ;;  %s9316_s1 = inlined_call_operand.hbm [shape: f32[32,96], index: 1, kind: input, shape index: {}]   ;;  %s9317_s2 = inlined_call_operand.hbm [shape: f32[32,96], index: 2, kind: input, shape index: {}]   ;;  %s9318_s3 = inlined_call_operand.vmem [shape: f32[1,96], index: 3, kind: input, shape index: {}]   ;;  %s9319_s4 = inlined_call_operand.hbm [shape: f32[1,96], index: 4, kind: input, shape index: {}]   ;;  %s9320_s5 = inlined_call_operand.hbm [shape: f32[32,32], index: 5, kind: input, shape index: {}]   ;;  %s9321_s6 = inlined_call_operand.hbm [shape: f32[1,32], index: 6, kind: input, shape index: {}]   ;;  %s9322_s7 = inlined_call_operand.vmem [shape: f32[1,32], index: 7, kind: input, shape index: {}]   ;;  %s9323_s8 = inlined_call_operand.hbm [shape: f32[32,96], index: 8, kind: input, shape index: {}]   ;;  %s9324_s9 = inlined_call_operand.hbm [shape: f32[32,96], index: 9, kind: input, shape index: {}]   ;;  %s9325_s10 = inlined_call_operand.vmem [shape: f32[1,96], index: 10, kind: input, shape index: {}]   ;;  %s9326_s11 = inlined_call_operand.vmem [shape: f32[1,96], index: 11, kind: input, shape index: {}]   ;;  %s9327_s12 = inlined_call_operand.hbm [shape: f32[32,32], index: 12, kind: input, shape index: {}]   ;;  %s9328_s13 = inlined_call_operand.vmem [shape: f32[1,32], index: 13, kind: input, shape index: {}]   ;;  %s9329_s14 = inlined_call_operand.vmem [shape: f32[1,32], index: 14, kind: input, shape index: {}]   ;;  %s9330_s15 = inlined_call_operand.hbm [shape: f32[1,40], index: 15, kind: output, shape index: {}]  }
   0x1   :  { %21 = vsyncpa [#allocation6], 0 }
   0x2   :  { %22 = vsyncpa [#allocation9], 0 }
   0x3   :  { %23 = vsyncpa [#allocation12], 0 }
   0x4   :  { %24 = vsyncpa [#allocation15], 0 }
   0x5   :  { %25 = vsyncpa [#allocation4], 0  ;;  %s43_s20 = sshll.u32 %s9316_s1, 4  ;;  %s6951_s21 = smov [#allocation5]   ;;  %s44_s20 = int_to_ptr.hbm [resolvable:$true] %s43_s20 }
   0x6   :  { %s45_s22 = sshll.u32 %s6951_s21, 4  ;;  %s72_s25 = sshll.u32 %s9319_s4, 4  ;;  %s46_s22 = int_to_ptr.vmem [resolvable:$true] %s45_s22  ;;  %s73_s25 = int_to_ptr.hbm [resolvable:$true] %s72_s25 }
   0x7   :  { %s6952_s26 = smov 128   ;;  %s6953_s27 = smov 8  }
   0x8   :  { %51 = dma.hbm_to_vmem [thread:$0]  %s44_s20, 512, %s46_s22, [#allocation6], %s6952_s26, %s6952_s26, %s6953_s27  }
   0x9   :  { %s6954_s28 = smov [#allocation8]   ;;  %s96_s1 = sshll.u32 %s9321_s6, 4  ;;  %s97_s1 = int_to_ptr.hbm [resolvable:$true] %s96_s1 }
   0xa   :  { %s74_s29 = sshll.u32 %s6954_s28, 4  ;;  %s121_s4 = sshll.u32 %s9324_s9, 4  ;;  %s75_s29 = int_to_ptr.vmem [resolvable:$true] %s74_s29  ;;  %s122_s4 = int_to_ptr.hbm [resolvable:$true] %s121_s4 }
   0xb   :  { %77 = dma.hbm_to_vmem [thread:$0]  %s73_s25, 16, %s75_s29, [#allocation9]  }
   0xc   :  { %s6955_s19 = smov [#allocation11]   ;;  %s6956_s20 = smov [#allocation14]  }
   0xd   :  { %s98_s21 = sshll.u32 %s6955_s19, 4  ;;  %s123_s22 = sshll.u32 %s6956_s20, 4  ;;  %s99_s21 = int_to_ptr.vmem [resolvable:$true] %s98_s21  ;;  %s124_s22 = int_to_ptr.vmem [resolvable:$true] %s123_s22 }
   0xe   :  { %101 = dma.hbm_to_vmem [thread:$0]  %s97_s1, 16, %s99_s21, [#allocation12]  }
   0xf   :  { %s30_s28 = sshll.u32 %s9315_s0, 4  ;;  %s56_s9 = sshll.u32 %s9317_s2, 4  ;;  %s31_s28 = int_to_ptr.hbm [resolvable:$true] %s30_s28  ;;  %s57_s9 = int_to_ptr.hbm [resolvable:$true] %s56_s9 }
  0x10   :  { %129 = dma.hbm_to_vmem [thread:$0]  %s122_s4, 512, %s124_s22, [#allocation15], %s6952_s26, %s6952_s26, %s6953_s27  }
  0x11   :  { %s6957_s29 = smov [#allocation2]   ;;  %s6958_s16 = smov [#allocation7]  }
  0x12   :  { %s32_s30 = sshll.u32 %s6957_s29, 4  ;;  %s58_s0 = sshll.u32 %s6958_s16, 4  ;;  %s33_s30 = int_to_ptr.vmem [resolvable:$true] %s32_s30  ;;  %s59_s0 = int_to_ptr.vmem [resolvable:$true] %s58_s0 }
  0x13   :  { %38 = dma.hbm_to_vmem [thread:$0]  %s31_s28, 1024, %s33_s30, [#allocation3], %s6952_s26, %s6952_s26, %s6953_s27  }
  0x14   :  { %s82_s18 = sshll.u32 %s9320_s5, 4  ;;  %s108_s19 = sshll.u32 %s9323_s8, 4  ;;  %s83_s18 = int_to_ptr.hbm [resolvable:$true] %s82_s18  ;;  %s109_s19 = int_to_ptr.hbm [resolvable:$true] %s108_s19 }
  0x15   :  { %64 = dma.hbm_to_vmem [thread:$0]  %s57_s9, 512, %s59_s0, [#allocation6], %s6952_s26, %s6952_s26, %s6953_s27  }
  0x16   :  { %s6959_s21 = smov [#allocation10]   ;;  %s6960_s22 = smov [#allocation13]  }
  0x17   :  { %s84_s20 = sshll.u32 %s6959_s21, 4  ;;  %s110_s5 = sshll.u32 %s6960_s22, 4  ;;  %s85_s20 = int_to_ptr.vmem [resolvable:$true] %s84_s20  ;;  %s111_s5 = int_to_ptr.vmem [resolvable:$true] %s110_s5 }
  0x18   :  { %90 = dma.hbm_to_vmem [thread:$0]  %s83_s18, 512, %s85_s20, [#allocation9], %s6952_s26, %s6952_s26, %s6953_s27  }
  0x19   :  { %s138_s28 = sshll.u32 %s9327_s12, 4  ;;  %s6961_s8 = smov [#allocation16]   ;;  %s139_s28 = int_to_ptr.hbm [resolvable:$true] %s138_s28 }
  0x1a   :  { %116 = dma.hbm_to_vmem [thread:$0]  %s109_s19, 512, %s111_s5, [#allocation12], %s6952_s26, %s6952_s26, %s6953_s27  }
  0x1b   :  { %s140_s6 = sshll.u32 %s6961_s8, 4  ;;  %s141_s6 = int_to_ptr.vmem [resolvable:$true] %s140_s6 }
  0x1c   :  { %146 = dma.hbm_to_vmem [thread:$0]  %s139_s28, 512, %s141_s6, [#allocation15], %s6952_s26, %s6952_s26, %s6953_s27  }
  0x1d   :  { %6939 = dma.done.wait [#allocation3], 1024  }
  0x1e   :  { %6940 = vsyncadd [#allocation3], 4294966272 }
  0x1f   :  { %6941 = dma.done.wait [#allocation6], 1024  }
  0x20   :  { %6942 = vsyncadd [#allocation6], 4294966272 }
  0x21   :  { %6943 = dma.done.wait [#allocation9], 528  }
  0x22   :  { %6944 = vsyncadd [#allocation9], 4294966768 }
  0x23   :  { %6945 = dma.done.wait [#allocation12], 528  }
  0x24   :  { %6946 = vsyncadd [#allocation12], 4294966768 }
  0x25   :  { %6947 = dma.done.wait [#allocation15], 1024  }
  0x26   :  { %6948 = vsyncadd [#allocation15], 4294966272  ;;  %v198_v0 = vld [vmem:[#allocation5 + $0x18] sm:$0xff]  ;;  %v197_v2 = vld [vmem:[#allocation5 + $0x10] sm:$0xff]  ;;  %vm9331_vm0 = vcmask 261120   ;;  %v6962_v9 = vmov 0.0  }
  0x27   :  { %v7095_v1 = vld [vmem:[#allocation7 + $0x18] sm:$0xff]  ;;  %251 = vmatpush.msra.mxu0 %v198_v0  ;;  %v7098_v3 = vld [vmem:[#allocation7 + $0x10] sm:$0xff]  ;;  %v196_v4 = vld [vmem:[#allocation5 + $0x8] sm:$0xff]  ;;  %s6963_s12 = smov 64   ;;  %s5792_s4 = sshll.u32 %s9330_s15, 4  ;;  %s5793_s4 = int_to_ptr.hbm [resolvable:$true] %s5792_s4 }
  0x28   :  { %298 = vmatpush.msra.mxu1 %v7095_v1  ;;  %v7100_v5 = vld [vmem:[#allocation7 + $0x8] sm:$0xff]  ;;  %687 = vmatpush.msra.mxu2 %v7095_v1  ;;  %v195_v6 = vld [vmem:[#allocation5] sm:$0xff]  ;;  %v189_v11 = vld [vmem:[#allocation2 + $0x10] sm:$0xff] }
  0x29   :  { %2691 = vmatpush.msra.mxu3 %v7095_v1  ;;  %252 = vmatpush.msra.mxu0 %v197_v2  ;;  %v7105_v7 = vld [vmem:[#allocation7] sm:$0xff]  ;;  %v188_v10 = vld [vmem:[#allocation2 + $0x8] sm:$0xff]  ;;  %v190_v12 = vld [vmem:[#allocation2 + $0x18] sm:$0xff] }
  0x2a   :  { %299 = vmatpush.msra.mxu1 %v7098_v3  ;;  %v187_v8 = vld [vmem:[#allocation2] sm:$0xff]  ;;  %688 = vmatpush.msra.mxu2 %v7098_v3  ;;  %v192_v14 = vld [vmem:[#allocation2 + $0x28] sm:$0xff]  ;;  %v193_v15 = vld [vmem:[#allocation2 + $0x30] sm:$0xff] }
  0x2b   :  { %2692 = vmatpush.msra.mxu3 %v7098_v3  ;;  %253 = vmatpush.msra.mxu0 %v196_v4  ;;  %v191_v13 = vld [vmem:[#allocation2 + $0x20] sm:$0xff]  ;;  %v194_v16 = vld [vmem:[#allocation2 + $0x38] sm:$0xff] }
  0x2c   :  { %300 = vmatpush.msra.mxu1 %v7100_v5  ;;  %689 = vmatpush.msra.mxu2 %v7100_v5  ;;  %v7140_v17 = vld [vmem:[#allocation8] ss:$0 sm:$0xff] }
  0x2d   :  { %2693 = vmatpush.msra.mxu3 %v7100_v5  ;;  %254 = vmatpush.msra.mxu0 %v195_v6  ;;  %v6203_v32 = vld [vmem:[%s9318_s3] ss:$0 sm:$0xff]  ;;  %s6964_s3 = smov 96  }
  0x2e   :  { %301 = vmatpush.msra.mxu1 %v7105_v7  ;;  %5806 = vmatmul.msk.f32.vlgmr.msra.gmra.mxu0 %vm9331_vm0, %v187_v8 }
  0x2f   :  { %302 = vmatmul.f32.vlgmr.msra.gmra.mxu1 %v6962_v9  ;;  %690 = vmatpush.msra.mxu2 %v7105_v7 }
  0x30   :  { %1140 = vmatpush.msrb.mxu0 %v7095_v1  ;;  %1625 = vmatpush.msrb.mxu1 %v7095_v1 }
  0x31   :  { %2142 = vmatpush.msrb.mxu2 %v7095_v1  ;;  %2694 = vmatpush.msra.mxu3 %v7105_v7 }
  0x32   :  { %1141 = vmatpush.msrb.mxu0 %v7098_v3  ;;  %1626 = vmatpush.msrb.mxu1 %v7098_v3 }
  0x33   :  { %2143 = vmatpush.msrb.mxu2 %v7098_v3 }
  0x34   :  { %1142 = vmatpush.msrb.mxu0 %v7100_v5  ;;  %1627 = vmatpush.msrb.mxu1 %v7100_v5 }
  0x35   :  { %2144 = vmatpush.msrb.mxu2 %v7100_v5 }
  0x36   :  { %1143 = vmatpush.msrb.mxu0 %v7105_v7  ;;  %1628 = vmatpush.msrb.mxu1 %v7105_v7 }
  0x37   :  { %5807 = vmatmul.msk.f32.gmra.mxu0 %vm9331_vm0, %v188_v10  ;;  %2145 = vmatpush.msrb.mxu2 %v7105_v7 }
  0x38   :  { %3272 = vmatpush.msra.mxu1 %v7095_v1 }
  0x3a   :  { %3273 = vmatpush.msra.mxu1 %v7098_v3 }
  0x3c   :  { %3274 = vmatpush.msra.mxu1 %v7100_v5 }
  0x3e   :  { %3275 = vmatpush.msra.mxu1 %v7105_v7 }
  0x3f   :  { %5808 = vmatmul.msk.f32.gmra.mxu0 %vm9331_vm0, %v189_v11 }
  0x47   :  { %5809 = vmatmul.msk.f32.gmra.mxu0 %vm9331_vm0, %v190_v12 }
  0x4f   :  { %5810 = vmatmul.msk.f32.gmra.mxu0 %vm9331_vm0, %v191_v13 }
  0x57   :  { %5811 = vmatmul.msk.f32.gmra.mxu0 %vm9331_vm0, %v192_v14 }
  0x5f   :  { %5812 = vmatmul.msk.f32.gmra.mxu0 %vm9331_vm0, %v193_v15 }
  0x67   :  { %5813 = vmatmul.msk.f32.gmra.mxu0 %vm9331_vm0, %v194_v16 }
  0xab   :  { %v256_v25 = vpop.f32.mrf.mxu0 }
  0xac   :  { %v303_v18 = vpop.f32.mrf.mxu1  ;;  %v7164_v33 = vadd.f32 %v6203_v32, %v256_v25 }
  0xad   :  { %v7143_v19 = vadd.f32 %v7140_v17, %v303_v18 }
  0xaf   :  { %482 = vrot.lane.b32.xlu1 %v7143_v19, %s6963_s12  ;;  %v310_v20 = vrot.slane %v7143_v19, 4  ;;  %v307_v21 = vrot.slane %v7143_v19, 1  ;;  %v309_v22 = vrot.slane %v7143_v19, 3  ;;  %v311_v23 = vrot.slane %v7143_v19, 5 }
  0xb0   :  { %v308_v24 = vrot.slane %v7143_v19, 2  ;;  %v313_v26 = vrot.slane %v7143_v19, 7  ;;  %v312_v27 = vrot.slane %v7143_v19, 6  ;;  %v322_v36 = vadd.f32 %v7143_v19, %v7164_v33 }
  0xb1   :  { %490 = vrot.lane.b32.xlu2 %v310_v20, %s6963_s12  ;;  %484 = vrot.lane.b32.xlu0 %v307_v21, %s6963_s12 }
  0xb2   :  { %v5814_v39 = vmul.f32 -1.442695, %v322_v36 }
  0xb4   :  { %v259_v28 = vpop.f32.mrf.mxu0  ;;  %6210 = vpow2.f32 %v5814_v39 }
  0xb5   :  { %v7166_v34 = vadd.f32 %v6203_v32, %v259_v28 }
  0xb7   :  { %488 = vrot.lane.b32.xlu1 %v309_v22, %s6963_s12  ;;  %v323_v37 = vadd.f32 %v307_v21, %v7166_v34 }
  0xb9   :  { %492 = vrot.lane.b32.xlu2 %v311_v23, %s6963_s12  ;;  %486 = vrot.lane.b32.xlu0 %v308_v24, %s6963_s12  ;;  %v5815_v41 = vmul.f32 -1.442695, %v323_v37 }
  0xba   :  { %v6211_v49 = vpop.eup %6210 }
  0xbb   :  { %6212 = vpow2.f32 %v5815_v41  ;;  %v7184_v54 = vadd.f32 1.0, %v6211_v49 }
  0xbc   :  { %v262_v29 = vpop.f32.mrf.mxu0 }
  0xbd   :  { %v7171_v38 = vadd.f32 %v6203_v32, %v262_v29  ;;  %vm367_vm3 = vweird.f32 %v7184_v54 }
  0xbf   :  { %496 = vrot.lane.b32.xlu1 %v313_v26, %s6963_s12  ;;  %v324_v43 = vadd.f32 %v308_v24, %v7171_v38 }
  0xc1   :  { %494 = vrot.lane.b32.xlu0 %v312_v27, %s6963_s12  ;;  %v5816_v47 = vmul.f32 -1.442695, %v324_v43  ;;  %v6213_v52 = vpop.eup %6212 }
  0xc2   :  { %v7187_v56 = vadd.f32 1.0, %v6213_v52 }
  0xc3   :  { %6214 = vpow2.f32 %v5816_v47 }
  0xc4   :  { %v265_v30 = vpop.f32.mrf.mxu0  ;;  %v388_v39 = vand.u32 2147483648, %v7187_v56  ;;  %vm382_vm5 = vweird.f32 %v7187_v56  ;;  %v386_v47 = vand.u32 2147483647, %v7187_v56 }
  0xc5   :  { %v7175_v42 = vadd.f32 %v6203_v32, %v265_v30 }
  0xc6   :  { %vm387_vm8 = vcmp.eq.f32.partialorder %v386_v47, 8.507059e+37 }
  0xc7   :  { %v325_v46 = vadd.f32 %v309_v22, %v7175_v42 }
  0xc9   :  { %v5817_v51 = vmul.f32 -1.442695, %v325_v46  ;;  %v6215_v59 = vpop.eup %6214  ;;  %v371_v46 = vand.u32 2147483647, %v7184_v54 }
  0xca   :  { %v7194_v2 = vadd.f32 1.0, %v6215_v59  ;;  %v389_v59 = vor.u32 1.1754944e-38, %v388_v39 }
  0xcb   :  { %vm372_vm7 = vcmp.eq.f32.partialorder %v371_v46, 8.507059e+37 }
  0xcc   :  { %v268_v31 = vpop.f32.mrf.mxu0  ;;  %vm397_vm14 = vweird.f32 %v7194_v2 }
  0xcd   :  { %v7180_v50 = vadd.f32 %v6203_v32, %v268_v31 }
  0xcf   :  { %v326_v55 = vadd.f32 %v310_v20, %v7180_v50 }
  0xd1   :  { %v5818_v60 = vmul.f32 -1.442695, %v326_v55 }
  0xd4   :  { %v271_v35 = vpop.f32.mrf.mxu0 }
  0xd5   :  { %v7173_v40 = vadd.f32 %v6203_v32, %v271_v35 }
  0xd7   :  { %v327_v44 = vadd.f32 %v311_v23, %v7173_v40 }
  0xd9   :  { %v5819_v48 = vmul.f32 -1.442695, %v327_v44 }
  0xdb   :  { %6216 = vpow2.f32 %v5819_v48 }
  0xdc   :  { %v274_v45 = vpop.f32.mrf.mxu0  ;;  %6218 = vpow2.f32 %v5817_v51 }
  0xdd   :  { %v7182_v53 = vadd.f32 %v6203_v32, %v274_v45  ;;  %6220 = vrcp.f32 %v7184_v54 }
  0xde   :  { %6222 = vrcp.f32 %v7187_v56 }
  0xdf   :  { %v328_v57 = vadd.f32 %v312_v27, %v7182_v53  ;;  %6224 = vpow2.f32 %v5818_v60 }
  0xe1   :  { %v6217_v61 = vpop.eup %6216  ;;  %v5820_v63 = vmul.f32 -1.442695, %v328_v57 }
  0xe2   :  { %v6219_v0 = vpop.eup %6218  ;;  %v7196_v4 = vadd.f32 1.0, %v6217_v61 }
  0xe3   :  { %v7198_v6 = vpop.eup %6220  ;;  %v7200_v8 = vadd.f32 1.0, %v6219_v0  ;;  %6226 = vpow2.f32 %v5820_v63 }
  0xe4   :  { %v277_v58 = vpop.f32.mrf.mxu0  ;;  %v6223_v11 = vpop.eup %6222  ;;  %6228 = vrcp.f32 %v7194_v2  ;;  %v363_v12 = vmul.f32 %v7198_v6, %v7184_v54  ;;  %vm368_vm1 = vweird.f32 %v7198_v6  ;;  %vm442_vm12 = vweird.f32 %v7196_v4 }
  0xe5   :  { %v7192_v62 = vadd.f32 %v6203_v32, %v277_v58  ;;  %6230 = vrcp.f32 %v7196_v4  ;;  %v378_v13 = vmul.f32 %v6223_v11, %v7187_v56  ;;  %v6225_v15 = vpop.eup %6224  ;;  %v373_v32 = vand.u32 2147483648, %v7184_v54  ;;  %vm7237_vm4 = vmor %vm367_vm3, %vm368_vm1 }
  0xe6   :  { %6232 = vrcp.f32 %v7200_v8  ;;  %v364_v18 = vsub.f32 1.0, %v363_v12  ;;  %v7211_v20 = vadd.f32 1.0, %v6225_v15  ;;  %vm383_vm2 = vweird.f32 %v6223_v11 }
  0xe7   :  { %v329_v10 = vadd.f32 %v313_v26, %v7192_v62  ;;  %v379_v21 = vsub.f32 1.0, %v378_v13  ;;  %v374_v51 = vor.u32 1.1754944e-38, %v373_v32  ;;  %vm384_vm6 = vmor %vm382_vm5, %vm383_vm2  ;;  %vm412_vm15 = vweird.f32 %v7200_v8 }
  0xe8   :  { %v365_v25 = vmul.f32 %v7198_v6, %v364_v18  ;;  %v446_v18 = vand.u32 2147483647, %v7196_v4 }
  0xe9   :  { %v5821_v14 = vmul.f32 -1.442695, %v329_v10  ;;  %v6227_v16 = vpop.eup %6226  ;;  %v380_v27 = vmul.f32 %v6223_v11, %v379_v21 }
  0xea   :  { %v7209_v19 = vpop.eup %6228  ;;  %v7215_v23 = vadd.f32 1.0, %v6227_v16  ;;  %v366_v31 = vadd.f32 %v7198_v6, %v365_v25  ;;  %vm447_vm3 = vcmp.eq.f32.partialorder %v446_v18, 8.507059e+37 }
  0xeb   :  { %6234 = vpow2.f32 %v5821_v14  ;;  %v7213_v22 = vpop.eup %6230  ;;  %v393_v28 = vmul.f32 %v7209_v19, %v7194_v2  ;;  %v381_v36 = vadd.f32 %v6223_v11, %v380_v27  ;;  %vm398_vm9 = vweird.f32 %v7209_v19 }
  0xec   :  { %v7217_v24 = vpop.eup %6232  ;;  %6236 = vrcp.f32 %v7211_v20  ;;  %v438_v26 = vmul.f32 %v7213_v22, %v7196_v4  ;;  %v370_v55 = vsel %vm7237_vm4, %v7198_v6, %v366_v31  ;;  %v403_v6 = vand.u32 2147483648, %v7194_v2  ;;  %vm7293_vm1 = vmor %vm397_vm14, %vm398_vm9 }
  0xed   :  { %v408_v29 = vmul.f32 %v7217_v24, %v7200_v8  ;;  %6238 = vrcp.f32 %v7215_v23  ;;  %v394_v37 = vsub.f32 1.0, %v393_v28  ;;  %v385_v57 = vsel %vm384_vm6, %v6223_v11, %v381_v36 }
  0xee   :  { %v439_v35 = vsub.f32 1.0, %v438_v26  ;;  %v7259_v63 = vsel %vm372_vm7, %v374_v51, %v370_v55  ;;  %v7261_v0 = vsel %vm387_vm8, %v389_v59, %v385_v57  ;;  %vm443_vm10 = vweird.f32 %v7213_v22 }
  0xef   :  { %v409_v41 = vsub.f32 1.0, %v408_v29  ;;  %v395_v58 = vmul.f32 %v7209_v19, %v394_v37  ;;  %v448_v14 = vand.u32 2147483648, %v7196_v4  ;;  %vm413_vm11 = vweird.f32 %v7217_v24  ;;  %vm7278_vm13 = vmor %vm442_vm12, %vm443_vm10 }
  0xf0   :  { %v440_v52 = vmul.f32 %v7213_v22, %v439_v35  ;;  %v418_v28 = vand.u32 2147483648, %v7200_v8  ;;  %v401_v29 = vand.u32 2147483647, %v7194_v2  ;;  %vm7300_vm2 = vmor %vm412_vm15, %vm413_vm11  ;;  %v404_v36 = vor.u32 1.1754944e-38, %v403_v6 }
  0xf1   :  { %v6235_v30 = vpop.eup %6234  ;;  %v410_v56 = vmul.f32 %v7217_v24, %v409_v41  ;;  %v396_v12 = vadd.f32 %v7209_v19, %v395_v58  ;;  %v449_v2 = vor.u32 1.1754944e-38, %v448_v14  ;;  %vm427_vm8 = vweird.f32 %v7211_v20 }
  0xf2   :  { %v7233_v43 = vadd.f32 1.0, %v6235_v30  ;;  %v7235_v44 = vpop.eup %6236  ;;  %v441_v10 = vadd.f32 %v7213_v22, %v440_v52  ;;  %v416_v30 = vand.u32 2147483647, %v7200_v8  ;;  %v419_v47 = vor.u32 1.1754944e-38, %v418_v28 }
  0xf3   :  { %v7244_v48 = vpop.eup %6238  ;;  %v423_v54 = vmul.f32 %v7235_v44, %v7211_v20  ;;  %v411_v16 = vadd.f32 %v7217_v24, %v410_v56  ;;  %v400_v8 = vsel %vm7293_vm1, %v7209_v19, %v396_v12  ;;  %vm402_vm4 = vcmp.eq.f32.partialorder %v401_v29, 8.507059e+37 }
  0xf4   :  { %6240 = vrcp.f32 %v7233_v43  ;;  %v453_v60 = vmul.f32 %v7244_v48, %v7215_v23  ;;  %v445_v4 = vsel %vm7278_vm13, %v7213_v22, %v441_v10  ;;  %vm417_vm5 = vcmp.eq.f32.partialorder %v416_v30, 8.507059e+37 }
  0xf5   :  { %v424_v13 = vsub.f32 1.0, %v423_v54  ;;  %v415_v37 = vsel %vm7300_vm2, %v7217_v24, %v411_v16  ;;  %v7313_v45 = vsel %vm447_vm3, %v449_v2, %v445_v4  ;;  %v7316_v19 = vsel %vm402_vm4, %v404_v36, %v400_v8 }
  0xf6   :  { %v454_v25 = vsub.f32 1.0, %v453_v60  ;;  %vm428_vm6 = vweird.f32 %v7235_v44  ;;  %v7320_v24 = vsel %vm417_vm5, %v419_v47, %v415_v37  ;;  %vm458_vm7 = vweird.f32 %v7244_v48 }
  0xf7   :  { %v425_v32 = vmul.f32 %v7235_v44, %v424_v13  ;;  %v433_v56 = vand.u32 2147483648, %v7211_v20  ;;  %v463_v60 = vand.u32 2147483648, %v7215_v23  ;;  %vm429_vm9 = vmor %vm427_vm8, %vm428_vm6  ;;  %vm457_vm10 = vweird.f32 %v7215_v23 }
  0xf8   :  { %v455_v41 = vmul.f32 %v7244_v48, %v454_v25  ;;  %v461_v6 = vand.u32 2147483647, %v7215_v23  ;;  %vm459_vm11 = vmor %vm457_vm10, %vm458_vm7  ;;  %vm472_vm15 = vweird.f32 %v7233_v43  ;;  %vm651_vm3 = vcmask 1041409  }
  0xf9   :  { %v426_v52 = vadd.f32 %v7235_v44, %v425_v32  ;;  %v434_v13 = vor.u32 1.1754944e-38, %v433_v56  ;;  %v464_v14 = vor.u32 1.1754944e-38, %v463_v60  ;;  %vm654_vm4 = vcmask 1042434  }
  0xfa   :  { %v7276_v26 = vpop.eup %6240  ;;  %v456_v59 = vadd.f32 %v7244_v48, %v455_v41  ;;  %vm462_vm13 = vcmp.eq.f32.partialorder %v461_v6, 8.507059e+37  ;;  %v563_v6 = vsub.f32 1.0, %v7261_v0  ;;  %vm657_vm5 = vcmask 1043459  }
  0xfb   :  { %v468_v39 = vmul.f32 %v7276_v26, %v7233_v43  ;;  %v430_v10 = vsel %vm429_vm9, %v7235_v44, %v426_v52  ;;  %vm473_vm14 = vweird.f32 %v7276_v26  ;;  %vm660_vm6 = vcmask 1044484  }
  0xfc   :  { %v460_v12 = vsel %vm459_vm11, %v7244_v48, %v456_v59  ;;  %v478_v48 = vand.u32 2147483648, %v7233_v43  ;;  %vm474_vm1 = vmor %vm472_vm15, %vm473_vm14  ;;  %vm663_vm7 = vcmask 1045509   ;;  %vm666_vm8 = vcmask 1046534  }
  0xfd   :  { %v469_v54 = vsub.f32 1.0, %v468_v39  ;;  %v7342_v16 = vsel %vm462_vm13, %v464_v14, %v460_v12  ;;  %vm9332_vm9 = vcmask 1047559  }
  0xfe   :  { %v479_v27 = vor.u32 1.1754944e-38, %v478_v48 }
 0x10b   :  { %v7246_v49 = vpop.permute.xlu2 %490 }
 0x113   :  { %v493_v35 = vpop.permute.xlu2 %492 }
 0x114   :  { %v511_v51 = vmul.f32 %v493_v35, %v7313_v45 }
 0x121   :  { %v483_v61 = vpop.permute.xlu1 %482 }
 0x122   :  { %v506_v11 = vmul.f32 %v483_v61, %v7259_v63  ;;  %v431_v61 = vand.u32 2147483647, %v7211_v20 }
 0x123   :  { %v485_v15 = vpop.permute.xlu0 %484 }
 0x124   :  { %v507_v21 = vmul.f32 %v485_v15, %v7261_v0  ;;  %522 = vrot.lane.b32.xlu1 %v506_v11, %s6963_s12  ;;  %v470_v11 = vmul.f32 %v7276_v26, %v469_v54  ;;  %vm432_vm12 = vcmp.eq.f32.partialorder %v431_v61, 8.507059e+37 }
 0x125   :  { %v7340_v20 = vsel %vm432_vm12, %v434_v13, %v430_v10 }
 0x126   :  { %524 = vrot.lane.b32.xlu2 %v507_v21, %s6963_s12  ;;  %v510_v23 = vmul.f32 %v7246_v49, %v7340_v20  ;;  %v471_v18 = vadd.f32 %v7276_v26, %v470_v11  ;;  %v476_v21 = vand.u32 2147483647, %v7233_v43  ;;  %v564_v11 = vsub.f32 1.0, %v7316_v19 }
 0x128   :  { %v475_v25 = vsel %vm474_vm1, %v7276_v26, %v471_v18  ;;  %vm477_vm2 = vcmp.eq.f32.partialorder %v476_v21, 8.507059e+37  ;;  %v566_v18 = vsub.f32 1.0, %v7340_v20 }
 0x129   :  { %v489_v46 = vpop.permute.xlu1 %488  ;;  %v7355_v28 = vsel %vm477_vm2, %v479_v27, %v475_v25 }
 0x12a   :  { %v509_v57 = vmul.f32 %v489_v46, %v7320_v24 }
 0x12b   :  { %v487_v55 = vpop.permute.xlu0 %486 }
 0x12c   :  { %v508_v58 = vmul.f32 %v487_v55, %v7316_v19  ;;  %532 = vrot.lane.b32.xlu1 %v511_v51, %s6963_s12 }
 0x12e   :  { %526 = vrot.lane.b32.xlu0 %v508_v58, %s6963_s12  ;;  %528 = vrot.lane.b32.xlu2 %v509_v57, %s6963_s12 }
 0x131   :  { %v497_v49 = vpop.permute.xlu1 %496 }
 0x132   :  { %v513_v29 = vmul.f32 %v497_v49, %v7355_v28  ;;  %v562_v49 = vsub.f32 1.0, %v7259_v63 }
 0x133   :  { %v495_v15 = vpop.permute.xlu0 %494 }
 0x134   :  { %v512_v44 = vmul.f32 %v495_v15, %v7342_v16  ;;  %v565_v15 = vsub.f32 1.0, %v7320_v24 }
 0x136   :  { %530 = vrot.lane.b32.xlu0 %v510_v23, %s6963_s12  ;;  %534 = vrot.lane.b32.xlu2 %v512_v44, %s6963_s12  ;;  %v611_v23 = vmul.f32 0.0, %v7261_v0  ;;  %v612_v44 = vmul.f32 0.0, %v7316_v19 }
 0x13e   :  { %536 = vrot.lane.b32.xlu0 %v513_v29, %s6963_s12  ;;  %v613_v29 = vmul.f32 0.0, %v7320_v24 }
 0x180   :  { %v525_v4 = vpop.permute.xlu2 %524 }
 0x181   :  { %v547_v30 = vadd.f32 %v525_v4, %v7166_v34 }
 0x183   :  { %6242 = vtanh.f32 %v547_v30  ;;  %v614_v30 = vmul.f32 0.0, %v7340_v20  ;;  %v568_v20 = vsub.f32 1.0, %v7342_v16 }
 0x188   :  { %v529_v43 = vpop.permute.xlu2 %528 }
 0x189   :  { %v6243_v31 = vpop.eup %6242  ;;  %v549_v32 = vadd.f32 %v529_v43, %v7175_v42  ;;  %v610_v43 = vmul.f32 0.0, %v7259_v63  ;;  %v569_v63 = vsub.f32 1.0, %v7355_v28 }
 0x18a   :  { %580 = vrot.lane.b32.xlu1 %v6243_v31, %s6964_s3 }
 0x18b   :  { %6244 = vtanh.f32 %v549_v32 }
 0x190   :  { %v535_v26 = vpop.permute.xlu2 %534 }
 0x191   :  { %v6245_v35 = vpop.eup %6244  ;;  %v552_v2 = vadd.f32 %v535_v26, %v7182_v53 }
 0x192   :  { %584 = vrot.lane.b32.xlu1 %v6245_v35, %s6964_s3 }
 0x193   :  { %6246 = vtanh.f32 %v552_v2 }
 0x196   :  { %v523_v22 = vpop.permute.xlu1 %522 }
 0x197   :  { %v546_v8 = vadd.f32 %v523_v22, %v7164_v33 }
 0x199   :  { %v6247_v36 = vpop.eup %6246  ;;  %6248 = vtanh.f32 %v546_v8 }
 0x19a   :  { %590 = vrot.lane.b32.xlu1 %v6247_v36, %s6964_s3 }
 0x19e   :  { %v533_v37 = vpop.permute.xlu1 %532 }
 0x19f   :  { %v6249_v39 = vpop.eup %6248  ;;  %v551_v41 = vadd.f32 %v533_v37, %v7173_v40 }
 0x1a0   :  { %v527_v46 = vpop.permute.xlu0 %526  ;;  %578 = vrot.lane.b32.xlu0 %v6249_v39, %s6964_s3 }
 0x1a1   :  { %6250 = vtanh.f32 %v551_v41  ;;  %v548_v47 = vadd.f32 %v527_v46, %v7171_v38 }
 0x1a3   :  { %6252 = vtanh.f32 %v548_v47 }
 0x1a7   :  { %v6251_v51 = vpop.eup %6250 }
 0x1a8   :  { %v531_v52 = vpop.permute.xlu0 %530  ;;  %588 = vrot.lane.b32.xlu0 %v6251_v51, %s6964_s3 }
 0x1a9   :  { %v6253_v55 = vpop.eup %6252  ;;  %v550_v57 = vadd.f32 %v531_v52, %v7180_v50  ;;  %v567_v52 = vsub.f32 1.0, %v7313_v45 }
 0x1aa   :  { %582 = vrot.lane.b32.xlu2 %v6253_v55, %s6964_s3  ;;  %v616_v55 = vmul.f32 0.0, %v7342_v16 }
 0x1ab   :  { %6254 = vtanh.f32 %v550_v57 }
 0x1b0   :  { %v537_v58 = vpop.permute.xlu0 %536 }
 0x1b1   :  { %v6255_v54 = vpop.eup %6254  ;;  %v553_v59 = vadd.f32 %v537_v58, %v7192_v62  ;;  %v615_v58 = vmul.f32 0.0, %v7313_v45 }
 0x1b2   :  { %586 = vrot.lane.b32.xlu2 %v6255_v54, %s6964_s3 }
 0x1b3   :  { %6256 = vtanh.f32 %v553_v59 }
 0x1b9   :  { %v6257_v56 = vpop.eup %6256 }
 0x1ba   :  { %592 = vrot.lane.b32.xlu2 %v6257_v56, %s6964_s3 }
 0x1fc   :  { %v581_v60 = vpop.permute.xlu1 %580 }
 0x1fd   :  { %v603_v13 = vmul.f32 %v581_v60, %v563_v6  ;;  %v617_v60 = vmul.f32 0.0, %v7355_v28 }
 0x1ff   :  { %v7381_v21 = vadd.f32 %v611_v23, %v603_v13 }
 0x201   :  { %v650_v19 = vrot.slane %v7381_v21, 7  ;;  %v6094_v32 = vrot.slane %v7381_v21, 55 }
 0x204   :  { %v583_v61 = vpop.permute.xlu2 %582  ;;  %v585_v10 = vpop.permute.xlu1 %584 }
 0x205   :  { %v604_v14 = vmul.f32 %v583_v61, %v564_v11  ;;  %v605_v48 = vmul.f32 %v585_v10, %v565_v15 }
 0x207   :  { %v7384_v27 = vadd.f32 %v612_v44, %v604_v14  ;;  %v7389_v31 = vadd.f32 %v613_v29, %v605_v48 }
 0x209   :  { %v6095_v24 = vrot.slane %v7384_v27, 54  ;;  %v653_v37 = vrot.slane %v7384_v27, 6  ;;  %v6096_v39 = vrot.slane %v7389_v31, 53  ;;  %v656_v56 = vrot.slane %v7389_v31, 5 }
 0x20c   :  { %v587_v12 = vpop.permute.xlu2 %586  ;;  %v591_v35 = vpop.permute.xlu1 %590 }
 0x20d   :  { %v606_v25 = vmul.f32 %v587_v12, %v566_v18  ;;  %v608_v41 = vmul.f32 %v591_v35, %v568_v20 }
 0x20f   :  { %v7393_v26 = vadd.f32 %v614_v30, %v606_v25  ;;  %v7418_v10 = vadd.f32 %v616_v55, %v608_v41 }
 0x211   :  { %v6097_v47 = vrot.slane %v7393_v26, 52  ;;  %v659_v45 = vrot.slane %v7393_v26, 4  ;;  %v665_v28 = vrot.slane %v7418_v10, 2  ;;  %v6099_v15 = vrot.slane %v7418_v10, 50 }
 0x212   :  { %v579_v4 = vpop.permute.xlu0 %578 }
 0x213   :  { %v602_v0 = vmul.f32 %v579_v4, %v562_v49 }
 0x214   :  { %v593_v22 = vpop.permute.xlu2 %592 }
 0x215   :  { %v7395_v2 = vadd.f32 %v610_v43, %v602_v0  ;;  %v609_v51 = vmul.f32 %v593_v22, %v569_v63 }
 0x217   :  { %v652_v8 = vsel %vm651_vm3, %v650_v19, %v7395_v2  ;;  %v4553_v36 = vsel %vm651_vm3, %v6094_v32, %v7395_v2  ;;  %v7420_v11 = vadd.f32 %v617_v60, %v609_v51 }
 0x218   :  { %v4555_v46 = vsel %vm654_vm4, %v6095_v24, %v4553_v36  ;;  %v655_v57 = vsel %vm654_vm4, %v653_v37, %v652_v8 }
 0x219   :  { %v4557_v59 = vsel %vm657_vm5, %v6096_v39, %v4555_v46  ;;  %v658_v16 = vsel %vm657_vm5, %v656_v56, %v655_v57  ;;  %v668_v44 = vrot.slane %v7420_v11, 1  ;;  %v6052_v48 = vrot.slane %v7420_v11, 49 }
 0x21a   :  { %v589_v54 = vpop.permute.xlu0 %588  ;;  %v4559_v6 = vsel %vm660_vm6, %v6097_v47, %v4557_v59  ;;  %v661_v23 = vsel %vm660_vm6, %v659_v45, %v658_v16 }
 0x21b   :  { %v607_v61 = vmul.f32 %v589_v54, %v567_v52 }
 0x21d   :  { %v7422_v12 = vadd.f32 %v615_v58, %v607_v61 }
 0x21f   :  { %v662_v13 = vrot.slane %v7422_v12, 3  ;;  %v6098_v14 = vrot.slane %v7422_v12, 51 }
 0x221   :  { %v664_v18 = vsel %vm663_vm7, %v662_v13, %v661_v23  ;;  %v4561_v25 = vsel %vm663_vm7, %v6098_v14, %v4559_v6 }
 0x222   :  { %v667_v49 = vsel %vm666_vm8, %v665_v28, %v664_v18  ;;  %v4563_v29 = vsel %vm666_vm8, %v6099_v15, %v4561_v25 }
 0x223   :  { %v670_v4 = vsel %vm9332_vm9, %v668_v44, %v667_v49  ;;  %v7439_v30 = vsel %vm9332_vm9, %v6052_v48, %v4563_v29 }
 0x224   :  { %671 = vrot.lane.b32.xlu0 %v670_v4, %s6964_s3 }
 0x296   :  { %v672_v43 = vpop.permute.xlu0 %671 }
 0x297   :  { %5822 = vmatmul.msk.f32.vlgmr.msra.gmra.mxu2 %vm9331_vm0, %v672_v43 }
 0x298   :  { %3885 = vmatpush.msra.mxu2 %v7095_v1 }
 0x29a   :  { %3886 = vmatpush.msra.mxu2 %v7098_v3 }
 0x29c   :  { %3887 = vmatpush.msra.mxu2 %v7100_v5 }
 0x29e   :  { %3888 = vmatpush.msra.mxu2 %v7105_v7 }
 0x31a   :  { %v692_v0 = vpop.f32.mrf.mxu2 }
 0x31b   :  { %v7448_v32 = vadd.f32 %v7140_v17, %v692_v0 }
 0x31d   :  { %873 = vrot.lane.b32.xlu0 %v7448_v32, %s6963_s12  ;;  %v697_v35 = vrot.slane %v7448_v32, 1  ;;  %v696_v24 = vrot.slane %v7448_v32, 7  ;;  %v699_v20 = vrot.slane %v7448_v32, 3  ;;  %v702_v1 = vrot.slane %v7448_v32, 6 }
 0x31e   :  { %v700_v22 = vrot.slane %v7448_v32, 4  ;;  %v698_v36 = vrot.slane %v7448_v32, 2  ;;  %v701_v47 = vrot.slane %v7448_v32, 5 }
 0x31f   :  { %875 = vrot.lane.b32.xlu2 %v697_v35, %s6963_s12  ;;  %v713_v3 = vadd.f32 %v697_v35, %v7171_v38  ;;  %871 = vrot.lane.b32.xlu1 %v696_v24, %s6963_s12  ;;  %v715_v5 = vadd.f32 %v699_v20, %v7180_v50  ;;  %v718_v7 = vadd.f32 %v702_v1, %v7192_v62 }
 0x321   :  { %v5825_v17 = vmul.f32 -1.442695, %v713_v3  ;;  %v5827_v63 = vmul.f32 -1.442695, %v715_v5  ;;  %v5830_v8 = vmul.f32 -1.442695, %v718_v7 }
 0x322   :  { %v1000_v5 = vrot.slane %v7384_v27, 7  ;;  %v712_v27 = vadd.f32 %v7448_v32, %v7166_v34 }
 0x323   :  { %6258 = vpow2.f32 %v5825_v17 }
 0x324   :  { %6260 = vpow2.f32 %v5827_v63 }
 0x325   :  { %881 = vrot.lane.b32.xlu0 %v700_v22, %s6963_s12  ;;  %6262 = vpow2.f32 %v5830_v8  ;;  %v1002_v8 = vrot.slane %v7393_v26, 7  ;;  %v716_v26 = vadd.f32 %v700_v22, %v7173_v40 }
 0x327   :  { %879 = vrot.lane.b32.xlu2 %v699_v20, %s6963_s12  ;;  %877 = vrot.lane.b32.xlu1 %v698_v36, %s6963_s12 }
 0x329   :  { %v6259_v37 = vpop.eup %6258 }
 0x32a   :  { %v745_v39 = vadd.f32 1.0, %v6259_v37  ;;  %v6261_v41 = vpop.eup %6260  ;;  %v1005_v37 = vrot.slane %v7420_v11, 7  ;;  %v714_v11 = vadd.f32 %v698_v36, %v7175_v42 }
 0x32b   :  { %v747_v46 = vadd.f32 1.0, %v6261_v41  ;;  %v6263_v51 = vpop.eup %6262 }
 0x32c   :  { %6264 = vrcp.f32 %v745_v39  ;;  %v750_v52 = vadd.f32 1.0, %v6263_v51  ;;  %v792_v28 = vand.u32 2147483648, %v745_v39  ;;  %vm786_vm11 = vweird.f32 %v745_v39 }
 0x32d   :  { %6266 = vrcp.f32 %v747_v46  ;;  %v790_v15 = vand.u32 2147483647, %v745_v39  ;;  %v822_v44 = vand.u32 2147483648, %v747_v46  ;;  %vm816_vm15 = vweird.f32 %v747_v46 }
 0x32e   :  { %6268 = vrcp.f32 %v750_v52  ;;  %v820_v49 = vand.u32 2147483647, %v747_v46  ;;  %v867_v29 = vand.u32 2147483648, %v750_v52  ;;  %v793_v4 = vor.u32 1.1754944e-38, %v792_v28 }
 0x32f   :  { %885 = vrot.lane.b32.xlu2 %v702_v1, %s6963_s12  ;;  %883 = vrot.lane.b32.xlu1 %v701_v47, %s6963_s12  ;;  %vm861_vm2 = vweird.f32 %v750_v52  ;;  %v865_v43 = vand.u32 2147483647, %v750_v52  ;;  %vm791_vm0 = vcmp.eq.f32.partialorder %v790_v15, 8.507059e+37  ;;  %v823_v20 = vor.u32 1.1754944e-38, %v822_v44 }
 0x330   :  { %v868_v3 = vor.u32 1.1754944e-38, %v867_v29  ;;  %v5824_v51 = vmul.f32 -1.442695, %v712_v27 }
 0x332   :  { %v6265_v55 = vpop.eup %6264  ;;  %6270 = vpow2.f32 %v5824_v51 }
 0x333   :  { %v782_v57 = vmul.f32 %v6265_v55, %v745_v39  ;;  %v6267_v58 = vpop.eup %6266  ;;  %vm787_vm10 = vweird.f32 %v6265_v55 }
 0x334   :  { %v812_v59 = vmul.f32 %v6267_v58, %v747_v46  ;;  %v6269_v56 = vpop.eup %6268  ;;  %vm817_vm12 = vweird.f32 %v6267_v58  ;;  %vm7477_vm13 = vmor %vm786_vm11, %vm787_vm10  ;;  %vm821_vm10 = vcmp.eq.f32.partialorder %v820_v49, 8.507059e+37  ;;  %vm866_vm11 = vcmp.eq.f32.partialorder %v865_v43, 8.507059e+37 }
 0x335   :  { %v783_v54 = vsub.f32 1.0, %v782_v57  ;;  %v857_v61 = vmul.f32 %v6269_v56, %v750_v52  ;;  %vm862_vm14 = vweird.f32 %v6269_v56  ;;  %vm818_vm1 = vmor %vm816_vm15, %vm817_vm12  ;;  %v711_v46 = vadd.f32 %v696_v24, %v7164_v33 }
 0x336   :  { %v813_v60 = vsub.f32 1.0, %v812_v59  ;;  %vm863_vm9 = vmor %vm861_vm2, %vm862_vm14  ;;  %v717_v24 = vadd.f32 %v701_v47, %v7182_v53 }
 0x337   :  { %v784_v6 = vmul.f32 %v6265_v55, %v783_v54  ;;  %v858_v16 = vsub.f32 1.0, %v857_v61  ;;  %v5823_v52 = vmul.f32 -1.442695, %v711_v46 }
 0x338   :  { %v814_v45 = vmul.f32 %v6267_v58, %v813_v60  ;;  %v6271_v57 = vpop.eup %6270  ;;  %v5829_v60 = vmul.f32 -1.442695, %v717_v24 }
 0x339   :  { %v859_v13 = vmul.f32 %v6269_v56, %v858_v16  ;;  %v785_v14 = vadd.f32 %v6265_v55, %v784_v6  ;;  %6272 = vpow2.f32 %v5823_v52  ;;  %v744_v59 = vadd.f32 1.0, %v6271_v57 }
 0x33a   :  { %v815_v23 = vadd.f32 %v6267_v58, %v814_v45 }
 0x33b   :  { %v860_v48 = vadd.f32 %v6269_v56, %v859_v13  ;;  %v789_v25 = vsel %vm7477_vm13, %v6265_v55, %v785_v14  ;;  %v5828_v55 = vmul.f32 -1.442695, %v716_v26 }
 0x33c   :  { %v819_v0 = vsel %vm818_vm1, %v6267_v58, %v815_v23  ;;  %v7483_v35 = vsel %vm791_vm0, %v793_v4, %v789_v25  ;;  %v5826_v58 = vmul.f32 -1.442695, %v714_v11 }
 0x33d   :  { %v864_v1 = vsel %vm863_vm9, %v6269_v56, %v860_v48  ;;  %v7486_v7 = vsel %vm821_vm10, %v823_v20, %v819_v0  ;;  %v7491_v63 = vmul.f32 %v1000_v5, %v7483_v35  ;;  %6274 = vpow2.f32 %v5828_v55 }
 0x33e   :  { %v7488_v17 = vsel %vm866_vm11, %v868_v3, %v864_v1  ;;  %v7496_v39 = vmul.f32 %v1002_v8, %v7486_v7  ;;  %6276 = vpow2.f32 %v5826_v58  ;;  %vm771_vm9 = vweird.f32 %v744_v59 }
 0x33f   :  { %v7499_v41 = vmul.f32 %v1005_v37, %v7488_v17  ;;  %v6273_v54 = vpop.eup %6272  ;;  %6278 = vrcp.f32 %v744_v59  ;;  %v775_v5 = vand.u32 2147483647, %v744_v59  ;;  %v777_v8 = vand.u32 2147483648, %v744_v59 }
 0x340   :  { %v743_v56 = vadd.f32 1.0, %v6273_v54 }
 0x341   :  { %v778_v57 = vor.u32 1.1754944e-38, %v777_v8  ;;  %vm776_vm1 = vcmp.eq.f32.partialorder %v775_v5, 8.507059e+37 }
 0x342   :  { %6280 = vrcp.f32 %v743_v56  ;;  %v762_v52 = vand.u32 2147483648, %v743_v56  ;;  %vm756_vm14 = vweird.f32 %v743_v56  ;;  %v760_v11 = vand.u32 2147483647, %v743_v56 }
 0x343   :  { %v6275_v22 = vpop.eup %6274  ;;  %6282 = vpow2.f32 %v5829_v60 }
 0x344   :  { %v6277_v61 = vpop.eup %6276  ;;  %v7515_v6 = vadd.f32 1.0, %v6275_v22  ;;  %v763_v60 = vor.u32 1.1754944e-38, %v762_v52  ;;  %vm761_vm2 = vcmp.eq.f32.partialorder %v760_v11, 8.507059e+37 }
 0x345   :  { %v6279_v36 = vpop.eup %6278  ;;  %v7517_v16 = vadd.f32 1.0, %v6277_v61 }
 0x346   :  { %6284 = vrcp.f32 %v7515_v6  ;;  %v767_v32 = vmul.f32 %v6279_v36, %v744_v59  ;;  %vm772_vm0 = vweird.f32 %v6279_v36  ;;  %vm831_vm11 = vweird.f32 %v7515_v6 }
 0x347   :  { %6286 = vrcp.f32 %v7517_v16  ;;  %vm773_vm13 = vmor %vm771_vm9, %vm772_vm0 }
 0x348   :  { %v6281_v14 = vpop.eup %6280  ;;  %v768_v15 = vsub.f32 1.0, %v767_v32 }
 0x349   :  { %v6283_v47 = vpop.eup %6282  ;;  %v752_v28 = vmul.f32 %v6281_v14, %v743_v56  ;;  %vm757_vm12 = vweird.f32 %v6281_v14 }
 0x34a   :  { %v7525_v18 = vadd.f32 1.0, %v6283_v47  ;;  %v769_v29 = vmul.f32 %v6279_v36, %v768_v15  ;;  %vm758_vm15 = vmor %vm756_vm14, %vm757_vm12  ;;  %v807_v15 = vand.u32 2147483648, %v7517_v16  ;;  %vm801_vm12 = vweird.f32 %v7517_v16 }
 0x34b   :  { %v753_v25 = vsub.f32 1.0, %v752_v28 }
 0x34c   :  { %v7523_v23 = vpop.eup %6284  ;;  %6288 = vrcp.f32 %v7525_v18  ;;  %v770_v20 = vadd.f32 %v6279_v36, %v769_v29  ;;  %v850_v5 = vand.u32 2147483647, %v7525_v18 }
 0x34d   :  { %v7528_v49 = vpop.eup %6286  ;;  %v827_v4 = vmul.f32 %v7523_v23, %v7515_v6  ;;  %v754_v43 = vmul.f32 %v6281_v14, %v753_v25  ;;  %vm832_vm10 = vweird.f32 %v7523_v23 }
 0x34e   :  { %v797_v0 = vmul.f32 %v7528_v49, %v7517_v16  ;;  %v774_v26 = vsel %vm773_vm13, %v6279_v36, %v770_v20  ;;  %vm802_vm0 = vweird.f32 %v7528_v49  ;;  %vm833_vm9 = vmor %vm831_vm11, %vm832_vm10  ;;  %vm851_vm11 = vcmp.eq.f32.partialorder %v850_v5, 8.507059e+37 }
 0x34f   :  { %v828_v1 = vsub.f32 1.0, %v827_v4  ;;  %v755_v27 = vadd.f32 %v6281_v14, %v754_v43  ;;  %v7544_v22 = vsel %vm776_vm1, %v778_v57, %v774_v26  ;;  %vm803_vm13 = vmor %vm801_vm12, %vm802_vm0  ;;  %vm9343_vm0 = vcmask 1047559  }
 0x350   :  { %v798_v46 = vsub.f32 1.0, %v797_v0  ;;  %v808_v0 = vor.u32 1.1754944e-38, %v807_v15  ;;  %vm9345_vm12 = vcmask 261120  }
 0x351   :  { %v829_v55 = vmul.f32 %v7523_v23, %v828_v1  ;;  %v759_v58 = vsel %vm758_vm15, %v6281_v14, %v755_v27  ;;  %v837_v14 = vand.u32 2147483648, %v7515_v6 }
 0x352   :  { %v7537_v51 = vpop.eup %6288  ;;  %v799_v54 = vmul.f32 %v7528_v49, %v798_v46 }
 0x353   :  { %v842_v59 = vmul.f32 %v7537_v51, %v7525_v18  ;;  %v830_v56 = vadd.f32 %v7523_v23, %v829_v55  ;;  %vm847_vm1 = vweird.f32 %v7537_v51 }
 0x354   :  { %v800_v47 = vadd.f32 %v7528_v49, %v799_v54 }
 0x355   :  { %v843_v28 = vsub.f32 1.0, %v842_v59 }
 0x356   :  { %v804_v25 = vsel %vm803_vm13, %v7528_v49, %v800_v47  ;;  %v852_v49 = vand.u32 2147483648, %v7525_v18 }
 0x357   :  { %v844_v29 = vmul.f32 %v7537_v51, %v843_v28 }
 0x379   :  { %v876_v45 = vpop.permute.xlu2 %875 }
 0x37a   :  { %v897_v13 = vmul.f32 %v876_v45, %v7483_v35  ;;  %v7549_v45 = vsel %vm761_vm2, %v763_v60, %v759_v58  ;;  %vm846_vm2 = vweird.f32 %v7525_v18 }
 0x37b   :  { %vm848_vm10 = vmor %vm846_vm2, %vm847_vm1 }
 0x37c   :  { %915 = vrot.lane.b32.xlu1 %v897_v13, %s6963_s12  ;;  %v835_v13 = vand.u32 2147483647, %v7515_v6  ;;  %v805_v6 = vand.u32 2147483647, %v7517_v16  ;;  %v845_v16 = vadd.f32 %v7537_v51, %v844_v29 }
 0x37e   :  { %vm836_vm14 = vcmp.eq.f32.partialorder %v835_v13, 8.507059e+37  ;;  %vm806_vm15 = vcmp.eq.f32.partialorder %v805_v6, 8.507059e+37  ;;  %v849_v8 = vsel %vm848_vm10, %v7537_v51, %v845_v16 }
 0x37f   :  { %v7568_v1 = vsel %vm806_vm15, %v808_v0, %v804_v25  ;;  %v951_v0 = vsub.f32 1.0, %v7549_v45 }
 0x380   :  { %v954_v21 = vsub.f32 1.0, %v7568_v1 }
 0x381   :  { %v880_v44 = vpop.permute.xlu2 %879 }
 0x382   :  { %v899_v48 = vmul.f32 %v880_v44, %v7486_v7  ;;  %v834_v44 = vsel %vm833_vm9, %v7523_v23, %v830_v56  ;;  %vm9344_vm9 = vmmov %vm9343_vm0 }
 0x384   :  { %919 = vrot.lane.b32.xlu1 %v899_v48, %s6963_s12  ;;  %v838_v48 = vor.u32 1.1754944e-38, %v837_v14 }
 0x386   :  { %v7565_v43 = vsel %vm836_vm14, %v838_v48, %v834_v44 }
 0x389   :  { %v886_v3 = vpop.permute.xlu2 %885 }
 0x38a   :  { %v902_v37 = vmul.f32 %v886_v3, %v7488_v17 }
 0x38c   :  { %925 = vrot.lane.b32.xlu1 %v902_v37, %s6963_s12  ;;  %v853_v37 = vor.u32 1.1754944e-38, %v852_v49 }
 0x38e   :  { %v7579_v27 = vsel %vm851_vm11, %v853_v37, %v849_v8 }
 0x38f   :  { %v874_v24 = vpop.permute.xlu0 %873 }
 0x390   :  { %v896_v61 = vmul.f32 %v874_v24, %v7544_v22 }
 0x391   :  { %v872_v36 = vpop.permute.xlu1 %871 }
 0x392   :  { %v895_v32 = vmul.f32 %v872_v36, %v7549_v45  ;;  %913 = vrot.lane.b32.xlu2 %v896_v61, %s6963_s12 }
 0x394   :  { %911 = vrot.lane.b32.xlu0 %v895_v32, %s6963_s12 }
 0x397   :  { %v882_v4 = vpop.permute.xlu0 %881 }
 0x398   :  { %v900_v20 = vmul.f32 %v882_v4, %v7565_v43  ;;  %v952_v4 = vsub.f32 1.0, %v7544_v22 }
 0x399   :  { %v878_v23 = vpop.permute.xlu1 %877 }
 0x39a   :  { %v898_v3 = vmul.f32 %v878_v23, %v7568_v1  ;;  %921 = vrot.lane.b32.xlu2 %v900_v20, %s6963_s12  ;;  %v999_v20 = vrot.slane %v7395_v2, 7  ;;  %v953_v23 = vsub.f32 1.0, %v7483_v35 }
 0x39c   :  { %917 = vrot.lane.b32.xlu0 %v898_v3, %s6963_s12  ;;  %v1014_v5 = vmul.f32 %v999_v20, %v7549_v45  ;;  %v1003_v45 = vrot.slane %v7422_v12, 7 }
 0x3a1   :  { %v884_v46 = vpop.permute.xlu1 %883 }
 0x3a2   :  { %v901_v52 = vmul.f32 %v884_v46, %v7579_v27  ;;  %v1015_v46 = vmul.f32 %v7544_v22, %v650_v19  ;;  %v1001_v19 = vrot.slane %v7389_v31, 7 }
 0x3a4   :  { %923 = vrot.lane.b32.xlu0 %v901_v52, %s6963_s12  ;;  %v1017_v12 = vmul.f32 %v1001_v19, %v7568_v1 }
 0x3ec   :  { %v914_v26 = vpop.permute.xlu2 %913 }
 0x3ed   :  { %v936_v11 = vadd.f32 %v914_v26, %v7166_v34 }
 0x3ee   :  { %v916_v55 = vpop.permute.xlu1 %915 }
 0x3ef   :  { %6290 = vtanh.f32 %v936_v11  ;;  %v937_v57 = vadd.f32 %v916_v55, %v7171_v38  ;;  %v956_v55 = vsub.f32 1.0, %v7565_v43 }
 0x3f1   :  { %6292 = vtanh.f32 %v937_v57 }
 0x3f4   :  { %v922_v18 = vpop.permute.xlu2 %921 }
 0x3f5   :  { %v6291_v58 = vpop.eup %6290  ;;  %v940_v51 = vadd.f32 %v922_v18, %v7173_v40 }
 0x3f6   :  { %969 = vrot.lane.b32.xlu1 %v6291_v58, %s6964_s3  ;;  %v920_v54 = vpop.permute.xlu1 %919  ;;  %v955_v58 = vsub.f32 1.0, %v7486_v7 }
 0x3f7   :  { %v6293_v59 = vpop.eup %6292  ;;  %6294 = vtanh.f32 %v940_v51  ;;  %v939_v24 = vadd.f32 %v920_v54, %v7180_v50 }
 0x3f8   :  { %971 = vrot.lane.b32.xlu0 %v6293_v59, %s6964_s3 }
 0x3f9   :  { %6296 = vtanh.f32 %v939_v24  ;;  %v1019_v24 = vmul.f32 %v1003_v45, %v7565_v43 }
 0x3fd   :  { %v6295_v60 = vpop.eup %6294 }
 0x3fe   :  { %977 = vrot.lane.b32.xlu1 %v6295_v60, %s6964_s3  ;;  %v926_v61 = vpop.permute.xlu1 %925 }
 0x3ff   :  { %v6297_v56 = vpop.eup %6296  ;;  %v942_v36 = vadd.f32 %v926_v61, %v7192_v62 }
 0x400   :  { %975 = vrot.lane.b32.xlu0 %v6297_v56, %s6964_s3 }
 0x401   :  { %6298 = vtanh.f32 %v942_v36 }
 0x406   :  { %v912_v13 = vpop.permute.xlu0 %911 }
 0x407   :  { %v6299_v14 = vpop.eup %6298  ;;  %v935_v32 = vadd.f32 %v912_v13, %v7164_v33 }
 0x408   :  { %981 = vrot.lane.b32.xlu0 %v6299_v14, %s6964_s3 }
 0x409   :  { %6300 = vtanh.f32 %v935_v32 }
 0x40e   :  { %v918_v47 = vpop.permute.xlu0 %917 }
 0x40f   :  { %v6301_v28 = vpop.eup %6300  ;;  %v938_v15 = vadd.f32 %v918_v47, %v7175_v42 }
 0x410   :  { %967 = vrot.lane.b32.xlu2 %v6301_v28, %s6964_s3  ;;  %v957_v28 = vsub.f32 1.0, %v7579_v27 }
 0x411   :  { %6302 = vtanh.f32 %v938_v15  ;;  %v1004_v15 = vrot.slane %v7418_v10, 7 }
 0x416   :  { %v924_v44 = vpop.permute.xlu0 %923 }
 0x417   :  { %v6303_v6 = vpop.eup %6302  ;;  %v941_v48 = vadd.f32 %v924_v44, %v7182_v53  ;;  %v958_v44 = vsub.f32 1.0, %v7488_v17 }
 0x418   :  { %973 = vrot.lane.b32.xlu2 %v6303_v6, %s6964_s3 }
 0x419   :  { %6304 = vtanh.f32 %v941_v48 }
 0x41f   :  { %v6305_v25 = vpop.eup %6304 }
 0x420   :  { %979 = vrot.lane.b32.xlu2 %v6305_v25, %s6964_s3 }
 0x468   :  { %v970_v29 = vpop.permute.xlu1 %969 }
 0x469   :  { %v992_v49 = vmul.f32 %v970_v29, %v952_v4  ;;  %v1020_v29 = vmul.f32 %v1004_v15, %v7579_v27 }
 0x46a   :  { %v968_v3 = vpop.permute.xlu2 %967  ;;  %v972_v16 = vpop.permute.xlu0 %971 }
 0x46b   :  { %v991_v8 = vmul.f32 %v968_v3, %v951_v0  ;;  %v993_v37 = vmul.f32 %v972_v16, %v953_v23  ;;  %v7612_v11 = vadd.f32 %v1015_v46, %v992_v49 }
 0x46d   :  { %v7607_v52 = vadd.f32 %v1014_v5, %v991_v8  ;;  %v7610_v26 = vadd.f32 %v7491_v63, %v993_v37 }
 0x46f   :  { %v6100_v2 = vrot.slane %v7607_v52, 49  ;;  %v6102_v35 = vrot.slane %v7610_v26, 47  ;;  %v1110_v22 = vrot.slane %v7607_v52, 1  ;;  %v1112_v31 = vrot.slane %v7610_v26, 7 }
 0x470   :  { %v978_v57 = vpop.permute.xlu1 %977 }
 0x471   :  { %v4567_v63 = vsel %vm651_vm3, %v7612_v11, %v6100_v2  ;;  %v996_v18 = vmul.f32 %v978_v57, %v956_v55  ;;  %v1111_v56 = vsel %vm651_vm3, %v7612_v11, %v1110_v22 }
 0x472   :  { %v4569_v51 = vsel %vm654_vm4, %v6102_v35, %v4567_v63  ;;  %v974_v54 = vpop.permute.xlu2 %973  ;;  %v976_v59 = vpop.permute.xlu0 %975  ;;  %v1113_v47 = vsel %vm654_vm4, %v1112_v31, %v1111_v56 }
 0x473   :  { %v994_v60 = vmul.f32 %v974_v54, %v954_v21  ;;  %v995_v61 = vmul.f32 %v976_v59, %v955_v58  ;;  %v7630_v36 = vadd.f32 %v1019_v24, %v996_v18  ;;  %v7673_v21 = vld [vmem:[#allocation8] ss:$0 sm:$0xff] }
 0x475   :  { %v7632_v13 = vadd.f32 %v1017_v12, %v994_v60  ;;  %v7635_v7 = vadd.f32 %v7496_v39, %v995_v61  ;;  %v1118_v39 = vrot.slane %v7630_v36, 4  ;;  %v6105_v6 = vrot.slane %v7630_v36, 44 }
 0x477   :  { %v1114_v14 = vrot.slane %v7632_v13, 6  ;;  %v6103_v43 = vrot.slane %v7632_v13, 46  ;;  %v1116_v1 = vrot.slane %v7635_v7, 5  ;;  %v6104_v32 = vrot.slane %v7635_v7, 45 }
 0x479   :  { %v1115_v48 = vsel %vm657_vm5, %v1114_v14, %v1113_v47  ;;  %v4571_v25 = vsel %vm657_vm5, %v6103_v43, %v4569_v51 }
 0x47a   :  { %v980_v4 = vpop.permute.xlu2 %979  ;;  %v982_v0 = vpop.permute.xlu0 %981  ;;  %v1117_v20 = vsel %vm660_vm6, %v1116_v1, %v1115_v48  ;;  %v4573_v23 = vsel %vm660_vm6, %v6104_v32, %v4571_v25 }
 0x47b   :  { %v997_v3 = vmul.f32 %v980_v4, %v957_v28  ;;  %v998_v10 = vmul.f32 %v982_v0, %v958_v44  ;;  %v1119_v17 = vsel %vm663_vm7, %v1118_v39, %v1117_v20  ;;  %v4575_v16 = vsel %vm663_vm7, %v6105_v6, %v4573_v23 }
 0x47d   :  { %v7656_v49 = vadd.f32 %v1020_v29, %v997_v3  ;;  %v7659_v5 = vadd.f32 %v7499_v41, %v998_v10 }
 0x47f   :  { %v1120_v8 = vrot.slane %v7656_v49, 3  ;;  %v6106_v27 = vrot.slane %v7656_v49, 43  ;;  %v1122_v37 = vrot.slane %v7659_v5, 2  ;;  %v6060_v46 = vrot.slane %v7659_v5, 42 }
 0x480   :  { %v1458_v26 = vrot.slane %v7659_v5, 7 }
 0x481   :  { %v1121_v2 = vsel %vm666_vm8, %v1120_v8, %v1119_v17  ;;  %v4577_v35 = vsel %vm666_vm8, %v6106_v27, %v4575_v16 }
 0x482   :  { %v1123_v55 = vsel %vm9343_vm0, %v1122_v37, %v1121_v2  ;;  %v7669_v45 = vsel %vm9344_vm9, %v6060_v46, %v4577_v35  ;;  %v1452_v37 = vrot.slane %v7607_v52, 7  ;;  %v1457_v35 = vrot.slane %v7656_v49, 7 }
 0x483   :  { %1124 = vrot.lane.b32.xlu1 %v1123_v55, %s6964_s3 }
 0x4f5   :  { %v1125_v41 = vpop.permute.xlu1 %1124 }
 0x4f6   :  { %5831 = vmatmul.msk.f32.vlgmr.msrb.gmra.mxu0 %vm9345_vm12, %v1125_v41 }
 0x573   :  { %v1145_v57 = vpop.f32.mrf.mxu0 }
 0x574   :  { %v7676_v19 = vadd.f32 %v7673_v21, %v1145_v57 }
 0x576   :  { %1328 = vrot.lane.b32.xlu2 %v7676_v19, %s6963_s12  ;;  %v1151_v22 = vrot.slane %v7676_v19, 1  ;;  %v1150_v63 = vrot.slane %v7676_v19, 7  ;;  %v1149_v18 = vrot.slane %v7676_v19, 6  ;;  %v1154_v58 = vrot.slane %v7676_v19, 4 }
 0x577   :  { %v1153_v12 = vrot.slane %v7676_v19, 3  ;;  %v1152_v60 = vrot.slane %v7676_v19, 2  ;;  %v1155_v14 = vrot.slane %v7676_v19, 5  ;;  %v1166_v27 = vadd.f32 %v7676_v19, %v7171_v38 }
 0x578   :  { %1330 = vrot.lane.b32.xlu1 %v1151_v22, %s6963_s12  ;;  %1326 = vrot.lane.b32.xlu0 %v1150_v63, %s6963_s12  ;;  %v1164_v51 = vadd.f32 %v1149_v18, %v7164_v33  ;;  %v1170_v54 = vadd.f32 %v1154_v58, %v7182_v53  ;;  %v1165_v52 = vadd.f32 %v1150_v63, %v7166_v34 }
 0x579   :  { %v5834_v55 = vmul.f32 -1.442695, %v1166_v27  ;;  %v1171_v19 = vadd.f32 %v1155_v14, %v7192_v62 }
 0x57a   :  { %v5832_v59 = vmul.f32 -1.442695, %v1164_v51  ;;  %v5838_v24 = vmul.f32 -1.442695, %v1170_v54 }
 0x57c   :  { %6306 = vpow2.f32 %v5832_v59  ;;  %v5833_v59 = vmul.f32 -1.442695, %v1165_v52 }
 0x57d   :  { %6308 = vpow2.f32 %v5838_v24  ;;  %v1169_v24 = vadd.f32 %v1153_v12, %v7173_v40 }
 0x57e   :  { %1324 = vrot.lane.b32.xlu2 %v1149_v18, %s6963_s12 }
 0x580   :  { %1334 = vrot.lane.b32.xlu1 %v1153_v12, %s6963_s12  ;;  %1332 = vrot.lane.b32.xlu0 %v1152_v60, %s6963_s12 }
 0x582   :  { %v6307_v61 = vpop.eup %6306 }
 0x583   :  { %v1196_v56 = vadd.f32 1.0, %v6307_v61  ;;  %v6309_v43 = vpop.eup %6308  ;;  %v1168_v61 = vadd.f32 %v1152_v60, %v7180_v50  ;;  %v5839_v60 = vmul.f32 -1.442695, %v1171_v19 }
 0x584   :  { %v1202_v1 = vadd.f32 1.0, %v6309_v43  ;;  %v5837_v43 = vmul.f32 -1.442695, %v1169_v24 }
 0x585   :  { %6310 = vrcp.f32 %v1196_v56  ;;  %v1215_v29 = vand.u32 2147483648, %v1196_v56  ;;  %vm1209_vm14 = vweird.f32 %v1196_v56  ;;  %v1213_v4 = vand.u32 2147483647, %v1196_v56 }
 0x586   :  { %1336 = vrot.lane.b32.xlu2 %v1154_v58, %s6963_s12  ;;  %6312 = vrcp.f32 %v1202_v1  ;;  %v1305_v20 = vand.u32 2147483648, %v1202_v1  ;;  %vm1299_vm2 = vweird.f32 %v1202_v1  ;;  %v1303_v3 = vand.u32 2147483647, %v1202_v1 }
 0x587   :  { %v1216_v10 = vor.u32 1.1754944e-38, %v1215_v29  ;;  %vm1214_vm11 = vcmp.eq.f32.partialorder %v1213_v4, 8.507059e+37  ;;  %6314 = vpow2.f32 %v5834_v55  ;;  %v1167_v58 = vadd.f32 %v1151_v22, %v7175_v42 }
 0x588   :  { %1338 = vrot.lane.b32.xlu0 %v1155_v14, %s6963_s12  ;;  %v1306_v8 = vor.u32 1.1754944e-38, %v1305_v20  ;;  %vm1304_vm0 = vcmp.eq.f32.partialorder %v1303_v3, 8.507059e+37 }
 0x589   :  { %v5835_v54 = vmul.f32 -1.442695, %v1167_v58 }
 0x58b   :  { %v6311_v32 = vpop.eup %6310 }
 0x58c   :  { %v1205_v47 = vmul.f32 %v6311_v32, %v1196_v56  ;;  %v6313_v28 = vpop.eup %6312  ;;  %vm1210_vm13 = vweird.f32 %v6311_v32 }
 0x58d   :  { %v1295_v44 = vmul.f32 %v6313_v28, %v1202_v1  ;;  %vm1300_vm15 = vweird.f32 %v6313_v28  ;;  %vm1211_vm1 = vmor %vm1209_vm14, %vm1210_vm13  ;;  %v6315_v57 = vpop.eup %6314  ;;  %v5836_v1 = vmul.f32 -1.442695, %v1168_v61 }
 0x58e   :  { %v1206_v15 = vsub.f32 1.0, %v1205_v47  ;;  %vm1301_vm10 = vmor %vm1299_vm2, %vm1300_vm15  ;;  %v1198_v18 = vadd.f32 1.0, %v6315_v57 }
 0x58f   :  { %v1296_v6 = vsub.f32 1.0, %v1295_v44 }
 0x590   :  { %v1207_v39 = vmul.f32 %v6311_v32, %v1206_v15  ;;  %6316 = vrcp.f32 %v1198_v18  ;;  %v1245_v12 = vand.u32 2147483648, %v1198_v18  ;;  %vm1239_vm12 = vweird.f32 %v1198_v18 }
 0x591   :  { %v1297_v48 = vmul.f32 %v6313_v28, %v1296_v6  ;;  %6318 = vpow2.f32 %v5835_v54  ;;  %v1243_v44 = vand.u32 2147483647, %v1198_v18 }
 0x592   :  { %v1208_v25 = vadd.f32 %v6311_v32, %v1207_v39  ;;  %6320 = vpow2.f32 %v5833_v59 }
 0x593   :  { %v1298_v0 = vadd.f32 %v6313_v28, %v1297_v48  ;;  %6322 = vpow2.f32 %v5837_v43  ;;  %v1246_v48 = vor.u32 1.1754944e-38, %v1245_v12  ;;  %vm1244_vm14 = vcmp.eq.f32.partialorder %v1243_v44, 8.507059e+37 }
 0x594   :  { %v1212_v23 = vsel %vm1211_vm1, %v6311_v32, %v1208_v25  ;;  %6324 = vpow2.f32 %v5836_v1 }
 0x595   :  { %v1302_v17 = vsel %vm1301_vm10, %v6313_v28, %v1298_v0  ;;  %v7700_v16 = vsel %vm1214_vm11, %v1216_v10, %v1212_v23 }
 0x596   :  { %v7705_v46 = vsel %vm1304_vm0, %v1306_v8, %v1302_v17  ;;  %v7708_v2 = vmul.f32 %v1452_v37, %v7700_v16  ;;  %v6317_v51 = vpop.eup %6316 }
 0x597   :  { %v7712_v41 = vmul.f32 %v1457_v35, %v7705_v46  ;;  %v1235_v49 = vmul.f32 %v6317_v51, %v1198_v18  ;;  %v6319_v47 = vpop.eup %6318  ;;  %vm1240_vm9 = vweird.f32 %v6317_v51 }
 0x598   :  { %v6321_v22 = vpop.eup %6320  ;;  %v7723_v63 = vadd.f32 1.0, %v6319_v47  ;;  %vm1241_vm13 = vmor %vm1239_vm12, %vm1240_vm9 }
 0x599   :  { %v1236_v56 = vsub.f32 1.0, %v1235_v49  ;;  %v7725_v15 = vadd.f32 1.0, %v6321_v22  ;;  %v6323_v6 = vpop.eup %6322 }
 0x59a   :  { %6326 = vrcp.f32 %v7723_v63  ;;  %v6325_v14 = vpop.eup %6324  ;;  %v7731_v4 = vadd.f32 1.0, %v6323_v6  ;;  %vm1254_vm2 = vweird.f32 %v7723_v63  ;;  %v1260_v47 = vand.u32 2147483648, %v7723_v63 }
 0x59b   :  { %v1237_v32 = vmul.f32 %v6317_v51, %v1236_v56  ;;  %6328 = vrcp.f32 %v7725_v15  ;;  %v7734_v20 = vadd.f32 1.0, %v6325_v14  ;;  %v1230_v22 = vand.u32 2147483648, %v7725_v15 }
 0x59c   :  { %6330 = vpow2.f32 %v5839_v60  ;;  %vm1224_vm11 = vweird.f32 %v7725_v15  ;;  %v1228_v12 = vand.u32 2147483647, %v7725_v15  ;;  %v1261_v14 = vor.u32 1.1754944e-38, %v1260_v47 }
 0x59d   :  { %v1238_v28 = vadd.f32 %v6317_v51, %v1237_v32  ;;  %6332 = vrcp.f32 %v7731_v4 }
 0x59e   :  { %6334 = vrcp.f32 %v7734_v20  ;;  %vm1229_vm12 = vcmp.eq.f32.partialorder %v1228_v12, 8.507059e+37 }
 0x59f   :  { %v1242_v39 = vsel %vm1241_vm13, %v6317_v51, %v1238_v28  ;;  %v1258_v28 = vand.u32 2147483647, %v7723_v63 }
 0x5a0   :  { %v7729_v29 = vsel %vm1244_vm14, %v1246_v48, %v1242_v39  ;;  %v6327_v23 = vpop.eup %6326 }
 0x5a1   :  { %v6329_v3 = vpop.eup %6328  ;;  %v1250_v17 = vmul.f32 %v6327_v23, %v7723_v63  ;;  %vm1255_vm15 = vweird.f32 %v6327_v23  ;;  %vm1259_vm9 = vcmp.eq.f32.partialorder %v1258_v28, 8.507059e+37 }
 0x5a2   :  { %v6331_v10 = vpop.eup %6330  ;;  %v1220_v8 = vmul.f32 %v6329_v3, %v7725_v15  ;;  %vm1225_vm1 = vweird.f32 %v6329_v3  ;;  %vm7761_vm10 = vmor %vm1254_vm2, %vm1255_vm15  ;;  %vm1284_vm15 = vweird.f32 %v7731_v4  ;;  %vm1269_vm2 = vweird.f32 %v7734_v20 }
 0x5a3   :  { %v7742_v35 = vadd.f32 1.0, %v6331_v10  ;;  %v7744_v55 = vpop.eup %6332  ;;  %v1251_v57 = vsub.f32 1.0, %v1250_v17  ;;  %vm1226_vm0 = vmor %vm1224_vm11, %vm1225_vm1 }
 0x5a4   :  { %v1221_v18 = vsub.f32 1.0, %v1220_v8  ;;  %v7747_v58 = vpop.eup %6334  ;;  %v1280_v52 = vmul.f32 %v7744_v55, %v7731_v4  ;;  %vm1285_vm13 = vweird.f32 %v7744_v55 }
 0x5a5   :  { %6336 = vrcp.f32 %v7742_v35  ;;  %v1252_v51 = vmul.f32 %v6327_v23, %v1251_v57  ;;  %v1265_v59 = vmul.f32 %v7747_v58, %v7734_v20  ;;  %vm1270_vm14 = vweird.f32 %v7747_v58  ;;  %vm1286_vm1 = vmor %vm1284_vm15, %vm1285_vm13 }
 0x5a6   :  { %v1222_v54 = vmul.f32 %v6329_v3, %v1221_v18  ;;  %v1281_v61 = vsub.f32 1.0, %v1280_v52  ;;  %v1275_v57 = vand.u32 2147483648, %v7734_v20  ;;  %v1288_v18 = vand.u32 2147483647, %v7731_v4 }
 0x5a7   :  { %v1253_v56 = vadd.f32 %v6327_v23, %v1252_v51  ;;  %v1266_v1 = vsub.f32 1.0, %v1265_v59  ;;  %v1273_v52 = vand.u32 2147483647, %v7734_v20  ;;  %v1318_v47 = vand.u32 2147483647, %v7742_v35 }
 0x5a8   :  { %v1223_v43 = vadd.f32 %v6329_v3, %v1222_v54  ;;  %v1282_v44 = vmul.f32 %v7744_v55, %v1281_v61  ;;  %vm1289_vm11 = vcmp.eq.f32.partialorder %v1288_v18, 8.507059e+37  ;;  %vm9348_vm15 = vcmask 1047559  }
 0x5a9   :  { %v1257_v60 = vsel %vm7761_vm10, %v6327_v23, %v1253_v56  ;;  %v1267_v6 = vmul.f32 %v7747_v58, %v1266_v1  ;;  %vm1271_vm10 = vmor %vm1269_vm2, %vm1270_vm14  ;;  %vm1319_vm14 = vcmp.eq.f32.partialorder %v1318_v47, 8.507059e+37  ;;  %vm9350_vm2 = vcmask 261120  }
 0x5aa   :  { %v1227_v39 = vsel %vm1226_vm0, %v6329_v3, %v1223_v43  ;;  %v7775_v15 = vsel %vm1259_vm9, %v1261_v14, %v1257_v60  ;;  %v1283_v23 = vadd.f32 %v7744_v55, %v1282_v44  ;;  %vm1274_vm0 = vcmp.eq.f32.partialorder %v1273_v52, 8.507059e+37 }
 0x5ab   :  { %v7756_v32 = vpop.eup %6336  ;;  %v1268_v8 = vadd.f32 %v7747_v58, %v1267_v6  ;;  %v1407_v47 = vsub.f32 1.0, %v7775_v15 }
 0x5ac   :  { %v1310_v48 = vmul.f32 %v7756_v32, %v7742_v35  ;;  %v1287_v51 = vsel %vm1286_vm1, %v7744_v55, %v1283_v23  ;;  %vm1315_vm9 = vweird.f32 %v7756_v32  ;;  %vm9349_vm1 = vmmov %vm9348_vm15 }
 0x5ad   :  { %v1272_v54 = vsel %vm1271_vm10, %v7747_v58, %v1268_v8  ;;  %v1320_v58 = vand.u32 2147483648, %v7742_v35 }
 0x5af   :  { %v1321_v19 = vor.u32 1.1754944e-38, %v1320_v58 }
 0x5d0   :  { %v1329_v25 = vpop.permute.xlu2 %1328 }
 0x5d1   :  { %v1350_v0 = vmul.f32 %v1329_v25, %v7729_v29  ;;  %v1231_v25 = vor.u32 1.1754944e-38, %v1230_v22 }
 0x5d3   :  { %1368 = vrot.lane.b32.xlu1 %v1350_v0, %s6963_s12  ;;  %v7777_v10 = vsel %vm1229_vm12, %v1231_v25, %v1227_v39  ;;  %vm1314_vm12 = vweird.f32 %v7742_v35 }
 0x5d4   :  { %vm1316_vm13 = vmor %vm1314_vm12, %vm1315_vm9 }
 0x5d8   :  { %v1325_v27 = vpop.permute.xlu2 %1324 }
 0x5d9   :  { %v1348_v37 = vmul.f32 %v1325_v27, %v7700_v16  ;;  %v1311_v27 = vsub.f32 1.0, %v1310_v48 }
 0x5db   :  { %1364 = vrot.lane.b32.xlu1 %v1348_v37, %s6963_s12  ;;  %v1290_v37 = vand.u32 2147483648, %v7731_v4  ;;  %v1312_v59 = vmul.f32 %v7756_v32, %v1311_v27 }
 0x5dd   :  { %v1313_v55 = vadd.f32 %v7756_v32, %v1312_v59 }
 0x5df   :  { %v1317_v22 = vsel %vm1316_vm13, %v7756_v32, %v1313_v55  ;;  %v1453_v55 = vrot.slane %v7612_v11, 7 }
 0x5e0   :  { %v1337_v49 = vpop.permute.xlu2 %1336  ;;  %v7811_v28 = vsel %vm1319_vm14, %v1321_v19, %v1317_v22  ;;  %v1454_v19 = vrot.slane %v7632_v13, 7 }
 0x5e1   :  { %v1354_v24 = vmul.f32 %v1337_v49, %v7705_v46  ;;  %v1291_v49 = vor.u32 1.1754944e-38, %v1290_v37  ;;  %v1468_v22 = vmul.f32 %v1453_v55, %v7777_v10 }
 0x5e2   :  { %v1470_v11 = vmul.f32 %v1454_v19, %v7775_v15 }
 0x5e3   :  { %1376 = vrot.lane.b32.xlu1 %v1354_v24, %s6963_s12  ;;  %v1276_v24 = vor.u32 1.1754944e-38, %v1275_v57  ;;  %v7797_v61 = vsel %vm1289_vm11, %v1291_v49, %v1287_v51 }
 0x5e5   :  { %v7799_v43 = vsel %vm1274_vm0, %v1276_v24, %v1272_v54 }
 0x5ea   :  { %v1331_v63 = vpop.permute.xlu1 %1330  ;;  %v1327_v0 = vpop.permute.xlu0 %1326 }
 0x5eb   :  { %v1351_v3 = vmul.f32 %v1331_v63, %v7775_v15  ;;  %v1349_v17 = vmul.f32 %v1327_v0, %v7777_v10  ;;  %v1469_v15 = vmul.f32 %v7729_v29, %v1112_v31 }
 0x5ed   :  { %1370 = vrot.lane.b32.xlu0 %v1351_v3, %s6963_s12  ;;  %1366 = vrot.lane.b32.xlu2 %v1349_v17, %s6963_s12 }
 0x5f2   :  { %v1335_v56 = vpop.permute.xlu1 %1334  ;;  %v1333_v4 = vpop.permute.xlu0 %1332 }
 0x5f3   :  { %v1353_v1 = vmul.f32 %v1335_v56, %v7797_v61  ;;  %v1352_v20 = vmul.f32 %v1333_v4, %v7799_v43 }
 0x5f5   :  { %1374 = vrot.lane.b32.xlu0 %v1353_v1, %s6963_s12  ;;  %1372 = vrot.lane.b32.xlu2 %v1352_v20, %s6963_s12  ;;  %v1405_v1 = vsub.f32 1.0, %v7777_v10  ;;  %v1408_v10 = vsub.f32 1.0, %v7799_v43 }
 0x5fa   :  { %v1339_v12 = vpop.permute.xlu0 %1338 }
 0x5fb   :  { %v1355_v44 = vmul.f32 %v1339_v12, %v7811_v28 }
 0x5fd   :  { %1378 = vrot.lane.b32.xlu2 %v1355_v44, %s6963_s12  ;;  %v1404_v44 = vsub.f32 1.0, %v7700_v16 }
 0x645   :  { %v1369_v60 = vpop.permute.xlu1 %1368 }
 0x646   :  { %v1390_v39 = vadd.f32 %v1369_v60, %v7171_v38  ;;  %v1406_v60 = vsub.f32 1.0, %v7729_v29 }
 0x647   :  { %v1367_v6 = vpop.permute.xlu2 %1366 }
 0x648   :  { %6338 = vtanh.f32 %v1390_v39  ;;  %v1389_v48 = vadd.f32 %v1367_v6, %v7166_v34 }
 0x64a   :  { %6340 = vtanh.f32 %v1389_v48  ;;  %v1456_v48 = vrot.slane %v7630_v36, 7 }
 0x64d   :  { %v1365_v35 = vpop.permute.xlu1 %1364 }
 0x64e   :  { %v6339_v14 = vpop.eup %6338  ;;  %v1388_v32 = vadd.f32 %v1365_v35, %v7164_v33  ;;  %v1455_v35 = vrot.slane %v7635_v7, 7 }
 0x64f   :  { %1424 = vrot.lane.b32.xlu0 %v6339_v14, %s6964_s3  ;;  %v1373_v25 = vpop.permute.xlu2 %1372 }
 0x650   :  { %v6341_v63 = vpop.eup %6340  ;;  %6342 = vtanh.f32 %v1388_v32  ;;  %v1392_v0 = vadd.f32 %v1373_v25, %v7180_v50  ;;  %v1409_v32 = vsub.f32 1.0, %v7797_v61  ;;  %v1472_v25 = vmul.f32 %v1456_v48, %v7797_v61 }
 0x651   :  { %1422 = vrot.lane.b32.xlu1 %v6341_v63, %s6964_s3  ;;  %v1471_v63 = vmul.f32 %v1455_v35, %v7799_v43 }
 0x652   :  { %6344 = vtanh.f32 %v1392_v0 }
 0x655   :  { %v1377_v23 = vpop.permute.xlu1 %1376 }
 0x656   :  { %v6343_v3 = vpop.eup %6342  ;;  %v1394_v17 = vadd.f32 %v1377_v23, %v7182_v53 }
 0x657   :  { %v1379_v8 = vpop.permute.xlu2 %1378  ;;  %1420 = vrot.lane.b32.xlu0 %v6343_v3, %s6964_s3 }
 0x658   :  { %v6345_v27 = vpop.eup %6344  ;;  %6346 = vtanh.f32 %v1394_v17  ;;  %v1395_v37 = vadd.f32 %v1379_v8, %v7192_v62 }
 0x659   :  { %1428 = vrot.lane.b32.xlu1 %v6345_v27, %s6964_s3 }
 0x65a   :  { %6348 = vtanh.f32 %v1395_v37 }
 0x65e   :  { %v6347_v57 = vpop.eup %6346 }
 0x65f   :  { %v1371_v18 = vpop.permute.xlu0 %1370  ;;  %1432 = vrot.lane.b32.xlu0 %v6347_v57, %s6964_s3  ;;  %v1410_v57 = vsub.f32 1.0, %v7705_v46 }
 0x660   :  { %v6349_v52 = vpop.eup %6348  ;;  %v1391_v51 = vadd.f32 %v1371_v18, %v7175_v42 }
 0x661   :  { %1434 = vrot.lane.b32.xlu1 %v6349_v52, %s6964_s3  ;;  %v1411_v52 = vsub.f32 1.0, %v7811_v28 }
 0x662   :  { %6350 = vtanh.f32 %v1391_v51 }
 0x667   :  { %v1375_v54 = vpop.permute.xlu0 %1374 }
 0x668   :  { %v6351_v59 = vpop.eup %6350  ;;  %v1393_v49 = vadd.f32 %v1375_v54, %v7173_v40 }
 0x669   :  { %1426 = vrot.lane.b32.xlu2 %v6351_v59, %s6964_s3 }
 0x66a   :  { %6352 = vtanh.f32 %v1393_v49 }
 0x670   :  { %v6353_v24 = vpop.eup %6352 }
 0x671   :  { %1430 = vrot.lane.b32.xlu2 %v6353_v24, %s6964_s3 }
 0x6c1   :  { %v1425_v56 = vpop.permute.xlu0 %1424 }
 0x6c2   :  { %v1446_v13 = vmul.f32 %v1425_v56, %v1406_v60 }
 0x6c3   :  { %v1427_v4 = vpop.permute.xlu2 %1426  ;;  %v1423_v20 = vpop.permute.xlu1 %1422 }
 0x6c4   :  { %v1445_v58 = vmul.f32 %v1423_v20, %v1405_v1  ;;  %v1447_v12 = vmul.f32 %v1427_v4, %v1407_v47  ;;  %v1474_v20 = vmul.f32 %v1458_v26, %v7811_v28 }
 0x6c6   :  { %v7838_v39 = vadd.f32 %v1468_v22, %v1445_v58  ;;  %v7847_v23 = vadd.f32 %v1470_v11, %v1447_v12 }
 0x6c8   :  { %v1596_v17 = vrot.slane %v7838_v39, 1  ;;  %v6108_v8 = vrot.slane %v7838_v39, 41  ;;  %v1599_v31 = vrot.slane %v7847_v23, 7  ;;  %v6110_v51 = vrot.slane %v7847_v23, 39 }
 0x6c9   :  { %v1421_v6 = vpop.permute.xlu0 %1420 }
 0x6ca   :  { %v1444_v14 = vmul.f32 %v1421_v6, %v1404_v44 }
 0x6cb   :  { %v1431_v16 = vpop.permute.xlu2 %1430  ;;  %v1429_v0 = vpop.permute.xlu1 %1428 }
 0x6cc   :  { %v7850_v36 = vadd.f32 %v7708_v2, %v1444_v14  ;;  %v1449_v7 = vmul.f32 %v1431_v16, %v1409_v32  ;;  %v1448_v3 = vmul.f32 %v1429_v0, %v1408_v10  ;;  %v7863_v2 = vadd.f32 %v1469_v15, %v1446_v13 }
 0x6ce   :  { %v1595_v61 = vrot.slane %v7850_v36, 2  ;;  %v6107_v43 = vrot.slane %v7850_v36, 42  ;;  %v7859_v27 = vadd.f32 %v1472_v25, %v1449_v7  ;;  %v7861_v37 = vadd.f32 %v1471_v63, %v1448_v3 }
 0x6d0   :  { %v1597_v29 = vsel %vm651_vm3, %v1596_v17, %v1595_v61  ;;  %v4581_v18 = vsel %vm651_vm3, %v6108_v8, %v6107_v43  ;;  %v1601_v54 = vrot.slane %v7861_v37, 6  ;;  %v6111_v59 = vrot.slane %v7861_v37, 38 }
 0x6d1   :  { %v1433_v49 = vpop.permute.xlu0 %1432  ;;  %v1598_v46 = vsel %vm654_vm4, %v7863_v2, %v1597_v29  ;;  %v1603_v5 = vrot.slane %v7859_v27, 5  ;;  %v4583_v4 = vsel %vm654_vm4, %v7863_v2, %v4581_v18  ;;  %v6112_v1 = vrot.slane %v7859_v27, 37 }
 0x6d2   :  { %v1450_v24 = vmul.f32 %v1433_v49, %v1410_v57  ;;  %v1600_v56 = vsel %vm657_vm5, %v1599_v31, %v1598_v46  ;;  %v4585_v47 = vsel %vm657_vm5, %v6110_v51, %v4583_v4 }
 0x6d3   :  { %v1435_v55 = vpop.permute.xlu1 %1434  ;;  %v1602_v58 = vsel %vm660_vm6, %v1601_v54, %v1600_v56  ;;  %v4587_v44 = vsel %vm660_vm6, %v6111_v59, %v4585_v47 }
 0x6d4   :  { %v7887_v22 = vadd.f32 %v7712_v41, %v1450_v24  ;;  %v1451_v19 = vmul.f32 %v1435_v55, %v1411_v52  ;;  %v1604_v12 = vsel %vm663_vm7, %v1603_v5, %v1602_v58  ;;  %v4589_v60 = vsel %vm663_vm7, %v6112_v1, %v4587_v44 }
 0x6d6   :  { %v1605_v6 = vrot.slane %v7887_v22, 4  ;;  %v6113_v48 = vrot.slane %v7887_v22, 36  ;;  %v7894_v28 = vadd.f32 %v1474_v20, %v1451_v19 }
 0x6d8   :  { %v1606_v35 = vsel %vm666_vm8, %v1605_v6, %v1604_v12  ;;  %v1607_v11 = vrot.slane %v7894_v28, 3  ;;  %v6068_v41 = vrot.slane %v7894_v28, 35  ;;  %v4591_v14 = vsel %vm666_vm8, %v6113_v48, %v4589_v60 }
 0x6d9   :  { %v1939_v48 = vrot.slane %v7863_v2, 7 }
 0x6da   :  { %v1608_v32 = vsel %vm9348_vm15, %v1607_v11, %v1606_v35  ;;  %v7902_v10 = vsel %vm9349_vm1, %v6068_v41, %v4591_v14  ;;  %v1941_v41 = vrot.slane %v7859_v27, 7 }
 0x6db   :  { %1609 = vrot.lane.b32.xlu2 %v1608_v32, %s6964_s3 }
 0x735   :  { %v1610_v13 = vpop.permute.xlu2 %1609 }
 0x736   :  { %5856 = vmatmul.msk.f32.vlgmr.msrb.gmra.mxu1 %vm9350_vm2, %v1610_v13 }
 0x7b3   :  { %v1630_v25 = vpop.f32.mrf.mxu1 }
 0x7b4   :  { %v7907_v16 = vadd.f32 %v7673_v21, %v1630_v25 }
 0x7b6   :  { %1815 = vrot.lane.b32.xlu1 %v7907_v16, %s6963_s12  ;;  %v1636_v63 = vrot.slane %v7907_v16, 7  ;;  %v1634_v0 = vrot.slane %v7907_v16, 5  ;;  %v1638_v7 = vrot.slane %v7907_v16, 2  ;;  %v1635_v8 = vrot.slane %v7907_v16, 6 }
 0x7b7   :  { %v1637_v61 = vrot.slane %v7907_v16, 1  ;;  %v1640_v26 = vrot.slane %v7907_v16, 4  ;;  %v1639_v52 = vrot.slane %v7907_v16, 3  ;;  %v1652_v32 = vadd.f32 %v7907_v16, %v7175_v42 }
 0x7b8   :  { %1813 = vrot.lane.b32.xlu2 %v1636_v63, %s6963_s12  ;;  %v1651_v3 = vadd.f32 %v1636_v63, %v7171_v38  ;;  %1809 = vrot.lane.b32.xlu0 %v1634_v0, %s6963_s12  ;;  %v1654_v15 = vadd.f32 %v1638_v7, %v7173_v40  ;;  %v1649_v13 = vadd.f32 %v1634_v0, %v7164_v33 }
 0x7b9   :  { %v5860_v25 = vmul.f32 -1.442695, %v1652_v32  ;;  %v1650_v2 = vadd.f32 %v1635_v8, %v7166_v34  ;;  %v1655_v16 = vadd.f32 %v1639_v52, %v7182_v53 }
 0x7ba   :  { %v5859_v17 = vmul.f32 -1.442695, %v1651_v3  ;;  %v5862_v21 = vmul.f32 -1.442695, %v1654_v15  ;;  %v5857_v63 = vmul.f32 -1.442695, %v1649_v13 }
 0x7bb   :  { %v5858_v3 = vmul.f32 -1.442695, %v1650_v2 }
 0x7bc   :  { %6354 = vpow2.f32 %v5859_v17 }
 0x7bd   :  { %6356 = vpow2.f32 %v5862_v21  ;;  %v1656_v21 = vadd.f32 %v1640_v26, %v7192_v62 }
 0x7be   :  { %1811 = vrot.lane.b32.xlu1 %v1635_v8, %s6963_s12 }
 0x7c0   :  { %1819 = vrot.lane.b32.xlu2 %v1638_v7, %s6963_s12  ;;  %1817 = vrot.lane.b32.xlu0 %v1637_v61, %s6963_s12  ;;  %v1653_v7 = vadd.f32 %v1637_v61, %v7180_v50 }
 0x7c2   :  { %v6355_v43 = vpop.eup %6354  ;;  %v5861_v17 = vmul.f32 -1.442695, %v1653_v7 }
 0x7c3   :  { %v1683_v57 = vadd.f32 1.0, %v6355_v43  ;;  %v6357_v29 = vpop.eup %6356 }
 0x7c4   :  { %v1686_v18 = vadd.f32 1.0, %v6357_v29  ;;  %v5863_v29 = vmul.f32 -1.442695, %v1655_v16 }
 0x7c5   :  { %6358 = vrcp.f32 %v1683_v57  ;;  %v1730_v1 = vand.u32 2147483648, %v1683_v57  ;;  %vm1724_vm11 = vweird.f32 %v1683_v57  ;;  %v1728_v20 = vand.u32 2147483647, %v1683_v57 }
 0x7c6   :  { %1823 = vrot.lane.b32.xlu1 %v1640_v26, %s6963_s12  ;;  %6360 = vrcp.f32 %v1686_v18  ;;  %v1775_v47 = vand.u32 2147483648, %v1686_v18  ;;  %vm1769_vm12 = vweird.f32 %v1686_v18  ;;  %v1773_v12 = vand.u32 2147483647, %v1686_v18 }
 0x7c7   :  { %v1731_v19 = vor.u32 1.1754944e-38, %v1730_v1  ;;  %vm1729_vm13 = vcmp.eq.f32.partialorder %v1728_v20, 8.507059e+37  ;;  %6362 = vpow2.f32 %v5860_v25 }
 0x7c8   :  { %1821 = vrot.lane.b32.xlu0 %v1639_v52, %s6963_s12  ;;  %v1776_v6 = vor.u32 1.1754944e-38, %v1775_v47  ;;  %vm1774_vm15 = vcmp.eq.f32.partialorder %v1773_v12, 8.507059e+37  ;;  %6364 = vpow2.f32 %v5857_v63 }
 0x7c9   :  { %6366 = vpow2.f32 %v5858_v3 }
 0x7ca   :  { %6368 = vpow2.f32 %v5861_v17 }
 0x7cb   :  { %v6359_v51 = vpop.eup %6358 }
 0x7cc   :  { %v1720_v54 = vmul.f32 %v6359_v51, %v1683_v57  ;;  %v6361_v59 = vpop.eup %6360  ;;  %vm1725_vm10 = vweird.f32 %v6359_v51  ;;  %v5864_v57 = vmul.f32 -1.442695, %v1656_v21 }
 0x7cd   :  { %v1765_v46 = vmul.f32 %v6361_v59, %v1686_v18  ;;  %vm1726_vm0 = vmor %vm1724_vm11, %vm1725_vm10  ;;  %vm1770_vm9 = vweird.f32 %v6361_v59  ;;  %v6363_v15 = vpop.eup %6362 }
 0x7ce   :  { %v1721_v49 = vsub.f32 1.0, %v1720_v54  ;;  %vm1771_vm14 = vmor %vm1769_vm12, %vm1770_vm9  ;;  %v6365_v27 = vpop.eup %6364  ;;  %v1684_v43 = vadd.f32 1.0, %v6363_v15 }
 0x7cf   :  { %v1766_v24 = vsub.f32 1.0, %v1765_v46  ;;  %v7946_v0 = vadd.f32 1.0, %v6365_v27  ;;  %v6367_v8 = vpop.eup %6366 }
 0x7d0   :  { %v1722_v5 = vmul.f32 %v6359_v51, %v1721_v49  ;;  %6370 = vrcp.f32 %v1684_v43  ;;  %v6369_v61 = vpop.eup %6368  ;;  %v7949_v18 = vadd.f32 1.0, %v6367_v8  ;;  %vm1739_vm2 = vweird.f32 %v1684_v43 }
 0x7d1   :  { %v1767_v56 = vmul.f32 %v6361_v59, %v1766_v24  ;;  %6372 = vrcp.f32 %v7946_v0  ;;  %v7951_v54 = vadd.f32 1.0, %v6369_v61  ;;  %v1745_v25 = vand.u32 2147483648, %v1684_v43 }
 0x7d2   :  { %v1723_v4 = vadd.f32 %v6359_v51, %v1722_v5  ;;  %6374 = vpow2.f32 %v5864_v57  ;;  %v1743_v63 = vand.u32 2147483647, %v1684_v43  ;;  %v1698_v15 = vand.u32 2147483647, %v7946_v0 }
 0x7d3   :  { %v1768_v55 = vadd.f32 %v6361_v59, %v1767_v56  ;;  %6376 = vpow2.f32 %v5863_v29  ;;  %v1700_v17 = vand.u32 2147483648, %v7946_v0  ;;  %v1746_v57 = vor.u32 1.1754944e-38, %v1745_v25 }
 0x7d4   :  { %v1727_v58 = vsel %vm1726_vm0, %v6359_v51, %v1723_v4  ;;  %6378 = vrcp.f32 %v7949_v18  ;;  %vm1694_vm0 = vweird.f32 %v7946_v0  ;;  %vm1744_vm12 = vcmp.eq.f32.partialorder %v1743_v63, 8.507059e+37 }
 0x7d5   :  { %v7927_v44 = vsel %vm1729_vm13, %v1731_v19, %v1727_v58  ;;  %v1772_v60 = vsel %vm1771_vm14, %v6361_v59, %v1768_v55  ;;  %6380 = vrcp.f32 %v7951_v54  ;;  %vm1699_vm13 = vcmp.eq.f32.partialorder %v1698_v15, 8.507059e+37 }
 0x7d6   :  { %v7930_v35 = vsel %vm1774_vm15, %v1776_v6, %v1772_v60  ;;  %v7933_v11 = vmul.f32 %v1939_v48, %v7927_v44  ;;  %v6371_v51 = vpop.eup %6370  ;;  %vm1709_vm15 = vweird.f32 %v7949_v18 }
 0x7d7   :  { %v7937_v14 = vmul.f32 %v1941_v41, %v7930_v35  ;;  %v6373_v52 = vpop.eup %6372  ;;  %v1735_v46 = vmul.f32 %v6371_v51, %v1684_v43  ;;  %vm1740_vm1 = vweird.f32 %v6371_v51 }
 0x7d8   :  { %v6375_v49 = vpop.eup %6374  ;;  %v1690_v24 = vmul.f32 %v6373_v52, %v7946_v0  ;;  %vm1695_vm10 = vweird.f32 %v6373_v52  ;;  %vm1741_vm11 = vmor %vm1739_vm2, %vm1740_vm1 }
 0x7d9   :  { %v6377_v5 = vpop.eup %6376  ;;  %v7958_v56 = vadd.f32 1.0, %v6375_v49  ;;  %v1736_v4 = vsub.f32 1.0, %v1735_v46  ;;  %vm1696_vm9 = vmor %vm1694_vm0, %vm1695_vm10  ;;  %vm1754_vm10 = vweird.f32 %v7951_v54 }
 0x7da   :  { %v7960_v1 = vpop.eup %6378  ;;  %v7962_v20 = vadd.f32 1.0, %v6377_v5  ;;  %v1691_v47 = vsub.f32 1.0, %v1690_v24  ;;  %v1715_v24 = vand.u32 2147483648, %v7949_v18 }
 0x7db   :  { %v7965_v19 = vpop.eup %6380  ;;  %6382 = vrcp.f32 %v7958_v56  ;;  %v1737_v12 = vmul.f32 %v6371_v51, %v1736_v4  ;;  %v1705_v60 = vmul.f32 %v7960_v1, %v7949_v18  ;;  %vm1710_vm14 = vweird.f32 %v7960_v1 }
 0x7dc   :  { %6384 = vrcp.f32 %v7962_v20  ;;  %v1692_v6 = vmul.f32 %v6373_v52, %v1691_v47  ;;  %v1750_v48 = vmul.f32 %v7965_v19, %v7951_v54  ;;  %vm1755_vm1 = vweird.f32 %v7965_v19  ;;  %vm1711_vm2 = vmor %vm1709_vm15, %vm1710_vm14 }
 0x7dd   :  { %v1738_v41 = vadd.f32 %v6371_v51, %v1737_v12  ;;  %v1706_v32 = vsub.f32 1.0, %v1705_v60  ;;  %v1760_v47 = vand.u32 2147483648, %v7951_v54 }
 0x7de   :  { %v1693_v2 = vadd.f32 %v6373_v52, %v1692_v6  ;;  %v1751_v7 = vsub.f32 1.0, %v1750_v48  ;;  %v1716_v6 = vor.u32 1.1754944e-38, %v1715_v24 }
 0x7df   :  { %v1742_v27 = vsel %vm1741_vm11, %v6371_v51, %v1738_v41  ;;  %v1707_v21 = vmul.f32 %v7960_v1, %v1706_v32  ;;  %v1701_v51 = vor.u32 1.1754944e-38, %v1700_v17  ;;  %vm1756_vm11 = vmor %vm1754_vm10, %vm1755_vm1  ;;  %v1761_v63 = vor.u32 1.1754944e-38, %v1760_v47 }
 0x7e0   :  { %v1697_v43 = vsel %vm1696_vm9, %v6373_v52, %v1693_v2  ;;  %v1752_v8 = vmul.f32 %v7965_v19, %v1751_v7  ;;  %v1713_v52 = vand.u32 2147483647, %v7949_v18  ;;  %v1758_v18 = vand.u32 2147483647, %v7951_v54 }
 0x7e1   :  { %v7974_v13 = vpop.eup %6382  ;;  %v7992_v5 = vsel %vm1699_vm13, %v1701_v51, %v1697_v43  ;;  %vm1799_vm13 = vweird.f32 %v7958_v56  ;;  %v1803_v17 = vand.u32 2147483647, %v7958_v56  ;;  %vm1784_vm1 = vweird.f32 %v7962_v20 }
 0x7e2   :  { %v7976_v3 = vpop.eup %6384  ;;  %v1795_v16 = vmul.f32 %v7974_v13, %v7958_v56  ;;  %vm1714_vm0 = vcmp.eq.f32.partialorder %v1713_v52, 8.507059e+37  ;;  %vm1759_vm9 = vcmp.eq.f32.partialorder %v1758_v18, 8.507059e+37 }
 0x7e3   :  { %v1780_v29 = vmul.f32 %v7976_v3, %v7962_v20  ;;  %vm1785_vm14 = vweird.f32 %v7976_v3  ;;  %vm1804_vm10 = vcmp.eq.f32.partialorder %v1803_v17, 8.507059e+37 }
 0x7e4   :  { %v1796_v49 = vsub.f32 1.0, %v1795_v16 }
 0x7e6   :  { %v1797_v60 = vmul.f32 %v7974_v13, %v1796_v49 }
 0x812   :  { %v1814_v26 = vpop.permute.xlu2 %1813 }
 0x813   :  { %v1835_v59 = vmul.f32 %v1814_v26, %v7927_v44  ;;  %v7987_v26 = vsel %vm1744_vm12, %v1746_v57, %v1742_v27  ;;  %vm1800_vm12 = vweird.f32 %v7974_v13  ;;  %v1788_v57 = vand.u32 2147483647, %v7962_v20 }
 0x814   :  { %vm1801_vm15 = vmor %vm1799_vm13, %vm1800_vm12  ;;  %vm9353_vm12 = vcmask 261120  }
 0x815   :  { %1853 = vrot.lane.b32.xlu1 %v1835_v59, %s6963_s12  ;;  %v1708_v59 = vadd.f32 %v7960_v1, %v1707_v21  ;;  %v1790_v21 = vand.u32 2147483648, %v7962_v20 }
 0x817   :  { %v1712_v12 = vsel %vm1711_vm2, %v7960_v1, %v1708_v59  ;;  %v1798_v1 = vadd.f32 %v7974_v13, %v1797_v60  ;;  %vm1786_vm2 = vmor %vm1784_vm1, %vm1785_vm14 }
 0x818   :  { %v8009_v25 = vsel %vm1714_vm0, %v1716_v6, %v1712_v12  ;;  %vm9351_vm0 = vcmask 1047559  }
 0x819   :  { %v1802_v16 = vsel %vm1801_vm15, %v7974_v13, %v1798_v1 }
 0x81a   :  { %v1820_v55 = vpop.permute.xlu2 %1819 }
 0x81b   :  { %v1838_v58 = vmul.f32 %v1820_v55, %v7930_v35  ;;  %v1753_v55 = vadd.f32 %v7965_v19, %v1752_v8 }
 0x81d   :  { %1859 = vrot.lane.b32.xlu1 %v1838_v58, %s6963_s12  ;;  %v1781_v58 = vsub.f32 1.0, %v1780_v29  ;;  %v1757_v48 = vsel %vm1756_vm11, %v7965_v19, %v1753_v55  ;;  %v1805_v19 = vand.u32 2147483648, %v7958_v56  ;;  %vm1789_vm11 = vcmp.eq.f32.partialorder %v1788_v57, 8.507059e+37 }
 0x81e   :  { %v8014_v54 = vsel %vm1759_vm9, %v1761_v63, %v1757_v48  ;;  %v1889_v57 = vsub.f32 1.0, %v7992_v5  ;;  %vm9352_vm9 = vmmov %vm9351_vm0 }
 0x81f   :  { %v1782_v41 = vmul.f32 %v7976_v3, %v1781_v58  ;;  %v1806_v43 = vor.u32 1.1754944e-38, %v1805_v19 }
 0x821   :  { %v1783_v27 = vadd.f32 %v7976_v3, %v1782_v41  ;;  %v8029_v8 = vsel %vm1804_vm10, %v1806_v43, %v1802_v16 }
 0x822   :  { %v1896_v23 = vsub.f32 1.0, %v8029_v8 }
 0x823   :  { %v1787_v56 = vsel %vm1786_vm2, %v7976_v3, %v1783_v27 }
 0x828   :  { %v1816_v61 = vpop.permute.xlu1 %1815 }
 0x829   :  { %v1836_v0 = vmul.f32 %v1816_v61, %v7987_v26  ;;  %v1791_v61 = vor.u32 1.1754944e-38, %v1790_v21  ;;  %v1891_v21 = vsub.f32 1.0, %v7927_v44 }
 0x82a   :  { %v1810_v46 = vpop.permute.xlu0 %1809 }
 0x82b   :  { %v1833_v4 = vmul.f32 %v1810_v46, %v7992_v5  ;;  %1855 = vrot.lane.b32.xlu0 %v1836_v0, %s6963_s12  ;;  %v8032_v0 = vsel %vm1789_vm11, %v1791_v61, %v1787_v56 }
 0x82d   :  { %1849 = vrot.lane.b32.xlu2 %v1833_v4, %s6963_s12 }
 0x830   :  { %v1812_v32 = vpop.permute.xlu1 %1811 }
 0x831   :  { %v1834_v2 = vmul.f32 %v1812_v32, %v8009_v25 }
 0x832   :  { %v1818_v7 = vpop.permute.xlu0 %1817 }
 0x833   :  { %v1837_v15 = vmul.f32 %v1818_v7, %v8014_v54  ;;  %1851 = vrot.lane.b32.xlu0 %v1834_v2, %s6963_s12 }
 0x835   :  { %1857 = vrot.lane.b32.xlu2 %v1837_v15, %s6963_s12 }
 0x838   :  { %v1824_v29 = vpop.permute.xlu1 %1823 }
 0x839   :  { %v1840_v51 = vmul.f32 %v1824_v29, %v8029_v8  ;;  %v1937_v29 = vrot.slane %v7850_v36, 7  ;;  %v1894_v36 = vsub.f32 1.0, %v7930_v35 }
 0x83a   :  { %v1822_v59 = vpop.permute.xlu0 %1821 }
 0x83b   :  { %v1839_v13 = vmul.f32 %v1822_v59, %v8032_v0  ;;  %1863 = vrot.lane.b32.xlu0 %v1840_v51, %s6963_s12  ;;  %v1952_v59 = vmul.f32 %v1937_v29, %v7992_v5 }
 0x83d   :  { %1861 = vrot.lane.b32.xlu2 %v1839_v13, %s6963_s12  ;;  %v1890_v13 = vsub.f32 1.0, %v8009_v25 }
 0x887   :  { %v1854_v20 = vpop.permute.xlu1 %1853  ;;  %v1850_v49 = vpop.permute.xlu2 %1849 }
 0x888   :  { %v1875_v3 = vadd.f32 %v1854_v20, %v7171_v38  ;;  %v1873_v46 = vadd.f32 %v1850_v49, %v7164_v33  ;;  %v1938_v20 = vrot.slane %v7838_v39, 7 }
 0x88a   :  { %6386 = vtanh.f32 %v1875_v3  ;;  %v1892_v3 = vsub.f32 1.0, %v7987_v26 }
 0x88b   :  { %6388 = vtanh.f32 %v1873_v46  ;;  %v1953_v46 = vmul.f32 %v1938_v20, %v8009_v25 }
 0x88f   :  { %v1860_v52 = vpop.permute.xlu1 %1859  ;;  %v1858_v24 = vpop.permute.xlu2 %1857 }
 0x890   :  { %v6387_v4 = vpop.eup %6386  ;;  %v1878_v55 = vadd.f32 %v1860_v52, %v7173_v40  ;;  %v1877_v58 = vadd.f32 %v1858_v24, %v7180_v50 }
 0x891   :  { %v6389_v47 = vpop.eup %6388  ;;  %1909 = vrot.lane.b32.xlu0 %v6387_v4, %s6964_s3  ;;  %v1940_v4 = vrot.slane %v7861_v37, 7 }
 0x892   :  { %6390 = vtanh.f32 %v1878_v55  ;;  %1905 = vrot.lane.b32.xlu1 %v6389_v47, %s6964_s3  ;;  %v1955_v47 = vmul.f32 %v7987_v26, %v1599_v31  ;;  %v1942_v31 = vrot.slane %v7887_v22, 7 }
 0x893   :  { %6392 = vtanh.f32 %v1877_v58  ;;  %v1956_v25 = vmul.f32 %v1940_v4, %v8014_v54 }
 0x897   :  { %v1862_v12 = vpop.permute.xlu2 %1861 }
 0x898   :  { %v6391_v18 = vpop.eup %6390  ;;  %v1879_v60 = vadd.f32 %v1862_v12, %v7182_v53 }
 0x899   :  { %v6393_v6 = vpop.eup %6392  ;;  %1915 = vrot.lane.b32.xlu0 %v6391_v18, %s6964_s3 }
 0x89a   :  { %6394 = vtanh.f32 %v1879_v60  ;;  %1913 = vrot.lane.b32.xlu1 %v6393_v6, %s6964_s3 }
 0x89d   :  { %v1856_v48 = vpop.permute.xlu0 %1855 }
 0x89e   :  { %v1876_v41 = vadd.f32 %v1856_v48, %v7175_v42 }
 0x8a0   :  { %v6395_v32 = vpop.eup %6394  ;;  %6396 = vtanh.f32 %v1876_v41 }
 0x8a2   :  { %1917 = vrot.lane.b32.xlu1 %v6395_v32, %s6964_s3 }
 0x8a5   :  { %v1852_v63 = vpop.permute.xlu0 %1851 }
 0x8a6   :  { %v6397_v2 = vpop.eup %6396  ;;  %v1874_v1 = vadd.f32 %v1852_v63, %v7166_v34 }
 0x8a7   :  { %1911 = vrot.lane.b32.xlu2 %v6397_v2, %s6964_s3 }
 0x8a8   :  { %6398 = vtanh.f32 %v1874_v1  ;;  %v1943_v1 = vrot.slane %v7894_v28, 7 }
 0x8ad   :  { %v1864_v7 = vpop.permute.xlu0 %1863 }
 0x8ae   :  { %v6399_v19 = vpop.eup %6398  ;;  %v1880_v15 = vadd.f32 %v1864_v7, %v7192_v62 }
 0x8af   :  { %1907 = vrot.lane.b32.xlu2 %v6399_v19, %s6964_s3 }
 0x8b0   :  { %6400 = vtanh.f32 %v1880_v15 }
 0x8b6   :  { %v6401_v17 = vpop.eup %6400 }
 0x8b7   :  { %1919 = vrot.lane.b32.xlu2 %v6401_v17, %s6964_s3 }
 0x901   :  { %v1912_v27 = vpop.permute.xlu2 %1911 }
 0x902   :  { %v1932_v5 = vmul.f32 %v1912_v27, %v1892_v3 }
 0x903   :  { %v1910_v16 = vpop.permute.xlu0 %1909 }
 0x904   :  { %v1931_v43 = vmul.f32 %v1910_v16, %v1891_v21  ;;  %v1906_v56 = vpop.permute.xlu1 %1905  ;;  %v8087_v26 = vadd.f32 %v1955_v47, %v1932_v5  ;;  %v1895_v16 = vsub.f32 1.0, %v8032_v0 }
 0x905   :  { %v1929_v61 = vmul.f32 %v1906_v56, %v1889_v57 }
 0x906   :  { %v8057_v51 = vadd.f32 %v7933_v11, %v1931_v43  ;;  %v1893_v11 = vsub.f32 1.0, %v8014_v54  ;;  %v1959_v43 = vmul.f32 %v1943_v1, %v8029_v8 }
 0x907   :  { %v8062_v49 = vadd.f32 %v1952_v59, %v1929_v61  ;;  %v1958_v59 = vmul.f32 %v1942_v31, %v8032_v0 }
 0x908   :  { %v2115_v48 = vrot.slane %v8057_v51, 1  ;;  %v6116_v54 = vrot.slane %v8057_v51, 33 }
 0x909   :  { %v1908_v44 = vpop.permute.xlu2 %1907  ;;  %v2112_v12 = vrot.slane %v8062_v49, 3  ;;  %v6114_v35 = vrot.slane %v8062_v49, 35 }
 0x90a   :  { %v1930_v52 = vmul.f32 %v1908_v44, %v1890_v13 }
 0x90b   :  { %v1916_v24 = vpop.permute.xlu0 %1915 }
 0x90c   :  { %v8069_v55 = vadd.f32 %v1953_v46, %v1930_v52  ;;  %v1934_v58 = vmul.f32 %v1916_v24, %v1894_v36  ;;  %v1914_v39 = vpop.permute.xlu1 %1913 }
 0x90d   :  { %v1933_v18 = vmul.f32 %v1914_v39, %v1893_v11  ;;  %v8128_v39 = vld [vmem:[#allocation8] ss:$0 sm:$0xff] }
 0x90e   :  { %v2113_v60 = vrot.slane %v8069_v55, 2  ;;  %v6115_v37 = vrot.slane %v8069_v55, 34  ;;  %v8080_v6 = vadd.f32 %v7937_v14, %v1934_v58 }
 0x90f   :  { %v8083_v41 = vadd.f32 %v1956_v25, %v1933_v18 }
 0x910   :  { %v2114_v32 = vsel %vm651_vm3, %v2113_v60, %v2112_v12  ;;  %v4595_v63 = vsel %vm651_vm3, %v6115_v37, %v6114_v35  ;;  %v2120_v15 = vrot.slane %v8080_v6, 6  ;;  %v6119_v21 = vrot.slane %v8080_v6, 30 }
 0x911   :  { %v2118_v2 = vrot.slane %v8083_v41, 7  ;;  %v6118_v14 = vrot.slane %v8083_v41, 31  ;;  %v1920_v7 = vpop.permute.xlu2 %1919  ;;  %v2116_v19 = vsel %vm654_vm4, %v2115_v48, %v2114_v32  ;;  %v4597_v27 = vsel %vm654_vm4, %v6116_v54, %v4595_v63 }
 0x912   :  { %v1936_v22 = vmul.f32 %v1920_v7, %v1896_v23  ;;  %v2117_v17 = vsel %vm657_vm5, %v8087_v26, %v2116_v19  ;;  %v4599_v28 = vsel %vm657_vm5, %v8087_v26, %v4597_v27 }
 0x913   :  { %v2119_v57 = vsel %vm660_vm6, %v2118_v2, %v2117_v17  ;;  %v4601_v61 = vsel %vm660_vm6, %v6118_v14, %v4599_v28 }
 0x914   :  { %v1918_v56 = vpop.permute.xlu1 %1917  ;;  %v2121_v29 = vsel %vm663_vm7, %v2120_v15, %v2119_v57  ;;  %v4603_v20 = vsel %vm663_vm7, %v6119_v21, %v4601_v61  ;;  %v8112_v44 = vadd.f32 %v1959_v43, %v1936_v22 }
 0x915   :  { %v1935_v13 = vmul.f32 %v1918_v56, %v1895_v16 }
 0x916   :  { %v2124_v8 = vrot.slane %v8112_v44, 4  ;;  %v6076_v36 = vrot.slane %v8112_v44, 28 }
 0x917   :  { %v8114_v3 = vadd.f32 %v1958_v59, %v1935_v13 }
 0x919   :  { %v2122_v46 = vrot.slane %v8114_v3, 5  ;;  %v6120_v52 = vrot.slane %v8114_v3, 29 }
 0x91b   :  { %v2123_v24 = vsel %vm666_vm8, %v2122_v46, %v2121_v29  ;;  %v4605_v11 = vsel %vm666_vm8, %v6120_v52, %v4603_v20 }
 0x91c   :  { %v2125_v0 = vsel %vm9351_vm0, %v2124_v8, %v2123_v24  ;;  %v8124_v4 = vsel %vm9352_vm9, %v6076_v36, %v4605_v11  ;;  %v2455_v24 = vrot.slane %v8069_v55, 7  ;;  %v2458_v11 = vrot.slane %v8080_v6, 7 }
 0x91d   :  { %2126 = vrot.lane.b32.xlu0 %v2125_v0, %s6964_s3 }
 0x98f   :  { %v2127_v5 = vpop.permute.xlu0 %2126 }
 0x990   :  { %5889 = vmatmul.msk.f32.vlgmr.msrb.gmra.mxu2 %vm9353_vm12, %v2127_v5 }
 0xa13   :  { %v2147_v58 = vpop.f32.mrf.mxu2 }
 0xa14   :  { %v8131_v47 = vadd.f32 %v8128_v39, %v2147_v58 }
 0xa16   :  { %v2153_v12 = vrot.slane %v8131_v47, 6  ;;  %v2152_v25 = vrot.slane %v8131_v47, 5  ;;  %v2151_v18 = vrot.slane %v8131_v47, 4  ;;  %v2155_v35 = vrot.slane %v8131_v47, 1 }
 0xa17   :  { %v2154_v31 = vrot.slane %v8131_v47, 7  ;;  %v2157_v1 = vrot.slane %v8131_v47, 3  ;;  %v2156_v7 = vrot.slane %v8131_v47, 2  ;;  %v2170_v55 = vadd.f32 %v8131_v47, %v7180_v50 }
 0xa18   :  { %2330 = vrot.lane.b32.xlu0 %v2153_v12, %s6963_s12  ;;  %2328 = vrot.lane.b32.xlu2 %v2152_v25, %s6963_s12  ;;  %v2167_v60 = vadd.f32 %v2152_v25, %v7166_v34  ;;  %v2171_v37 = vadd.f32 %v2155_v35, %v7173_v40 }
 0xa19   :  { %2326 = vrot.lane.b32.xlu1 %v2151_v18, %s6963_s12  ;;  %v2173_v58 = vadd.f32 %v2157_v1, %v7192_v62  ;;  %v2169_v6 = vadd.f32 %v2154_v31, %v7175_v42 }
 0xa1a   :  { %v5891_v48 = vmul.f32 -1.442695, %v2167_v60  ;;  %v5895_v23 = vmul.f32 -1.442695, %v2171_v37  ;;  %v2166_v60 = vadd.f32 %v2151_v18, %v7164_v33 }
 0xa1b   :  { %v5897_v25 = vmul.f32 -1.442695, %v2173_v58 }
 0xa1c   :  { %6402 = vpow2.f32 %v5891_v48  ;;  %v5890_v48 = vmul.f32 -1.442695, %v2166_v60 }
 0xa1d   :  { %6404 = vpow2.f32 %v5895_v23 }
 0xa20   :  { %2334 = vrot.lane.b32.xlu0 %v8131_v47, %s6963_s12  ;;  %2336 = vrot.lane.b32.xlu2 %v2155_v35, %s6963_s12  ;;  %v2168_v35 = vadd.f32 %v2153_v12, %v7171_v38  ;;  %v2172_v12 = vadd.f32 %v2156_v7, %v7182_v53 }
 0xa21   :  { %2332 = vrot.lane.b32.xlu1 %v2154_v31, %s6963_s12 }
 0xa22   :  { %v6403_v54 = vpop.eup %6402  ;;  %v5892_v37 = vmul.f32 -1.442695, %v2168_v35 }
 0xa23   :  { %v2199_v32 = vadd.f32 1.0, %v6403_v54  ;;  %v6405_v63 = vpop.eup %6404 }
 0xa24   :  { %v2203_v14 = vadd.f32 1.0, %v6405_v63  ;;  %v5893_v63 = vmul.f32 -1.442695, %v2169_v6 }
 0xa25   :  { %6406 = vrcp.f32 %v2199_v32  ;;  %v2232_v43 = vand.u32 2147483648, %v2199_v32  ;;  %vm2226_vm15 = vweird.f32 %v2199_v32  ;;  %v2230_v29 = vand.u32 2147483647, %v2199_v32 }
 0xa26   :  { %6408 = vrcp.f32 %v2203_v14  ;;  %v2292_v61 = vand.u32 2147483648, %v2203_v14  ;;  %vm2286_vm2 = vweird.f32 %v2203_v14  ;;  %v2290_v59 = vand.u32 2147483647, %v2203_v14 }
 0xa27   :  { %v2233_v20 = vor.u32 1.1754944e-38, %v2232_v43  ;;  %vm2231_vm11 = vcmp.eq.f32.partialorder %v2230_v29, 8.507059e+37  ;;  %6410 = vpow2.f32 %v5897_v25 }
 0xa28   :  { %2340 = vrot.lane.b32.xlu2 %v2157_v1, %s6963_s12  ;;  %v2293_v52 = vor.u32 1.1754944e-38, %v2292_v61  ;;  %vm2291_vm0 = vcmp.eq.f32.partialorder %v2290_v59, 8.507059e+37  ;;  %6412 = vpow2.f32 %v5892_v37 }
 0xa29   :  { %2338 = vrot.lane.b32.xlu1 %v2156_v7, %s6963_s12  ;;  %6414 = vpow2.f32 %v5890_v48 }
 0xa2b   :  { %v6407_v19 = vpop.eup %6406 }
 0xa2c   :  { %v2222_v15 = vmul.f32 %v6407_v19, %v2199_v32  ;;  %v6409_v22 = vpop.eup %6408  ;;  %vm2227_vm13 = vweird.f32 %v6407_v19  ;;  %v5894_v32 = vmul.f32 -1.442695, %v2170_v55 }
 0xa2d   :  { %v2282_v27 = vmul.f32 %v6409_v22, %v2203_v14  ;;  %vm2287_vm14 = vweird.f32 %v6409_v22  ;;  %vm2228_vm1 = vmor %vm2226_vm15, %vm2227_vm13  ;;  %v6411_v23 = vpop.eup %6410 }
 0xa2e   :  { %v2223_v17 = vsub.f32 1.0, %v2222_v15  ;;  %vm2288_vm10 = vmor %vm2286_vm2, %vm2287_vm14  ;;  %v2205_v54 = vadd.f32 1.0, %v6411_v23  ;;  %v6413_v14 = vpop.eup %6412 }
 0xa2f   :  { %v2283_v21 = vsub.f32 1.0, %v2282_v27  ;;  %v6415_v1 = vpop.eup %6414  ;;  %v8170_v18 = vadd.f32 1.0, %v6413_v14 }
 0xa30   :  { %v2224_v16 = vmul.f32 %v6407_v19, %v2223_v17  ;;  %6416 = vrcp.f32 %v2205_v54  ;;  %v2322_v58 = vand.u32 2147483648, %v2205_v54  ;;  %vm2316_vm12 = vweird.f32 %v2205_v54 }
 0xa31   :  { %v2284_v57 = vmul.f32 %v6409_v22, %v2283_v21  ;;  %6418 = vpow2.f32 %v5894_v32  ;;  %v2320_v60 = vand.u32 2147483647, %v2205_v54  ;;  %vm2241_vm2 = vweird.f32 %v8170_v18 }
 0xa32   :  { %v2225_v28 = vadd.f32 %v6407_v19, %v2224_v16  ;;  %6420 = vpow2.f32 %v5893_v63  ;;  %v2323_v55 = vor.u32 1.1754944e-38, %v2322_v58 }
 0xa33   :  { %v2285_v56 = vadd.f32 %v6409_v22, %v2284_v57  ;;  %6422 = vrcp.f32 %v8170_v18  ;;  %vm2321_vm14 = vcmp.eq.f32.partialorder %v2320_v60, 8.507059e+37 }
 0xa34   :  { %v2229_v13 = vsel %vm2228_vm1, %v6407_v19, %v2225_v28  ;;  %v8172_v19 = vadd.f32 1.0, %v6415_v1 }
 0xa35   :  { %v2289_v46 = vsel %vm2288_vm10, %v6409_v22, %v2285_v56  ;;  %v8151_v8 = vsel %vm2231_vm11, %v2233_v20, %v2229_v13  ;;  %v5896_v22 = vmul.f32 -1.442695, %v2172_v12 }
 0xa36   :  { %v8153_v36 = vsel %vm2291_vm0, %v2293_v52, %v2289_v46  ;;  %v8158_v0 = vmul.f32 %v2455_v24, %v8151_v8  ;;  %v6417_v15 = vpop.eup %6416  ;;  %6424 = vrcp.f32 %v8172_v19  ;;  %vm2211_vm11 = vweird.f32 %v8172_v19 }
 0xa37   :  { %v8161_v5 = vmul.f32 %v2458_v11, %v8153_v36  ;;  %v6419_v47 = vpop.eup %6418  ;;  %v2312_v31 = vmul.f32 %v6417_v15, %v2205_v54  ;;  %6426 = vpow2.f32 %v5896_v22  ;;  %vm2317_vm9 = vweird.f32 %v6417_v15 }
 0xa38   :  { %v6421_v17 = vpop.eup %6420  ;;  %v8176_v21 = vadd.f32 1.0, %v6419_v47  ;;  %vm2318_vm13 = vmor %vm2316_vm12, %vm2317_vm9 }
 0xa39   :  { %v8178_v7 = vadd.f32 1.0, %v6421_v17  ;;  %v2313_v57 = vsub.f32 1.0, %v2312_v31  ;;  %v6423_v28 = vpop.eup %6422  ;;  %v2245_v17 = vand.u32 2147483647, %v8170_v18 }
 0xa3a   :  { %6428 = vrcp.f32 %v8176_v21  ;;  %v2237_v61 = vmul.f32 %v6423_v28, %v8170_v18  ;;  %vm2242_vm15 = vweird.f32 %v6423_v28 }
 0xa3b   :  { %6430 = vrcp.f32 %v8178_v7  ;;  %v2314_v29 = vmul.f32 %v6417_v15, %v2313_v57  ;;  %vm2243_vm10 = vmor %vm2241_vm2, %vm2242_vm15  ;;  %vm2246_vm9 = vcmp.eq.f32.partialorder %v2245_v17, 8.507059e+37  ;;  %vm2271_vm15 = vweird.f32 %v8176_v21 }
 0xa3c   :  { %v8181_v43 = vpop.eup %6424  ;;  %v2238_v24 = vsub.f32 1.0, %v2237_v61  ;;  %vm2256_vm2 = vweird.f32 %v8178_v7 }
 0xa3d   :  { %v6427_v56 = vpop.eup %6426  ;;  %v2207_v59 = vmul.f32 %v8181_v43, %v8172_v19  ;;  %v2315_v52 = vadd.f32 %v6417_v15, %v2314_v29  ;;  %vm2212_vm1 = vweird.f32 %v8181_v43 }
 0xa3e   :  { %v8189_v13 = vadd.f32 1.0, %v6427_v56  ;;  %v2239_v48 = vmul.f32 %v6423_v28, %v2238_v24  ;;  %vm2213_vm0 = vmor %vm2211_vm11, %vm2212_vm1 }
 0xa3f   :  { %v2208_v25 = vsub.f32 1.0, %v2207_v59  ;;  %v2319_v37 = vsel %vm2318_vm13, %v6417_v15, %v2315_v52  ;;  %v2247_v15 = vand.u32 2147483648, %v8170_v18 }
 0xa40   :  { %v8192_v11 = vpop.eup %6428  ;;  %6432 = vrcp.f32 %v8189_v13  ;;  %v8203_v63 = vsel %vm2321_vm14, %v2323_v55, %v2319_v37  ;;  %v2240_v1 = vadd.f32 %v6423_v28, %v2239_v48  ;;  %v2275_v48 = vand.u32 2147483647, %v8176_v21 }
 0xa41   :  { %v8194_v35 = vpop.eup %6430  ;;  %v2267_v23 = vmul.f32 %v8192_v11, %v8176_v21  ;;  %v2209_v6 = vmul.f32 %v8181_v43, %v2208_v25  ;;  %v2248_v29 = vor.u32 1.1754944e-38, %v2247_v15  ;;  %vm2272_vm13 = vweird.f32 %v8192_v11 }
 0xa42   :  { %v2252_v32 = vmul.f32 %v8194_v35, %v8178_v7  ;;  %v2244_v57 = vsel %vm2243_vm10, %v6423_v28, %v2240_v1  ;;  %vm2257_vm14 = vweird.f32 %v8194_v35  ;;  %vm2273_vm1 = vmor %vm2271_vm15, %vm2272_vm13  ;;  %v2260_v55 = vand.u32 2147483647, %v8178_v7 }
 0xa43   :  { %v2268_v12 = vsub.f32 1.0, %v2267_v23  ;;  %v2210_v22 = vadd.f32 %v8181_v43, %v2209_v6  ;;  %v8222_v52 = vsel %vm2246_vm9, %v2248_v29, %v2244_v57  ;;  %v2262_v23 = vand.u32 2147483648, %v8178_v7  ;;  %vm2258_vm10 = vmor %vm2256_vm2, %vm2257_vm14 }
 0xa44   :  { %v2253_v47 = vsub.f32 1.0, %v2252_v32  ;;  %vm2276_vm11 = vcmp.eq.f32.partialorder %v2275_v48, 8.507059e+37  ;;  %v2305_v17 = vand.u32 2147483647, %v8189_v13  ;;  %vm9354_vm15 = vcmask 1047559  }
 0xa45   :  { %v2269_v56 = vmul.f32 %v8192_v11, %v2268_v12  ;;  %v2214_v61 = vsel %vm2213_vm0, %v8181_v43, %v2210_v22  ;;  %v2263_v1 = vor.u32 1.1754944e-38, %v2262_v23  ;;  %vm2261_vm0 = vcmp.eq.f32.partialorder %v2260_v55, 8.507059e+37 }
 0xa46   :  { %v8209_v31 = vpop.eup %6432  ;;  %v2254_v59 = vmul.f32 %v8194_v35, %v2253_v47  ;;  %vm2306_vm14 = vcmp.eq.f32.partialorder %v2305_v17, 8.507059e+37  ;;  %v2454_v17 = vrot.slane %v8062_v49, 7  ;;  %vm9356_vm2 = vcmask 261120  }
 0xa47   :  { %v2270_v43 = vadd.f32 %v8192_v11, %v2269_v56  ;;  %vm2302_vm9 = vweird.f32 %v8209_v31 }
 0xa48   :  { %v2255_v60 = vadd.f32 %v8194_v35, %v2254_v59 }
 0xa49   :  { %v2274_v6 = vsel %vm2273_vm1, %v8192_v11, %v2270_v43  ;;  %vm9355_vm1 = vmmov %vm9354_vm15 }
 0xa72   :  { %v2329_v27 = vpop.permute.xlu2 %2328 }
 0xa73   :  { %v2351_v16 = vmul.f32 %v2329_v27, %v8151_v8  ;;  %v2217_v27 = vand.u32 2147483648, %v8172_v19 }
 0xa75   :  { %2368 = vrot.lane.b32.xlu1 %v2351_v16, %s6963_s12  ;;  %v2215_v16 = vand.u32 2147483647, %v8172_v19  ;;  %v2218_v18 = vor.u32 1.1754944e-38, %v2217_v27  ;;  %v2277_v19 = vand.u32 2147483648, %v8176_v21 }
 0xa77   :  { %vm2216_vm12 = vcmp.eq.f32.partialorder %v2215_v16, 8.507059e+37  ;;  %v2278_v32 = vor.u32 1.1754944e-38, %v2277_v19 }
 0xa78   :  { %v8226_v58 = vsel %vm2216_vm12, %v2218_v18, %v2214_v61  ;;  %vm2301_vm12 = vweird.f32 %v8189_v13 }
 0xa79   :  { %v8243_v21 = vsel %vm2276_vm11, %v2278_v32, %v2274_v6  ;;  %vm2303_vm13 = vmor %vm2301_vm12, %vm2302_vm9 }
 0xa7a   :  { %v2337_v20 = vpop.permute.xlu2 %2336 }
 0xa7b   :  { %v2355_v46 = vmul.f32 %v2337_v20, %v8153_v36  ;;  %v2297_v20 = vmul.f32 %v8209_v31, %v8189_v13 }
 0xa7d   :  { %2376 = vrot.lane.b32.xlu1 %v2355_v46, %s6963_s12  ;;  %v2298_v37 = vsub.f32 1.0, %v2297_v20 }
 0xa82   :  { %v2341_v14 = vpop.permute.xlu2 %2340 }
 0xa83   :  { %v2357_v54 = vmul.f32 %v2341_v14, %v8203_v63  ;;  %v2259_v14 = vsel %vm2258_vm10, %v8194_v35, %v2255_v60  ;;  %v2307_v35 = vand.u32 2147483648, %v8189_v13 }
 0xa84   :  { %v8246_v22 = vsel %vm2261_vm0, %v2263_v1, %v2259_v14 }
 0xa85   :  { %2380 = vrot.lane.b32.xlu1 %v2357_v54, %s6963_s12  ;;  %v2299_v54 = vmul.f32 %v8209_v31, %v2298_v37  ;;  %v2308_v16 = vor.u32 1.1754944e-38, %v2307_v35  ;;  %v2406_v35 = vsub.f32 1.0, %v8226_v58 }
 0xa87   :  { %v2300_v11 = vadd.f32 %v8209_v31, %v2299_v54 }
 0xa89   :  { %v2304_v27 = vsel %vm2303_vm13, %v8209_v31, %v2300_v11 }
 0xa8a   :  { %v2331_v46 = vpop.permute.xlu0 %2330  ;;  %v8257_v57 = vsel %vm2306_vm14, %v2308_v16, %v2304_v27  ;;  %v2407_v27 = vsub.f32 1.0, %v8151_v8 }
 0xa8b   :  { %v2352_v28 = vmul.f32 %v2331_v46, %v8222_v52  ;;  %v2327_v24 = vpop.permute.xlu1 %2326  ;;  %v2412_v41 = vsub.f32 1.0, %v8257_v57 }
 0xa8c   :  { %v2350_v25 = vmul.f32 %v2327_v24, %v8226_v58 }
 0xa8d   :  { %2370 = vrot.lane.b32.xlu2 %v2352_v28, %s6963_s12 }
 0xa8e   :  { %2366 = vrot.lane.b32.xlu0 %v2350_v25, %s6963_s12 }
 0xa92   :  { %v2335_v12 = vpop.permute.xlu0 %2334 }
 0xa93   :  { %v2354_v15 = vmul.f32 %v2335_v12, %v8243_v21  ;;  %v2333_v47 = vpop.permute.xlu1 %2332 }
 0xa94   :  { %v2353_v7 = vmul.f32 %v2333_v47, %v8246_v22  ;;  %v2408_v47 = vsub.f32 1.0, %v8222_v52 }
 0xa95   :  { %2374 = vrot.lane.b32.xlu2 %v2354_v15, %s6963_s12 }
 0xa96   :  { %2372 = vrot.lane.b32.xlu0 %v2353_v7, %s6963_s12  ;;  %v2456_v7 = vrot.slane %v8057_v51, 7 }
 0xa98   :  { %v2471_v16 = vmul.f32 %v2456_v7, %v8222_v52 }
 0xa9b   :  { %v2339_v56 = vpop.permute.xlu1 %2338 }
 0xa9c   :  { %v2356_v29 = vmul.f32 %v2339_v56, %v8257_v57 }
 0xa9e   :  { %2378 = vrot.lane.b32.xlu0 %v2356_v29, %s6963_s12 }
 0xae7   :  { %v2371_v61 = vpop.permute.xlu2 %2370  ;;  %v2369_v59 = vpop.permute.xlu1 %2368 }
 0xae8   :  { %v2392_v20 = vadd.f32 %v2371_v61, %v7171_v38  ;;  %v2391_v18 = vadd.f32 %v2369_v59, %v7166_v34  ;;  %v2469_v59 = vmul.f32 %v2454_v17, %v8226_v58 }
 0xaea   :  { %6434 = vtanh.f32 %v2392_v20 }
 0xaeb   :  { %6436 = vtanh.f32 %v2391_v18 }
 0xaef   :  { %v2375_v13 = vpop.permute.xlu2 %2374  ;;  %v2377_v46 = vpop.permute.xlu1 %2376 }
 0xaf0   :  { %v6435_v31 = vpop.eup %6434  ;;  %v2394_v19 = vadd.f32 %v2375_v13, %v7180_v50  ;;  %v2395_v28 = vadd.f32 %v2377_v46, %v7173_v40 }
 0xaf1   :  { %v6437_v24 = vpop.eup %6436  ;;  %2426 = vrot.lane.b32.xlu1 %v6435_v31, %s6964_s3 }
 0xaf2   :  { %6438 = vtanh.f32 %v2394_v19  ;;  %2424 = vrot.lane.b32.xlu0 %v6437_v24, %s6964_s3 }
 0xaf3   :  { %6440 = vtanh.f32 %v2395_v28  ;;  %v2457_v28 = vrot.slane %v8087_v26, 7 }
 0xaf7   :  { %v2381_v43 = vpop.permute.xlu1 %2380 }
 0xaf8   :  { %v6439_v25 = vpop.eup %6438  ;;  %v2397_v60 = vadd.f32 %v2381_v43, %v7192_v62 }
 0xaf9   :  { %v6441_v37 = vpop.eup %6440  ;;  %2430 = vrot.lane.b32.xlu1 %v6439_v25, %s6964_s3  ;;  %v2409_v25 = vsub.f32 1.0, %v8246_v22 }
 0xafa   :  { %6442 = vtanh.f32 %v2397_v60  ;;  %2432 = vrot.lane.b32.xlu0 %v6441_v37, %s6964_s3  ;;  %v2411_v60 = vsub.f32 1.0, %v8153_v36  ;;  %v2410_v37 = vsub.f32 1.0, %v8243_v21  ;;  %v2473_v36 = vmul.f32 %v8243_v21, %v2118_v2 }
 0xb00   :  { %v6443_v48 = vpop.eup %6442  ;;  %v2367_v23 = vpop.permute.xlu0 %2366 }
 0xb01   :  { %v2390_v55 = vadd.f32 %v2367_v23, %v7164_v33 }
 0xb02   :  { %2436 = vrot.lane.b32.xlu0 %v6443_v48, %s6964_s3 }
 0xb03   :  { %6444 = vtanh.f32 %v2390_v55 }
 0xb08   :  { %v2373_v6 = vpop.permute.xlu0 %2372 }
 0xb09   :  { %v6445_v32 = vpop.eup %6444  ;;  %v2393_v14 = vadd.f32 %v2373_v6, %v7175_v42 }
 0xb0a   :  { %2422 = vrot.lane.b32.xlu2 %v6445_v32, %s6964_s3  ;;  %v2472_v32 = vmul.f32 %v2457_v28, %v8246_v22  ;;  %v2459_v22 = vrot.slane %v8114_v3, 7 }
 0xb0b   :  { %6446 = vtanh.f32 %v2393_v14 }
 0xb0c   :  { %v2475_v3 = vmul.f32 %v2459_v22, %v8257_v57 }
 0xb10   :  { %v2379_v54 = vpop.permute.xlu0 %2378 }
 0xb11   :  { %v6447_v1 = vpop.eup %6446  ;;  %v2396_v12 = vadd.f32 %v2379_v54, %v7182_v53 }
 0xb12   :  { %2428 = vrot.lane.b32.xlu2 %v6447_v1, %s6964_s3 }
 0xb13   :  { %6448 = vtanh.f32 %v2396_v12 }
 0xb19   :  { %v6449_v15 = vpop.eup %6448 }
 0xb1a   :  { %2434 = vrot.lane.b32.xlu2 %v6449_v15, %s6964_s3 }
 0xb63   :  { %v2427_v11 = vpop.permute.xlu1 %2426 }
 0xb64   :  { %v2448_v56 = vmul.f32 %v2427_v11, %v2408_v47  ;;  %v2423_v29 = vpop.permute.xlu2 %2422  ;;  %v2425_v61 = vpop.permute.xlu0 %2424  ;;  %v2413_v11 = vsub.f32 1.0, %v8203_v63 }
 0xb65   :  { %v2446_v20 = vmul.f32 %v2423_v29, %v2406_v35  ;;  %v2447_v18 = vmul.f32 %v2425_v61, %v2407_v27  ;;  %v2460_v35 = vrot.slane %v8112_v44, 7 }
 0xb66   :  { %v8284_v13 = vadd.f32 %v2471_v16, %v2448_v56 }
 0xb67   :  { %v8286_v46 = vadd.f32 %v2469_v59, %v2446_v20  ;;  %v8289_v51 = vadd.f32 %v8158_v0, %v2447_v18  ;;  %v2476_v27 = vmul.f32 %v2460_v35, %v8203_v63 }
 0xb68   :  { %v2664_v49 = vrot.slane %v8284_v13, 2  ;;  %v6123_v8 = vrot.slane %v8284_v13, 26 }
 0xb69   :  { %v2661_v52 = vrot.slane %v8286_v46, 4  ;;  %v6121_v31 = vrot.slane %v8286_v46, 28  ;;  %v2662_v19 = vrot.slane %v8289_v51, 3  ;;  %v6122_v58 = vrot.slane %v8289_v51, 27 }
 0xb6b   :  { %v2663_v24 = vsel %vm651_vm3, %v2662_v19, %v2661_v52  ;;  %v4609_v43 = vsel %vm651_vm3, %v6122_v58, %v6121_v31  ;;  %v2431_v0 = vpop.permute.xlu1 %2430 }
 0xb6c   :  { %v2429_v48 = vpop.permute.xlu2 %2428  ;;  %v4611_v23 = vsel %vm654_vm4, %v6123_v8, %v4609_v43  ;;  %v2433_v55 = vpop.permute.xlu0 %2432  ;;  %v2665_v6 = vsel %vm654_vm4, %v2664_v49, %v2663_v24  ;;  %v2450_v54 = vmul.f32 %v2431_v0, %v2410_v37 }
 0xb6d   :  { %v2449_v26 = vmul.f32 %v2429_v48, %v2409_v25  ;;  %v2451_v14 = vmul.f32 %v2433_v55, %v2411_v60 }
 0xb6e   :  { %v8316_v7 = vadd.f32 %v2473_v36, %v2450_v54 }
 0xb6f   :  { %v8306_v1 = vadd.f32 %v2472_v32, %v2449_v26  ;;  %v8309_v12 = vadd.f32 %v8161_v5, %v2451_v14 }
 0xb71   :  { %v2666_v15 = vrot.slane %v8306_v1, 1  ;;  %v6124_v47 = vrot.slane %v8306_v1, 25  ;;  %v6126_v5 = vrot.slane %v8309_v12, 23  ;;  %v2669_v49 = vrot.slane %v8309_v12, 7 }
 0xb73   :  { %v4613_v17 = vsel %vm657_vm5, %v6124_v47, %v4611_v23  ;;  %v2667_v2 = vsel %vm657_vm5, %v2666_v15, %v2665_v6 }
 0xb74   :  { %v2435_v21 = vpop.permute.xlu2 %2434  ;;  %v2437_v16 = vpop.permute.xlu0 %2436  ;;  %v4615_v56 = vsel %vm660_vm6, %v8316_v7, %v4613_v17  ;;  %v2668_v18 = vsel %vm660_vm6, %v8316_v7, %v2667_v2 }
 0xb75   :  { %v2452_v29 = vmul.f32 %v2435_v21, %v2412_v41  ;;  %v2453_v61 = vmul.f32 %v2437_v16, %v2413_v11  ;;  %v4617_v44 = vsel %vm663_vm7, %v6126_v5, %v4615_v56  ;;  %v2670_v31 = vsel %vm663_vm7, %v2669_v49, %v2668_v18 }
 0xb77   :  { %v8330_v59 = vadd.f32 %v2475_v3, %v2452_v29  ;;  %v8332_v20 = vadd.f32 %v2476_v27, %v2453_v61 }
 0xb79   :  { %v2671_v63 = vrot.slane %v8330_v59, 6  ;;  %v6127_v8 = vrot.slane %v8330_v59, 22  ;;  %v6084_v52 = vrot.slane %v8332_v20, 21  ;;  %v2673_v57 = vrot.slane %v8332_v20, 5 }
 0xb7b   :  { %v2672_v19 = vsel %vm666_vm8, %v2671_v63, %v2670_v31  ;;  %v4619_v58 = vsel %vm666_vm8, %v6127_v8, %v4617_v44  ;;  %v3003_v31 = vrot.slane %v8286_v46, 7 }
 0xb7c   :  { %v2674_v28 = vsel %vm9354_vm15, %v2673_v57, %v2672_v19  ;;  %v8348_v24 = vsel %vm9355_vm1, %v6084_v52, %v4619_v58 }
 0xb7d   :  { %2675 = vrot.lane.b32.xlu1 %v2674_v28, %s6964_s3  ;;  %v3006_v28 = vrot.slane %v8306_v1, 7 }
 0xbef   :  { %v2676_v43 = vpop.permute.xlu1 %2675 }
 0xbf0   :  { %5930 = vmatmul.msk.f32.vlgmr.msra.gmra.mxu3 %vm9356_vm2, %v2676_v43 }
 0xc73   :  { %v2696_v0 = vpop.f32.mrf.mxu3 }
 0xc74   :  { %v8353_v25 = vadd.f32 %v8128_v39, %v2696_v0 }
 0xc76   :  { %v2702_v60 = vrot.slane %v8353_v25, 5  ;;  %v2701_v37 = vrot.slane %v8353_v25, 4  ;;  %v2700_v48 = vrot.slane %v8353_v25, 3  ;;  %v2703_v23 = vrot.slane %v8353_v25, 6 }
 0xc77   :  { %v2705_v26 = vrot.slane %v8353_v25, 1  ;;  %v2704_v14 = vrot.slane %v8353_v25, 7  ;;  %v2706_v15 = vrot.slane %v8353_v25, 2  ;;  %v2720_v0 = vadd.f32 %v8353_v25, %v7173_v40 }
 0xc78   :  { %2879 = vrot.lane.b32.xlu1 %v2702_v60, %s6963_s12  ;;  %2877 = vrot.lane.b32.xlu0 %v2701_v37, %s6963_s12  ;;  %v2715_v55 = vadd.f32 %v2700_v48, %v7164_v33  ;;  %v2718_v6 = vadd.f32 %v2703_v23, %v7175_v42 }
 0xc79   :  { %2875 = vrot.lane.b32.xlu2 %v2700_v48, %s6963_s12  ;;  %v5936_v48 = vmul.f32 -1.442695, %v2720_v0  ;;  %v2719_v1 = vadd.f32 %v2704_v14, %v7180_v50 }
 0xc7a   :  { %v5931_v39 = vmul.f32 -1.442695, %v2715_v55  ;;  %v5934_v32 = vmul.f32 -1.442695, %v2718_v6  ;;  %v2716_v55 = vadd.f32 %v2701_v37, %v7166_v34  ;;  %v2722_v37 = vadd.f32 %v2706_v15, %v7192_v62 }
 0xc7c   :  { %6450 = vpow2.f32 %v5931_v39  ;;  %v5932_v6 = vmul.f32 -1.442695, %v2716_v55 }
 0xc7d   :  { %6452 = vpow2.f32 %v5934_v32  ;;  %v2721_v32 = vadd.f32 %v2705_v26, %v7182_v53 }
 0xc80   :  { %2887 = vrot.lane.b32.xlu1 %v2705_v26, %s6963_s12  ;;  %2883 = vrot.lane.b32.xlu0 %v2704_v14, %s6963_s12  ;;  %v5938_v26 = vmul.f32 -1.442695, %v2722_v37 }
 0xc81   :  { %2881 = vrot.lane.b32.xlu2 %v2703_v23, %s6963_s12  ;;  %v2717_v23 = vadd.f32 %v2702_v60, %v7171_v38 }
 0xc82   :  { %v6451_v54 = vpop.eup %6450 }
 0xc83   :  { %v2747_v36 = vadd.f32 1.0, %v6451_v54  ;;  %v6453_v47 = vpop.eup %6452  ;;  %v5933_v46 = vmul.f32 -1.442695, %v2717_v23 }
 0xc84   :  { %v2750_v22 = vadd.f32 1.0, %v6453_v47  ;;  %v5935_v47 = vmul.f32 -1.442695, %v2719_v1 }
 0xc85   :  { %6454 = vrcp.f32 %v2747_v36  ;;  %v2766_v56 = vand.u32 2147483648, %v2747_v36  ;;  %vm2760_vm11 = vweird.f32 %v2747_v36  ;;  %v2764_v3 = vand.u32 2147483647, %v2747_v36 }
 0xc86   :  { %6456 = vrcp.f32 %v2750_v22  ;;  %v2811_v44 = vand.u32 2147483648, %v2750_v22  ;;  %vm2805_vm12 = vweird.f32 %v2750_v22  ;;  %v2809_v63 = vand.u32 2147483647, %v2750_v22 }
 0xc87   :  { %v2767_v18 = vor.u32 1.1754944e-38, %v2766_v56  ;;  %vm2765_vm13 = vcmp.eq.f32.partialorder %v2764_v3, 8.507059e+37  ;;  %6458 = vpow2.f32 %v5936_v48 }
 0xc88   :  { %2889 = vrot.lane.b32.xlu0 %v2706_v15, %s6963_s12  ;;  %v2812_v57 = vor.u32 1.1754944e-38, %v2811_v44  ;;  %vm2810_vm15 = vcmp.eq.f32.partialorder %v2809_v63, 8.507059e+37  ;;  %6460 = vpow2.f32 %v5933_v46 }
 0xc89   :  { %2885 = vrot.lane.b32.xlu2 %v8353_v25, %s6963_s12  ;;  %6462 = vpow2.f32 %v5932_v6 }
 0xc8b   :  { %v6455_v11 = vpop.eup %6454 }
 0xc8c   :  { %v2756_v35 = vmul.f32 %v6455_v11, %v2747_v36  ;;  %v6457_v17 = vpop.eup %6456  ;;  %vm2761_vm10 = vweird.f32 %v6455_v11  ;;  %v5937_v36 = vmul.f32 -1.442695, %v2721_v32 }
 0xc8d   :  { %v2801_v41 = vmul.f32 %v6457_v17, %v2750_v22  ;;  %vm2762_vm0 = vmor %vm2760_vm11, %vm2761_vm10  ;;  %vm2806_vm9 = vweird.f32 %v6457_v17  ;;  %v6459_v39 = vpop.eup %6458 }
 0xc8e   :  { %v2757_v5 = vsub.f32 1.0, %v2756_v35  ;;  %vm2807_vm14 = vmor %vm2805_vm12, %vm2806_vm9  ;;  %v2752_v54 = vadd.f32 1.0, %v6459_v39  ;;  %v6461_v22 = vpop.eup %6460 }
 0xc8f   :  { %v2802_v21 = vsub.f32 1.0, %v2801_v41  ;;  %v6463_v25 = vpop.eup %6462  ;;  %v8391_v60 = vadd.f32 1.0, %v6461_v22 }
 0xc90   :  { %v2758_v2 = vmul.f32 %v6455_v11, %v2757_v5  ;;  %6464 = vrcp.f32 %v2752_v54  ;;  %v2841_v23 = vand.u32 2147483648, %v2752_v54  ;;  %vm2835_vm2 = vweird.f32 %v2752_v54 }
 0xc91   :  { %v2803_v16 = vmul.f32 %v6457_v17, %v2802_v21  ;;  %6466 = vpow2.f32 %v5937_v36  ;;  %v2839_v55 = vand.u32 2147483647, %v2752_v54  ;;  %vm2790_vm12 = vweird.f32 %v8391_v60 }
 0xc92   :  { %v2759_v27 = vadd.f32 %v6455_v11, %v2758_v2  ;;  %6468 = vpow2.f32 %v5935_v47  ;;  %v2842_v36 = vor.u32 1.1754944e-38, %v2841_v23 }
 0xc93   :  { %v2804_v29 = vadd.f32 %v6457_v17, %v2803_v16  ;;  %6470 = vrcp.f32 %v8391_v60  ;;  %vm2840_vm11 = vcmp.eq.f32.partialorder %v2839_v55, 8.507059e+37 }
 0xc94   :  { %v2763_v61 = vsel %vm2762_vm0, %v6455_v11, %v2759_v27  ;;  %v8394_v11 = vadd.f32 1.0, %v6463_v25 }
 0xc95   :  { %v8373_v8 = vsel %vm2765_vm13, %v2767_v18, %v2763_v61  ;;  %v2808_v52 = vsel %vm2807_vm14, %v6457_v17, %v2804_v29 }
 0xc96   :  { %v8376_v19 = vsel %vm2810_vm15, %v2812_v57, %v2808_v52  ;;  %v8379_v58 = vmul.f32 %v3003_v31, %v8373_v8  ;;  %v6465_v35 = vpop.eup %6464  ;;  %6472 = vrcp.f32 %v8394_v11  ;;  %vm2775_vm14 = vweird.f32 %v8394_v11 }
 0xc97   :  { %v8383_v43 = vmul.f32 %v3006_v28, %v8376_v19  ;;  %v6467_v17 = vpop.eup %6466  ;;  %v2831_v5 = vmul.f32 %v6465_v35, %v2752_v54  ;;  %6474 = vpow2.f32 %v5938_v26  ;;  %vm2836_vm1 = vweird.f32 %v6465_v35 }
 0xc98   :  { %v6469_v14 = vpop.eup %6468  ;;  %v8398_v41 = vadd.f32 1.0, %v6467_v17  ;;  %vm2837_vm10 = vmor %vm2835_vm2, %vm2836_vm1 }
 0xc99   :  { %v8400_v2 = vadd.f32 1.0, %v6469_v14  ;;  %v8402_v21 = vpop.eup %6470  ;;  %v2832_v56 = vsub.f32 1.0, %v2831_v5  ;;  %v2781_v5 = vand.u32 2147483648, %v8394_v11 }
 0xc9a   :  { %6476 = vrcp.f32 %v8398_v41  ;;  %v2786_v29 = vmul.f32 %v8402_v21, %v8391_v60  ;;  %vm2791_vm0 = vweird.f32 %v8402_v21 }
 0xc9b   :  { %6478 = vrcp.f32 %v8400_v2  ;;  %v2833_v44 = vmul.f32 %v6465_v35, %v2832_v56  ;;  %vm8441_vm13 = vmor %vm2790_vm12, %vm2791_vm0  ;;  %v2779_v56 = vand.u32 2147483647, %v8394_v11  ;;  %vm2850_vm0 = vweird.f32 %v8398_v41 }
 0xc9c   :  { %v8404_v15 = vpop.eup %6472  ;;  %v2787_v57 = vsub.f32 1.0, %v2786_v29  ;;  %vm2820_vm12 = vweird.f32 %v8400_v2 }
 0xc9d   :  { %v6475_v3 = vpop.eup %6474  ;;  %v2771_v61 = vmul.f32 %v8404_v15, %v8394_v11  ;;  %v2834_v48 = vadd.f32 %v6465_v35, %v2833_v44  ;;  %vm2776_vm9 = vweird.f32 %v8404_v15  ;;  %v2782_v11 = vor.u32 1.1754944e-38, %v2781_v5 }
 0xc9e   :  { %v8414_v18 = vadd.f32 1.0, %v6475_v3  ;;  %v2788_v6 = vmul.f32 %v8402_v21, %v2787_v57  ;;  %vm2777_vm15 = vmor %vm2775_vm14, %vm2776_vm9  ;;  %vm2780_vm2 = vcmp.eq.f32.partialorder %v2779_v56, 8.507059e+37 }
 0xc9f   :  { %v2772_v31 = vsub.f32 1.0, %v2771_v61  ;;  %v2838_v1 = vsel %vm2837_vm10, %v6465_v35, %v2834_v48  ;;  %v2796_v35 = vand.u32 2147483648, %v8391_v60 }
 0xca0   :  { %v8416_v63 = vpop.eup %6476  ;;  %6480 = vrcp.f32 %v8414_v18  ;;  %v8431_v54 = vsel %vm2840_vm11, %v2842_v36, %v2838_v1  ;;  %v2789_v25 = vadd.f32 %v8402_v21, %v2788_v6  ;;  %v2856_v6 = vand.u32 2147483648, %v8398_v41 }
 0xca1   :  { %v8418_v28 = vpop.eup %6478  ;;  %v2846_v46 = vmul.f32 %v8416_v63, %v8398_v41  ;;  %v2773_v39 = vmul.f32 %v8404_v15, %v2772_v31  ;;  %vm2851_vm10 = vweird.f32 %v8416_v63  ;;  %v2824_v1 = vand.u32 2147483647, %v8400_v2 }
 0xca2   :  { %v2816_v32 = vmul.f32 %v8418_v28, %v8400_v2  ;;  %v2793_v29 = vsel %vm8441_vm13, %v8402_v21, %v2789_v25  ;;  %vm2821_vm11 = vweird.f32 %v8418_v28  ;;  %vm2852_vm9 = vmor %vm2850_vm0, %vm2851_vm10  ;;  %v2857_v25 = vor.u32 1.1754944e-38, %v2856_v6 }
 0xca3   :  { %v2847_v47 = vsub.f32 1.0, %v2846_v46  ;;  %v2774_v37 = vadd.f32 %v8404_v15, %v2773_v39  ;;  %v2826_v39 = vand.u32 2147483648, %v8400_v2  ;;  %vm2822_vm13 = vmor %vm2820_vm12, %vm2821_vm11  ;;  %vm9359_vm0 = vcmask 1047559  }
 0xca4   :  { %v2817_v26 = vsub.f32 1.0, %v2816_v32  ;;  %v2854_v32 = vand.u32 2147483647, %v8398_v41  ;;  %vm9361_vm12 = vcmask 261120  }
 0xca5   :  { %v2848_v3 = vmul.f32 %v8416_v63, %v2847_v47  ;;  %v2778_v61 = vsel %vm2777_vm15, %v8404_v15, %v2774_v37  ;;  %v2827_v37 = vor.u32 1.1754944e-38, %v2826_v39  ;;  %vm2825_vm15 = vcmp.eq.f32.partialorder %v2824_v1, 8.507059e+37 }
 0xca6   :  { %v8435_v17 = vpop.eup %6480  ;;  %v2818_v44 = vmul.f32 %v8418_v28, %v2817_v26  ;;  %v8462_v48 = vsel %vm2780_vm2, %v2782_v11, %v2778_v61  ;;  %vm2855_vm14 = vcmp.eq.f32.partialorder %v2854_v32, 8.507059e+37  ;;  %vm2865_vm2 = vweird.f32 %v8414_v18 }
 0xca7   :  { %v2849_v21 = vadd.f32 %v8416_v63, %v2848_v3 }
 0xca8   :  { %v2819_v55 = vadd.f32 %v8418_v28, %v2818_v44 }
 0xca9   :  { %v2853_v36 = vsel %vm2852_vm9, %v8416_v63, %v2849_v21  ;;  %vm9360_vm9 = vmmov %vm9359_vm0 }
 0xcaa   :  { %v2823_v47 = vsel %vm2822_vm13, %v8418_v28, %v2819_v55  ;;  %v8482_v26 = vsel %vm2855_vm14, %v2857_v25, %v2853_v36  ;;  %v2871_v28 = vand.u32 2147483648, %v8414_v18 }
 0xcac   :  { %v2872_v56 = vor.u32 1.1754944e-38, %v2871_v28  ;;  %v3004_v28 = vrot.slane %v8289_v51, 7 }
 0xcd3   :  { %v2876_v27 = vpop.permute.xlu2 %2875 }
 0xcd4   :  { %v2899_v16 = vmul.f32 %v2876_v27, %v8373_v8  ;;  %v2869_v27 = vand.u32 2147483647, %v8414_v18 }
 0xcd6   :  { %2915 = vrot.lane.b32.xlu1 %v2899_v16, %s6963_s12  ;;  %v2794_v16 = vand.u32 2147483647, %v8391_v60  ;;  %v2861_v60 = vmul.f32 %v8435_v17, %v8414_v18  ;;  %vm2870_vm11 = vcmp.eq.f32.partialorder %v2869_v27, 8.507059e+37 }
 0xcd8   :  { %vm2795_vm1 = vcmp.eq.f32.partialorder %v2794_v16, 8.507059e+37  ;;  %v2862_v46 = vsub.f32 1.0, %v2861_v60 }
 0xcdb   :  { %v2882_v52 = vpop.permute.xlu2 %2881 }
 0xcdc   :  { %v2902_v0 = vmul.f32 %v2882_v52, %v8376_v19  ;;  %v2797_v52 = vor.u32 1.1754944e-38, %v2796_v35  ;;  %v8484_v35 = vsel %vm2825_vm15, %v2827_v37, %v2823_v47 }
 0xcde   :  { %2921 = vrot.lane.b32.xlu1 %v2902_v0, %s6963_s12  ;;  %v8460_v31 = vsel %vm2795_vm1, %v2797_v52, %v2793_v29  ;;  %vm2866_vm1 = vweird.f32 %v8435_v17 }
 0xcdf   :  { %vm2867_vm10 = vmor %vm2865_vm2, %vm2866_vm1 }
 0xce3   :  { %v2886_v22 = vpop.permute.xlu2 %2885 }
 0xce4   :  { %v2904_v14 = vmul.f32 %v2886_v22, %v8431_v54  ;;  %v2863_v22 = vmul.f32 %v8435_v17, %v2862_v46 }
 0xce6   :  { %2925 = vrot.lane.b32.xlu1 %v2904_v14, %s6963_s12  ;;  %v2864_v63 = vadd.f32 %v8435_v17, %v2863_v22 }
 0xce8   :  { %v2868_v16 = vsel %vm2867_vm10, %v8435_v17, %v2864_v63  ;;  %v2956_v63 = vsub.f32 1.0, %v8462_v48 }
 0xce9   :  { %v8496_v3 = vsel %vm2870_vm11, %v2872_v56, %v2868_v16  ;;  %v2955_v16 = vsub.f32 1.0, %v8373_v8 }
 0xcea   :  { %v2880_v57 = vpop.permute.xlu1 %2879  ;;  %v2878_v0 = vpop.permute.xlu0 %2877 }
 0xceb   :  { %v2901_v15 = vmul.f32 %v2880_v57, %v8460_v31  ;;  %v2900_v23 = vmul.f32 %v2878_v0, %v8462_v48 }
 0xced   :  { %2919 = vrot.lane.b32.xlu0 %v2901_v15, %s6963_s12  ;;  %2917 = vrot.lane.b32.xlu2 %v2900_v23, %s6963_s12 }
 0xcf2   :  { %v2888_v14 = vpop.permute.xlu1 %2887  ;;  %v2884_v41 = vpop.permute.xlu0 %2883 }
 0xcf3   :  { %v2905_v5 = vmul.f32 %v2888_v14, %v8482_v26  ;;  %v2903_v2 = vmul.f32 %v2884_v41, %v8484_v35 }
 0xcf5   :  { %2927 = vrot.lane.b32.xlu0 %v2905_v5, %s6963_s12  ;;  %2923 = vrot.lane.b32.xlu2 %v2903_v2, %s6963_s12  ;;  %v2957_v5 = vsub.f32 1.0, %v8460_v31  ;;  %v3005_v2 = vrot.slane %v8284_v13, 7 }
 0xcfa   :  { %v2890_v29 = vpop.permute.xlu0 %2889 }
 0xcfb   :  { %v2906_v61 = vmul.f32 %v2890_v29, %v8496_v3  ;;  %v3020_v29 = vmul.f32 %v3005_v2, %v8460_v31 }
 0xcfd   :  { %2929 = vrot.lane.b32.xlu2 %v2906_v61, %s6963_s12 }
 0xd47   :  { %v2918_v44 = vpop.permute.xlu2 %2917 }
 0xd48   :  { %v2940_v60 = vadd.f32 %v2918_v44, %v7166_v34  ;;  %v2916_v52 = vpop.permute.xlu1 %2915 }
 0xd49   :  { %v2939_v11 = vadd.f32 %v2916_v52, %v7164_v33 }
 0xd4a   :  { %6482 = vtanh.f32 %v2940_v60  ;;  %v3019_v60 = vmul.f32 %v3004_v28, %v8462_v48 }
 0xd4b   :  { %6484 = vtanh.f32 %v2939_v11 }
 0xd4f   :  { %v2924_v18 = vpop.permute.xlu2 %2923 }
 0xd50   :  { %v6483_v57 = vpop.eup %6482  ;;  %v2943_v17 = vadd.f32 %v2924_v18, %v7180_v50  ;;  %v2922_v0 = vpop.permute.xlu1 %2921 }
 0xd51   :  { %v6485_v21 = vpop.eup %6484  ;;  %v2942_v15 = vadd.f32 %v2922_v0, %v7175_v42  ;;  %2973 = vrot.lane.b32.xlu1 %v6483_v57, %s6964_s3 }
 0xd52   :  { %6486 = vtanh.f32 %v2943_v17  ;;  %2971 = vrot.lane.b32.xlu0 %v6485_v21, %s6964_s3  ;;  %v2959_v21 = vsub.f32 1.0, %v8484_v35 }
 0xd53   :  { %6488 = vtanh.f32 %v2942_v15  ;;  %v3007_v15 = vrot.slane %v8316_v7, 7 }
 0xd57   :  { %v2930_v23 = vpop.permute.xlu2 %2929 }
 0xd58   :  { %v6487_v55 = vpop.eup %6486  ;;  %v2946_v46 = vadd.f32 %v2930_v23, %v7192_v62  ;;  %v2926_v6 = vpop.permute.xlu1 %2925 }
 0xd59   :  { %v6489_v39 = vpop.eup %6488  ;;  %v2944_v32 = vadd.f32 %v2926_v6, %v7173_v40  ;;  %2979 = vrot.lane.b32.xlu1 %v6487_v55, %s6964_s3  ;;  %v2958_v55 = vsub.f32 1.0, %v8376_v19  ;;  %v3008_v19 = vrot.slane %v8330_v59, 7 }
 0xd5a   :  { %6490 = vtanh.f32 %v2946_v46  ;;  %2977 = vrot.lane.b32.xlu0 %v6489_v39, %s6964_s3  ;;  %v3022_v39 = vmul.f32 %v3007_v15, %v8484_v35 }
 0xd5b   :  { %6492 = vtanh.f32 %v2944_v32  ;;  %v3024_v28 = vmul.f32 %v3008_v19, %v8482_v26 }
 0xd5f   :  { %v2920_v1 = vpop.permute.xlu0 %2919 }
 0xd60   :  { %v6491_v36 = vpop.eup %6490  ;;  %v2941_v47 = vadd.f32 %v2920_v1, %v7171_v38 }
 0xd61   :  { %v6493_v22 = vpop.eup %6492  ;;  %2985 = vrot.lane.b32.xlu1 %v6491_v36, %s6964_s3 }
 0xd62   :  { %6494 = vtanh.f32 %v2941_v47  ;;  %2981 = vrot.lane.b32.xlu0 %v6493_v22, %s6964_s3 }
 0xd67   :  { %v2928_v25 = vpop.permute.xlu0 %2927 }
 0xd68   :  { %v6495_v37 = vpop.eup %6494  ;;  %v2945_v14 = vadd.f32 %v2928_v25, %v7182_v53  ;;  %v2961_v25 = vsub.f32 1.0, %v8482_v26  ;;  %v3023_v26 = vmul.f32 %v8431_v54, %v2669_v49 }
 0xd69   :  { %2975 = vrot.lane.b32.xlu2 %v6495_v37, %s6964_s3 }
 0xd6a   :  { %6496 = vtanh.f32 %v2945_v14 }
 0xd70   :  { %v6497_v41 = vpop.eup %6496 }
 0xd71   :  { %2983 = vrot.lane.b32.xlu2 %v6497_v41, %s6964_s3 }
 0xdc3   :  { %v2976_v27 = vpop.permute.xlu2 %2975  ;;  %v2974_v56 = vpop.permute.xlu1 %2973 }
 0xdc4   :  { %v2997_v61 = vmul.f32 %v2976_v27, %v2957_v5  ;;  %v2972_v44 = vpop.permute.xlu0 %2971  ;;  %v2996_v52 = vmul.f32 %v2974_v56, %v2956_v63  ;;  %v3009_v63 = vrot.slane %v8332_v20, 7  ;;  %v2962_v27 = vsub.f32 1.0, %v8496_v3 }
 0xdc5   :  { %v2995_v11 = vmul.f32 %v2972_v44, %v2955_v16 }
 0xdc6   :  { %v8523_v18 = vadd.f32 %v3020_v29, %v2997_v61  ;;  %v8525_v57 = vadd.f32 %v3019_v60, %v2996_v52  ;;  %v3025_v56 = vmul.f32 %v3009_v63, %v8496_v3 }
 0xdc7   :  { %v8528_v13 = vadd.f32 %v8379_v58, %v2995_v11 }
 0xdc8   :  { %v3245_v51 = vrot.slane %v8523_v18, 3  ;;  %v6130_v8 = vrot.slane %v8523_v18, 19  ;;  %v3243_v17 = vrot.slane %v8525_v57, 4  ;;  %v6129_v31 = vrot.slane %v8525_v57, 20 }
 0xdc9   :  { %v3242_v0 = vrot.slane %v8528_v13, 5  ;;  %v6128_v48 = vrot.slane %v8528_v13, 21 }
 0xdcb   :  { %v3244_v23 = vsel %vm651_vm3, %v3243_v17, %v3242_v0  ;;  %v4623_v58 = vsel %vm651_vm3, %v6129_v31, %v6128_v48  ;;  %v2980_v46 = vpop.permute.xlu1 %2979  ;;  %v2984_v47 = vpop.permute.xlu2 %2983 }
 0xdcc   :  { %v2978_v6 = vpop.permute.xlu0 %2977  ;;  %v2999_v32 = vmul.f32 %v2980_v46, %v2959_v21  ;;  %v3246_v1 = vsel %vm654_vm4, %v3245_v51, %v3244_v23  ;;  %v4625_v36 = vsel %vm654_vm4, %v6130_v8, %v4623_v58  ;;  %v3001_v14 = vmul.f32 %v2984_v47, %v2961_v25 }
 0xdcd   :  { %v2998_v22 = vmul.f32 %v2978_v6, %v2958_v55  ;;  %v8591_v55 = vld [vmem:[#allocation8] ss:$0 sm:$0xff] }
 0xdce   :  { %v8545_v7 = vadd.f32 %v3022_v39, %v2999_v32  ;;  %v8562_v61 = vadd.f32 %v3024_v28, %v3001_v14 }
 0xdcf   :  { %v8548_v37 = vadd.f32 %v8383_v43, %v2998_v22  ;;  %v2960_v43 = vsub.f32 1.0, %v8431_v54 }
 0xdd0   :  { %v3249_v41 = vrot.slane %v8545_v7, 1  ;;  %v6132_v35 = vrot.slane %v8545_v7, 17  ;;  %v3252_v3 = vrot.slane %v8562_v61, 7  ;;  %v6134_v17 = vrot.slane %v8562_v61, 15 }
 0xdd1   :  { %v3247_v5 = vrot.slane %v8548_v37, 2  ;;  %v6131_v2 = vrot.slane %v8548_v37, 18 }
 0xdd3   :  { %v3248_v16 = vsel %vm657_vm5, %v3247_v5, %v3246_v1  ;;  %v4627_v59 = vsel %vm657_vm5, %v6131_v2, %v4625_v36  ;;  %v2986_v29 = vpop.permute.xlu1 %2985 }
 0xdd4   :  { %v2982_v44 = vpop.permute.xlu0 %2981  ;;  %v3250_v60 = vsel %vm660_vm6, %v3249_v41, %v3248_v16  ;;  %v4629_v20 = vsel %vm660_vm6, %v6132_v35, %v4627_v59  ;;  %v3002_v52 = vmul.f32 %v2986_v29, %v2962_v27 }
 0xdd5   :  { %v3000_v11 = vmul.f32 %v2982_v44, %v2960_v43 }
 0xdd6   :  { %v8569_v51 = vadd.f32 %v3025_v56, %v3002_v52 }
 0xdd7   :  { %v8571_v8 = vadd.f32 %v3023_v26, %v3000_v11 }
 0xdd8   :  { %v3254_v31 = vrot.slane %v8569_v51, 6  ;;  %v6092_v0 = vrot.slane %v8569_v51, 14 }
 0xdd9   :  { %v3251_v48 = vsel %vm663_vm7, %v8571_v8, %v3250_v60  ;;  %v4631_v12 = vsel %vm663_vm7, %v8571_v8, %v4629_v20 }
 0xdda   :  { %v3253_v49 = vsel %vm666_vm8, %v3252_v3, %v3251_v48  ;;  %v4633_v54 = vsel %vm666_vm8, %v6134_v17, %v4631_v12 }
 0xddb   :  { %v3255_v21 = vsel %vm9359_vm0, %v3254_v31, %v3253_v49  ;;  %v8587_v15 = vsel %vm9360_vm9, %v6092_v0, %v4633_v54  ;;  %v3586_v54 = vrot.slane %v8523_v18, 7 }
 0xddc   :  { %3256 = vrot.lane.b32.xlu2 %v3255_v21, %s6964_s3 }
 0xe36   :  { %v3257_v23 = vpop.permute.xlu2 %3256 }
 0xe37   :  { %5979 = vmatmul.msk.f32.vlgmr.msra.gmra.mxu1 %vm9361_vm12, %v3257_v23 }
 0xeb4   :  { %v3277_v58 = vpop.f32.mrf.mxu1 }
 0xeb5   :  { %v8594_v46 = vadd.f32 %v8591_v55, %v3277_v58  ;;  %v3589_v58 = vrot.slane %v8571_v8, 7 }
 0xeb7   :  { %v3283_v6 = vrot.slane %v8594_v46, 4  ;;  %v3282_v39 = vrot.slane %v8594_v46, 3  ;;  %v3281_v32 = vrot.slane %v8594_v46, 2  ;;  %v3286_v1 = vrot.slane %v8594_v46, 7 }
 0xeb8   :  { %v3285_v19 = vrot.slane %v8594_v46, 6  ;;  %v3284_v14 = vrot.slane %v8594_v46, 5  ;;  %v3287_v63 = vrot.slane %v8594_v46, 1  ;;  %v3302_v8 = vadd.f32 %v8594_v46, %v7182_v53 }
 0xeb9   :  { %3460 = vrot.lane.b32.xlu2 %v3283_v6, %s6963_s12  ;;  %v3298_v36 = vadd.f32 %v3283_v6, %v7171_v38  ;;  %3458 = vrot.lane.b32.xlu1 %v3282_v39, %s6963_s12  ;;  %v3301_v47 = vadd.f32 %v3286_v1, %v7173_v40 }
 0xeba   :  { %3456 = vrot.lane.b32.xlu0 %v3281_v32, %s6963_s12  ;;  %v3300_v18 = vadd.f32 %v3285_v19, %v7180_v50 }
 0xebb   :  { %v5982_v22 = vmul.f32 -1.442695, %v3298_v36  ;;  %v5985_v25 = vmul.f32 -1.442695, %v3301_v47  ;;  %v3296_v36 = vadd.f32 %v3281_v32, %v7164_v33 }
 0xebd   :  { %6498 = vpow2.f32 %v5982_v22  ;;  %v5980_v22 = vmul.f32 -1.442695, %v3296_v36 }
 0xebe   :  { %6500 = vpow2.f32 %v5985_v25  ;;  %v3299_v25 = vadd.f32 %v3284_v14, %v7175_v42 }
 0xec1   :  { %3466 = vrot.lane.b32.xlu2 %v3286_v1, %s6963_s12  ;;  %3464 = vrot.lane.b32.xlu1 %v3285_v19, %s6963_s12  ;;  %v3297_v1 = vadd.f32 %v3282_v39, %v7166_v34  ;;  %v3303_v39 = vadd.f32 %v3287_v63, %v7192_v62 }
 0xec2   :  { %3462 = vrot.lane.b32.xlu0 %v3284_v14, %s6963_s12 }
 0xec3   :  { %v6499_v41 = vpop.eup %6498  ;;  %v5981_v47 = vmul.f32 -1.442695, %v3297_v1  ;;  %v5987_v19 = vmul.f32 -1.442695, %v3303_v39 }
 0xec4   :  { %v3330_v35 = vadd.f32 1.0, %v6499_v41  ;;  %v6501_v5 = vpop.eup %6500  ;;  %v5984_v41 = vmul.f32 -1.442695, %v3300_v18 }
 0xec5   :  { %v3333_v2 = vadd.f32 1.0, %v6501_v5 }
 0xec6   :  { %6502 = vrcp.f32 %v3330_v35  ;;  %v3377_v20 = vand.u32 2147483648, %v3330_v35  ;;  %vm3371_vm14 = vweird.f32 %v3330_v35  ;;  %v3375_v52 = vand.u32 2147483647, %v3330_v35 }
 0xec7   :  { %6504 = vrcp.f32 %v3333_v2  ;;  %v3422_v17 = vand.u32 2147483648, %v3333_v2  ;;  %vm3416_vm2 = vweird.f32 %v3333_v2  ;;  %v3420_v0 = vand.u32 2147483647, %v3333_v2 }
 0xec8   :  { %v3378_v31 = vor.u32 1.1754944e-38, %v3377_v20  ;;  %vm3376_vm10 = vcmp.eq.f32.partialorder %v3375_v52, 8.507059e+37  ;;  %6506 = vpow2.f32 %v5981_v47 }
 0xec9   :  { %3468 = vrot.lane.b32.xlu1 %v8594_v46, %s6963_s12  ;;  %v3423_v49 = vor.u32 1.1754944e-38, %v3422_v17  ;;  %vm3421_vm0 = vcmp.eq.f32.partialorder %v3420_v0, 8.507059e+37  ;;  %6508 = vpow2.f32 %v5980_v22 }
 0xeca   :  { %3470 = vrot.lane.b32.xlu0 %v3287_v63, %s6963_s12  ;;  %6510 = vpow2.f32 %v5984_v41 }
 0xecc   :  { %v6503_v28 = vpop.eup %6502 }
 0xecd   :  { %v3367_v27 = vmul.f32 %v6503_v28, %v3330_v35  ;;  %v6505_v43 = vpop.eup %6504  ;;  %vm3372_vm13 = vweird.f32 %v6503_v28  ;;  %v5983_v35 = vmul.f32 -1.442695, %v3299_v25 }
 0xece   :  { %v3412_v59 = vmul.f32 %v6505_v43, %v3333_v2  ;;  %vm3373_vm15 = vmor %vm3371_vm14, %vm3372_vm13  ;;  %vm3417_vm1 = vweird.f32 %v6505_v43  ;;  %v6507_v5 = vpop.eup %6506 }
 0xecf   :  { %v3368_v16 = vsub.f32 1.0, %v3367_v27  ;;  %vm3418_vm11 = vmor %vm3416_vm2, %vm3417_vm1  ;;  %v6509_v2 = vpop.eup %6508  ;;  %6512 = vpow2.f32 %v5983_v35  ;;  %v5986_v27 = vmul.f32 -1.442695, %v3302_v8 }
 0xed0   :  { %v3413_v29 = vsub.f32 1.0, %v3412_v59  ;;  %v8635_v32 = vadd.f32 1.0, %v6509_v2  ;;  %v6511_v14 = vpop.eup %6510 }
 0xed1   :  { %v3369_v56 = vmul.f32 %v6503_v28, %v3368_v16  ;;  %v8639_v16 = vadd.f32 1.0, %v6511_v14 }
 0xed2   :  { %v3414_v60 = vmul.f32 %v6505_v43, %v3413_v29  ;;  %v3347_v39 = vand.u32 2147483648, %v8635_v32 }
 0xed3   :  { %v3370_v44 = vadd.f32 %v6503_v28, %v3369_v56 }
 0xed4   :  { %v3415_v26 = vadd.f32 %v6505_v43, %v3414_v60 }
 0xed5   :  { %v3374_v11 = vsel %vm3373_vm15, %v6503_v28, %v3370_v44  ;;  %v8632_v28 = vadd.f32 1.0, %v6507_v5  ;;  %vm3341_vm15 = vweird.f32 %v8635_v32 }
 0xed6   :  { %v8614_v48 = vsel %vm3376_vm10, %v3378_v31, %v3374_v11  ;;  %v3419_v12 = vsel %vm3418_vm11, %v6505_v43, %v3415_v26  ;;  %v6513_v43 = vpop.eup %6512 }
 0xed7   :  { %v8617_v21 = vsel %vm3421_vm0, %v3423_v49, %v3419_v12  ;;  %v8620_v23 = vmul.f32 %v3586_v54, %v8614_v48  ;;  %6514 = vrcp.f32 %v8632_v28  ;;  %v8641_v59 = vadd.f32 1.0, %v6513_v43 }
 0xed8   :  { %v8624_v6 = vmul.f32 %v3589_v58, %v8617_v21  ;;  %6516 = vrcp.f32 %v8635_v32  ;;  %v3362_v41 = vand.u32 2147483648, %v8632_v28  ;;  %vm3356_vm13 = vweird.f32 %v8632_v28 }
 0xed9   :  { %6518 = vpow2.f32 %v5986_v27  ;;  %v3360_v8 = vand.u32 2147483647, %v8632_v28  ;;  %v3345_v27 = vand.u32 2147483647, %v8635_v32 }
 0xeda   :  { %6520 = vpow2.f32 %v5987_v19 }
 0xedb   :  { %6522 = vrcp.f32 %v8639_v16  ;;  %vm3361_vm2 = vcmp.eq.f32.partialorder %v3360_v8, 8.507059e+37  ;;  %vm3346_vm10 = vcmp.eq.f32.partialorder %v3345_v27, 8.507059e+37 }
 0xedc   :  { %6524 = vrcp.f32 %v8641_v59 }
 0xedd   :  { %v6515_v63 = vpop.eup %6514 }
 0xede   :  { %v6517_v29 = vpop.eup %6516  ;;  %v3352_v60 = vmul.f32 %v6515_v63, %v8632_v28  ;;  %vm3357_vm9 = vweird.f32 %v6515_v63 }
 0xedf   :  { %v6519_v44 = vpop.eup %6518  ;;  %v3337_v52 = vmul.f32 %v6517_v29, %v8635_v32  ;;  %vm3342_vm12 = vweird.f32 %v6517_v29  ;;  %vm3358_vm14 = vmor %vm3356_vm13, %vm3357_vm9  ;;  %v3348_v32 = vor.u32 1.1754944e-38, %v3347_v39  ;;  %vm3401_vm9 = vweird.f32 %v8639_v16 }
 0xee0   :  { %v6521_v20 = vpop.eup %6520  ;;  %v8649_v11 = vadd.f32 1.0, %v6519_v44  ;;  %v3353_v0 = vsub.f32 1.0, %v3352_v60  ;;  %vm8675_vm1 = vmor %vm3341_vm15, %vm3342_vm12  ;;  %vm3386_vm13 = vweird.f32 %v8641_v59 }
 0xee1   :  { %v8651_v17 = vadd.f32 1.0, %v6521_v20  ;;  %v8654_v12 = vpop.eup %6522  ;;  %v3338_v49 = vsub.f32 1.0, %v3337_v52  ;;  %v3407_v52 = vand.u32 2147483648, %v8639_v16 }
 0xee2   :  { %v8656_v54 = vpop.eup %6524  ;;  %6526 = vrcp.f32 %v8649_v11  ;;  %v3354_v58 = vmul.f32 %v6515_v63, %v3353_v0  ;;  %v3397_v1 = vmul.f32 %v8654_v12, %v8639_v16  ;;  %vm3402_vm11 = vweird.f32 %v8654_v12 }
 0xee3   :  { %6528 = vrcp.f32 %v8651_v17  ;;  %v3339_v36 = vmul.f32 %v6517_v29, %v3338_v49  ;;  %v3382_v47 = vmul.f32 %v8656_v54, %v8641_v59  ;;  %vm3387_vm0 = vweird.f32 %v8656_v54  ;;  %vm3403_vm12 = vmor %vm3401_vm9, %vm3402_vm11 }
 0xee4   :  { %v3355_v22 = vadd.f32 %v6515_v63, %v3354_v58  ;;  %v3398_v18 = vsub.f32 1.0, %v3397_v1  ;;  %vm3431_vm11 = vweird.f32 %v8649_v11  ;;  %vm3446_vm9 = vweird.f32 %v8651_v17 }
 0xee5   :  { %v3340_v35 = vadd.f32 %v6517_v29, %v3339_v36  ;;  %v3383_v5 = vsub.f32 1.0, %v3382_v47  ;;  %v3405_v47 = vand.u32 2147483647, %v8639_v16 }
 0xee6   :  { %v3359_v19 = vsel %vm3358_vm14, %v6515_v63, %v3355_v22  ;;  %v3399_v43 = vmul.f32 %v8654_v12, %v3398_v18  ;;  %v3392_v22 = vand.u32 2147483648, %v8641_v59  ;;  %v3390_v18 = vand.u32 2147483647, %v8641_v59  ;;  %vm3388_vm14 = vmor %vm3386_vm13, %vm3387_vm0 }
 0xee7   :  { %v3344_v28 = vsel %vm8675_vm1, %v6517_v29, %v3340_v35  ;;  %v3384_v44 = vmul.f32 %v8656_v54, %v3383_v5  ;;  %v3408_v5 = vor.u32 1.1754944e-38, %v3407_v52  ;;  %vm3406_vm15 = vcmp.eq.f32.partialorder %v3405_v47, 8.507059e+37 }
 0xee8   :  { %v8665_v25 = vpop.eup %6526  ;;  %v8692_v0 = vsel %vm3346_vm10, %v3348_v32, %v3344_v28  ;;  %v3400_v29 = vadd.f32 %v8654_v12, %v3399_v43  ;;  %v3393_v39 = vor.u32 1.1754944e-38, %v3392_v22  ;;  %vm3391_vm1 = vcmp.eq.f32.partialorder %v3390_v18, 8.507059e+37 }
 0xee9   :  { %v8668_v2 = vpop.eup %6528  ;;  %v3385_v1 = vadd.f32 %v8656_v54, %v3384_v44  ;;  %v3435_v28 = vand.u32 2147483647, %v8649_v11  ;;  %v3452_v44 = vand.u32 2147483648, %v8651_v17 }
 0xeea   :  { %v3442_v60 = vmul.f32 %v8668_v2, %v8651_v17  ;;  %vm3447_vm10 = vweird.f32 %v8668_v2 }
 0xeeb   :  { %v3389_v8 = vsel %vm3388_vm14, %v8656_v54, %v3385_v1  ;;  %v3437_v54 = vand.u32 2147483648, %v8649_v11  ;;  %vm3436_vm13 = vcmp.eq.f32.partialorder %v3435_v28, 8.507059e+37 }
 0xeec   :  { %v3443_v36 = vsub.f32 1.0, %v3442_v60  ;;  %v8714_v43 = vsel %vm3391_vm1, %v3393_v39, %v3389_v8  ;;  %v3450_v60 = vand.u32 2147483647, %v8651_v17  ;;  %vm9365_vm1 = vcmask 261120  }
 0xeee   :  { %v3444_v16 = vmul.f32 %v8668_v2, %v3443_v36  ;;  %vm3451_vm14 = vcmp.eq.f32.partialorder %v3450_v60, 8.507059e+37 }
 0xf13   :  { %v3461_v46 = vpop.permute.xlu2 %3460 }
 0xf14   :  { %v3482_v56 = vmul.f32 %v3461_v46, %v8614_v48  ;;  %v3427_v46 = vmul.f32 %v8665_v25, %v8649_v11 }
 0xf16   :  { %3500 = vrot.lane.b32.xlu1 %v3482_v56, %s6963_s12  ;;  %v3363_v56 = vor.u32 1.1754944e-38, %v3362_v41  ;;  %v3428_v49 = vsub.f32 1.0, %v3427_v46  ;;  %v3404_v41 = vsel %vm3403_vm12, %v8654_v12, %v3400_v29  ;;  %vm3448_vm12 = vmor %vm3446_vm9, %vm3447_vm10 }
 0xf17   :  { %v8711_v27 = vsel %vm3406_vm15, %v3408_v5, %v3404_v41  ;;  %vm9364_vm15 = vcmask 1047559  }
 0xf18   :  { %v8687_v20 = vsel %vm3361_vm2, %v3363_v56, %v3359_v19  ;;  %v3429_v35 = vmul.f32 %v8665_v25, %v3428_v49  ;;  %vm3432_vm2 = vweird.f32 %v8665_v25  ;;  %v3445_v56 = vadd.f32 %v8668_v2, %v3444_v16 }
 0xf19   :  { %vm3433_vm0 = vmor %vm3431_vm11, %vm3432_vm2 }
 0xf1a   :  { %v3430_v12 = vadd.f32 %v8665_v25, %v3429_v35  ;;  %v3449_v52 = vsel %vm3448_vm12, %v8668_v2, %v3445_v56 }
 0xf1b   :  { %v3467_v26 = vpop.permute.xlu2 %3466 }
 0xf1c   :  { %v3485_v31 = vmul.f32 %v3467_v26, %v8617_v21  ;;  %v3434_v32 = vsel %vm3433_vm0, %v8665_v25, %v3430_v12 }
 0xf1e   :  { %3506 = vrot.lane.b32.xlu1 %v3485_v31, %s6963_s12 }
 0xf2b   :  { %v3459_v63 = vpop.permute.xlu1 %3458 }
 0xf2c   :  { %v3481_v26 = vmul.f32 %v3459_v63, %v8687_v20  ;;  %v3457_v31 = vpop.permute.xlu0 %3456  ;;  %v3438_v63 = vor.u32 1.1754944e-38, %v3437_v54 }
 0xf2d   :  { %v3480_v58 = vmul.f32 %v3457_v31, %v8692_v0 }
 0xf2e   :  { %3498 = vrot.lane.b32.xlu0 %v3481_v26, %s6963_s12  ;;  %v3453_v26 = vor.u32 1.1754944e-38, %v3452_v44  ;;  %v8731_v31 = vsel %vm3436_vm13, %v3438_v63, %v3434_v32  ;;  %v3538_v63 = vsub.f32 1.0, %v8614_v48 }
 0xf2f   :  { %3496 = vrot.lane.b32.xlu2 %v3480_v58, %s6963_s12 }
 0xf30   :  { %v8734_v49 = vsel %vm3451_vm14, %v3453_v26, %v3449_v52  ;;  %v3537_v52 = vsub.f32 1.0, %v8687_v20  ;;  %v3585_v26 = vrot.slane %v8525_v57, 7 }
 0xf33   :  { %v3465_v19 = vpop.permute.xlu1 %3464 }
 0xf34   :  { %v3484_v14 = vmul.f32 %v3465_v19, %v8711_v27  ;;  %v3463_v59 = vpop.permute.xlu0 %3462 }
 0xf35   :  { %v3483_v46 = vmul.f32 %v3463_v59, %v8714_v43 }
 0xf36   :  { %3504 = vrot.lane.b32.xlu0 %v3484_v14, %s6963_s12 }
 0xf37   :  { %3502 = vrot.lane.b32.xlu2 %v3483_v46, %s6963_s12 }
 0xf3b   :  { %v3469_v11 = vpop.permute.xlu1 %3468 }
 0xf3c   :  { %v3486_v29 = vmul.f32 %v3469_v11, %v8731_v31  ;;  %v3471_v58 = vpop.permute.xlu0 %3470 }
 0xf3d   :  { %v3487_v1 = vmul.f32 %v3471_v58, %v8734_v49  ;;  %v3584_v58 = vrot.slane %v8528_v13, 7 }
 0xf3e   :  { %3508 = vrot.lane.b32.xlu0 %v3486_v29, %s6963_s12  ;;  %v3536_v29 = vsub.f32 1.0, %v8692_v0 }
 0xf3f   :  { %3510 = vrot.lane.b32.xlu2 %v3487_v1, %s6963_s12 }
 0xf88   :  { %v3501_v17 = vpop.permute.xlu1 %3500 }
 0xf89   :  { %v3522_v25 = vadd.f32 %v3501_v17, %v7171_v38  ;;  %v3497_v2 = vpop.permute.xlu2 %3496 }
 0xf8a   :  { %v3520_v36 = vadd.f32 %v3497_v2, %v7164_v33  ;;  %v3600_v2 = vmul.f32 %v3585_v26, %v8687_v20 }
 0xf8b   :  { %6530 = vtanh.f32 %v3522_v25 }
 0xf8c   :  { %6532 = vtanh.f32 %v3520_v36 }
 0xf90   :  { %v3507_v47 = vpop.permute.xlu1 %3506 }
 0xf91   :  { %v6531_v22 = vpop.eup %6530  ;;  %v3525_v18 = vadd.f32 %v3507_v47, %v7173_v40  ;;  %v3503_v41 = vpop.permute.xlu2 %3502  ;;  %v3599_v47 = vmul.f32 %v3584_v58, %v8692_v0  ;;  %v3543_v58 = vsub.f32 1.0, %v8734_v49 }
 0xf92   :  { %v6533_v35 = vpop.eup %6532  ;;  %v3523_v5 = vadd.f32 %v3503_v41, %v7175_v42  ;;  %3556 = vrot.lane.b32.xlu0 %v6531_v22, %s6964_s3 }
 0xf93   :  { %6534 = vtanh.f32 %v3525_v18  ;;  %3552 = vrot.lane.b32.xlu1 %v6533_v35, %s6964_s3 }
 0xf94   :  { %6536 = vtanh.f32 %v3523_v5 }
 0xf99   :  { %v6535_v8 = vpop.eup %6534  ;;  %v3511_v16 = vpop.permute.xlu2 %3510 }
 0xf9a   :  { %v6537_v39 = vpop.eup %6536  ;;  %v3527_v19 = vadd.f32 %v3511_v16, %v7192_v62  ;;  %3562 = vrot.lane.b32.xlu0 %v6535_v8, %s6964_s3  ;;  %v3588_v8 = vrot.slane %v8545_v7, 7  ;;  %v3587_v16 = vrot.slane %v8548_v37, 7 }
 0xf9b   :  { %3558 = vrot.lane.b32.xlu1 %v6537_v39, %s6964_s3  ;;  %v3540_v39 = vsub.f32 1.0, %v8711_v27 }
 0xf9c   :  { %6538 = vtanh.f32 %v3527_v19  ;;  %v3602_v37 = vmul.f32 %v3587_v16, %v8714_v43 }
 0xfa0   :  { %v3499_v14 = vpop.permute.xlu0 %3498 }
 0xfa1   :  { %v3521_v59 = vadd.f32 %v3499_v14, %v7166_v34 }
 0xfa2   :  { %v6539_v12 = vpop.eup %6538 }
 0xfa3   :  { %6540 = vtanh.f32 %v3521_v59  ;;  %3566 = vrot.lane.b32.xlu1 %v6539_v12, %s6964_s3  ;;  %v3539_v12 = vsub.f32 1.0, %v8714_v43  ;;  %v3590_v43 = vrot.slane %v8569_v51, 7 }
 0xfa8   :  { %v3505_v46 = vpop.permute.xlu0 %3504 }
 0xfa9   :  { %v6541_v54 = vpop.eup %6540  ;;  %v3524_v56 = vadd.f32 %v3505_v46, %v7180_v50  ;;  %v3603_v46 = vmul.f32 %v3588_v8, %v8711_v27 }
 0xfaa   :  { %3554 = vrot.lane.b32.xlu2 %v6541_v54, %s6964_s3 }
 0xfab   :  { %6542 = vtanh.f32 %v3524_v56 }
 0xfb0   :  { %v3509_v28 = vpop.permute.xlu0 %3508 }
 0xfb1   :  { %v6543_v44 = vpop.eup %6542  ;;  %v3526_v60 = vadd.f32 %v3509_v28, %v7182_v53 }
 0xfb2   :  { %3560 = vrot.lane.b32.xlu2 %v6543_v44, %s6964_s3 }
 0xfb3   :  { %6544 = vtanh.f32 %v3526_v60 }
 0xfb9   :  { %v6545_v32 = vpop.eup %6544 }
 0xfba   :  { %3564 = vrot.lane.b32.xlu2 %v6545_v32, %s6964_s3 }
0x1004   :  { %v3557_v11 = vpop.permute.xlu0 %3556  ;;  %v3555_v1 = vpop.permute.xlu2 %3554 }
0x1005   :  { %v3578_v17 = vmul.f32 %v3557_v11, %v3538_v63  ;;  %v3553_v25 = vpop.permute.xlu1 %3552  ;;  %v3577_v36 = vmul.f32 %v3555_v1, %v3537_v52  ;;  %v3542_v1 = vsub.f32 1.0, %v8731_v31 }
0x1006   :  { %v3576_v22 = vmul.f32 %v3553_v25, %v3536_v29 }
0x1007   :  { %v8763_v48 = vadd.f32 %v8620_v23, %v3578_v17  ;;  %v8765_v18 = vadd.f32 %v3600_v2, %v3577_v36  ;;  %v3541_v23 = vsub.f32 1.0, %v8617_v21 }
0x1008   :  { %v8767_v57 = vadd.f32 %v3599_v47, %v3576_v22  ;;  %v3605_v22 = vmul.f32 %v8731_v31, %v3252_v3 }
0x1009   :  { %v3858_v41 = vrot.slane %v8763_v48, 4  ;;  %v6137_v13 = vrot.slane %v8763_v48, 12  ;;  %v3856_v35 = vrot.slane %v8765_v18, 5  ;;  %v6136_v5 = vrot.slane %v8765_v18, 13 }
0x100a   :  { %v3855_v20 = vrot.slane %v8767_v57, 6  ;;  %v6135_v0 = vrot.slane %v8767_v57, 14 }
0x100c   :  { %v3857_v19 = vsel %vm651_vm3, %v3856_v35, %v3855_v20  ;;  %v4637_v14 = vsel %vm651_vm3, %v6136_v5, %v6135_v0  ;;  %v3563_v59 = vpop.permute.xlu0 %3562  ;;  %v3561_v54 = vpop.permute.xlu2 %3560  ;;  %v3606_v35 = vmul.f32 %v3590_v43, %v8734_v49 }
0x100d   :  { %v3581_v56 = vmul.f32 %v3563_v59, %v3541_v23  ;;  %v3559_v28 = vpop.permute.xlu1 %3558  ;;  %v3859_v7 = vsel %vm654_vm4, %v3858_v41, %v3857_v19  ;;  %v4639_v21 = vsel %vm654_vm4, %v6137_v13, %v4637_v14  ;;  %v3580_v44 = vmul.f32 %v3561_v54, %v3540_v39 }
0x100e   :  { %v3579_v60 = vmul.f32 %v3559_v28, %v3539_v12 }
0x100f   :  { %v8787_v32 = vadd.f32 %v8624_v6, %v3581_v56  ;;  %v8789_v63 = vadd.f32 %v3603_v46, %v3580_v44 }
0x1010   :  { %v8791_v52 = vadd.f32 %v3602_v37, %v3579_v60 }
0x1011   :  { %v3862_v27 = vrot.slane %v8789_v63, 2  ;;  %v6139_v26 = vrot.slane %v8789_v63, 10  ;;  %v3864_v6 = vrot.slane %v8787_v32, 1  ;;  %v6140_v17 = vrot.slane %v8787_v32, 9 }
0x1012   :  { %v3860_v11 = vrot.slane %v8791_v52, 3  ;;  %v6138_v29 = vrot.slane %v8791_v52, 11 }
0x1014   :  { %v3861_v25 = vsel %vm657_vm5, %v3860_v11, %v3859_v7  ;;  %v4641_v2 = vsel %vm657_vm5, %v6138_v29, %v4639_v21  ;;  %v3565_v36 = vpop.permute.xlu2 %3564 }
0x1015   :  { %v3567_v47 = vpop.permute.xlu1 %3566  ;;  %v3582_v41 = vmul.f32 %v3565_v36, %v3542_v1  ;;  %v3863_v13 = vsel %vm660_vm6, %v3862_v27, %v3861_v25  ;;  %v4643_v51 = vsel %vm660_vm6, %v6139_v26, %v4641_v2 }
0x1016   :  { %v3583_v5 = vmul.f32 %v3567_v47, %v3543_v58  ;;  %v3865_v20 = vsel %vm663_vm7, %v3864_v6, %v3863_v13  ;;  %v4645_v0 = vsel %vm663_vm7, %v6140_v17, %v4643_v51 }
0x1017   :  { %v8812_v8 = vadd.f32 %v3605_v22, %v3582_v41 }
0x1018   :  { %v3614_v23 = vadd.f32 %v3606_v35, %v3583_v5 }
0x1019   :  { %v3866_v61 = vsel %vm666_vm8, %v8812_v8, %v3865_v20  ;;  %v8818_v3 = vsel %vm666_vm8, %v8812_v8, %v4645_v0 }
0x101a   :  { %v8820_v31 = vrot.slane %v3614_v23, 7 }
0x101c   :  { %v3868_v49 = vsel %vm9364_vm15, %v8820_v31, %v3866_v61  ;;  %v4198_v61 = vrot.slane %v8765_v18, 7 }
0x101d   :  { %3869 = vrot.lane.b32.xlu0 %v3868_v49, %s6964_s3  ;;  %v4201_v49 = vrot.slane %v8789_v63, 7 }
0x108f   :  { %v3870_v16 = vpop.permute.xlu0 %3869 }
0x1090   :  { %6036 = vmatmul.msk.f32.vlgmr.msra.gmra.mxu2 %vm9365_vm1, %v3870_v16 }
0x1113   :  { %v3890_v39 = vpop.f32.mrf.mxu2 }
0x1114   :  { %v8827_v19 = vadd.f32 %v8591_v55, %v3890_v39 }
0x1116   :  { %v3896_v14 = vrot.slane %v8827_v19, 3  ;;  %v3895_v59 = vrot.slane %v8827_v19, 2  ;;  %v3894_v12 = vrot.slane %v8827_v19, 1  ;;  %v3898_v46 = vrot.slane %v8827_v19, 5 }
0x1117   :  { %v3899_v7 = vrot.slane %v8827_v19, 6  ;;  %v3897_v21 = vrot.slane %v8827_v19, 4  ;;  %v3900_v26 = vrot.slane %v8827_v19, 7 }
0x1118   :  { %4073 = vrot.lane.b32.xlu0 %v3896_v14, %s6963_s12  ;;  %4071 = vrot.lane.b32.xlu2 %v3895_v59, %s6963_s12  ;;  %v3910_v54 = vadd.f32 %v3895_v59, %v7166_v34  ;;  %v3913_v56 = vadd.f32 %v3898_v46, %v7180_v50  ;;  %v3916_v59 = vadd.f32 %v8827_v19, %v7192_v62 }
0x1119   :  { %4069 = vrot.lane.b32.xlu1 %v3894_v12, %s6963_s12  ;;  %v3914_v63 = vadd.f32 %v3899_v7, %v7173_v40 }
0x111a   :  { %v6038_v55 = vmul.f32 -1.442695, %v3910_v54  ;;  %v6041_v28 = vmul.f32 -1.442695, %v3913_v56  ;;  %v3911_v54 = vadd.f32 %v3896_v14, %v7171_v38  ;;  %v3909_v56 = vadd.f32 %v3894_v12, %v7164_v33 }
0x111b   :  { %v3915_v14 = vadd.f32 %v3900_v26, %v7182_v53 }
0x111c   :  { %6546 = vpow2.f32 %v6038_v55  ;;  %v6039_v55 = vmul.f32 -1.442695, %v3911_v54 }
0x111d   :  { %6548 = vpow2.f32 %v6041_v28  ;;  %v6037_v28 = vmul.f32 -1.442695, %v3909_v56 }
0x1120   :  { %4079 = vrot.lane.b32.xlu0 %v3899_v7, %s6963_s12  ;;  %4077 = vrot.lane.b32.xlu2 %v3898_v46, %s6963_s12  ;;  %v6044_v46 = vmul.f32 -1.442695, %v3916_v59 }
0x1121   :  { %4075 = vrot.lane.b32.xlu1 %v3897_v21, %s6963_s12 }
0x1122   :  { %v6547_v44 = vpop.eup %6546 }
0x1123   :  { %v3942_v37 = vadd.f32 1.0, %v6547_v44  ;;  %v6549_v60 = vpop.eup %6548  ;;  %v3912_v44 = vadd.f32 %v3897_v21, %v7175_v42 }
0x1124   :  { %v3945_v27 = vadd.f32 1.0, %v6549_v60  ;;  %v6042_v60 = vmul.f32 -1.442695, %v3914_v63 }
0x1125   :  { %6550 = vrcp.f32 %v3942_v37  ;;  %v3975_v36 = vand.u32 2147483648, %v3942_v37  ;;  %vm3969_vm11 = vweird.f32 %v3942_v37  ;;  %v3973_v22 = vand.u32 2147483647, %v3942_v37 }
0x1126   :  { %6552 = vrcp.f32 %v3945_v27  ;;  %v4020_v41 = vand.u32 2147483648, %v3945_v27  ;;  %vm4014_vm9 = vweird.f32 %v3945_v27  ;;  %v4018_v13 = vand.u32 2147483647, %v3945_v27 }
0x1127   :  { %v3976_v35 = vor.u32 1.1754944e-38, %v3975_v36  ;;  %vm3974_vm13 = vcmp.eq.f32.partialorder %v3973_v22, 8.507059e+37  ;;  %6554 = vpow2.f32 %v6044_v46 }
0x1128   :  { %4083 = vrot.lane.b32.xlu2 %v8827_v19, %s6963_s12  ;;  %v4021_v20 = vor.u32 1.1754944e-38, %v4020_v41  ;;  %vm4019_vm14 = vcmp.eq.f32.partialorder %v4018_v13, 8.507059e+37  ;;  %6556 = vpow2.f32 %v6039_v55 }
0x1129   :  { %4081 = vrot.lane.b32.xlu1 %v3900_v26, %s6963_s12  ;;  %6558 = vpow2.f32 %v6037_v28 }
0x112b   :  { %v6551_v11 = vpop.eup %6550 }
0x112c   :  { %v3965_v29 = vmul.f32 %v6551_v11, %v3942_v37  ;;  %v6553_v58 = vpop.eup %6552  ;;  %vm3970_vm2 = vweird.f32 %v6551_v11 }
0x112d   :  { %v4010_v1 = vmul.f32 %v6553_v58, %v3945_v27  ;;  %vm4015_vm10 = vweird.f32 %v6553_v58  ;;  %vm3971_vm0 = vmor %vm3969_vm11, %vm3970_vm2  ;;  %v6555_v18 = vpop.eup %6554  ;;  %v6040_v27 = vmul.f32 -1.442695, %v3912_v44 }
0x112e   :  { %v3966_v43 = vsub.f32 1.0, %v3965_v29  ;;  %vm4016_vm12 = vmor %vm4014_vm9, %vm4015_vm10  ;;  %v3948_v37 = vadd.f32 1.0, %v6555_v18  ;;  %v6557_v19 = vpop.eup %6556 }
0x112f   :  { %v4011_v6 = vsub.f32 1.0, %v4010_v1  ;;  %v8866_v29 = vadd.f32 1.0, %v6557_v19 }
0x1130   :  { %v3967_v17 = vmul.f32 %v6551_v11, %v3966_v43  ;;  %6560 = vrcp.f32 %v3948_v37  ;;  %v6043_v43 = vmul.f32 -1.442695, %v3915_v14  ;;  %v4065_v46 = vand.u32 2147483648, %v3948_v37 }
0x1131   :  { %v4012_v25 = vmul.f32 %v6553_v58, %v4011_v6  ;;  %6562 = vpow2.f32 %v6042_v60  ;;  %vm4059_vm1 = vweird.f32 %v3948_v37  ;;  %v4063_v55 = vand.u32 2147483647, %v3948_v37 }
0x1132   :  { %v3968_v2 = vadd.f32 %v6551_v11, %v3967_v17  ;;  %6564 = vpow2.f32 %v6040_v27  ;;  %v4066_v44 = vor.u32 1.1754944e-38, %v4065_v46  ;;  %vm3984_vm9 = vweird.f32 %v8866_v29 }
0x1133   :  { %v4013_v47 = vadd.f32 %v6553_v58, %v4012_v25  ;;  %6566 = vrcp.f32 %v8866_v29  ;;  %vm4064_vm10 = vcmp.eq.f32.partialorder %v4063_v55, 8.507059e+37 }
0x1134   :  { %v3972_v51 = vsel %vm3971_vm0, %v6551_v11, %v3968_v2  ;;  %v6559_v11 = vpop.eup %6558 }
0x1135   :  { %v4017_v5 = vsel %vm4016_vm12, %v6553_v58, %v4013_v47  ;;  %v8847_v0 = vsel %vm3974_vm13, %v3976_v35, %v3972_v51  ;;  %v8868_v12 = vadd.f32 1.0, %v6559_v11 }
0x1136   :  { %v8849_v23 = vsel %vm4019_vm14, %v4021_v20, %v4017_v5  ;;  %v8854_v16 = vmul.f32 %v4198_v61, %v8847_v0  ;;  %v6561_v58 = vpop.eup %6560 }
0x1137   :  { %v8857_v39 = vmul.f32 %v4201_v49, %v8849_v23  ;;  %v6563_v7 = vpop.eup %6562  ;;  %6568 = vrcp.f32 %v8868_v12  ;;  %v4055_v21 = vmul.f32 %v6561_v58, %v3948_v37  ;;  %vm4060_vm15 = vweird.f32 %v6561_v58 }
0x1138   :  { %v6565_v1 = vpop.eup %6564  ;;  %6570 = vpow2.f32 %v6043_v43  ;;  %v8872_v6 = vadd.f32 1.0, %v6563_v7  ;;  %vm4061_vm2 = vmor %vm4059_vm1, %vm4060_vm15  ;;  %vm3954_vm13 = vweird.f32 %v8868_v12 }
0x1139   :  { %v8874_v25 = vadd.f32 1.0, %v6565_v1  ;;  %v4056_v2 = vsub.f32 1.0, %v4055_v21  ;;  %v6567_v36 = vpop.eup %6566 }
0x113a   :  { %6572 = vrcp.f32 %v8872_v6  ;;  %v3980_v13 = vmul.f32 %v6567_v36, %v8866_v29  ;;  %vm3985_vm11 = vweird.f32 %v6567_v36 }
0x113b   :  { %6574 = vrcp.f32 %v8874_v25  ;;  %v4057_v41 = vmul.f32 %v6561_v58, %v4056_v2  ;;  %vm3986_vm12 = vmor %vm3984_vm9, %vm3985_vm11  ;;  %v3958_v2 = vand.u32 2147483647, %v8868_v12  ;;  %vm4029_vm11 = vweird.f32 %v8872_v6 }
0x113c   :  { %v3981_v49 = vsub.f32 1.0, %v3980_v13  ;;  %vm3999_vm9 = vweird.f32 %v8874_v25 }
0x113d   :  { %v8877_v47 = vpop.eup %6568  ;;  %v4058_v61 = vadd.f32 %v6561_v58, %v4057_v41  ;;  %vm3959_vm1 = vcmp.eq.f32.partialorder %v3958_v2, 8.507059e+37 }
0x113e   :  { %v6571_v22 = vpop.eup %6570  ;;  %v3950_v51 = vmul.f32 %v8877_v47, %v8868_v12  ;;  %v3982_v18 = vmul.f32 %v6567_v36, %v3981_v49  ;;  %vm3955_vm0 = vweird.f32 %v8877_v47 }
0x113f   :  { %v8885_v35 = vadd.f32 1.0, %v6571_v22  ;;  %v4062_v28 = vsel %vm4061_vm2, %v6561_v58, %v4058_v61  ;;  %v3990_v58 = vand.u32 2147483648, %v8866_v29  ;;  %vm3956_vm14 = vmor %vm3954_vm13, %vm3955_vm0 }
0x1140   :  { %v8888_v59 = vpop.eup %6572  ;;  %v3951_v54 = vsub.f32 1.0, %v3950_v51  ;;  %v8899_v19 = vsel %vm4064_vm10, %v4066_v44, %v4062_v28  ;;  %v3983_v14 = vadd.f32 %v6567_v36, %v3982_v18  ;;  %v4005_v44 = vand.u32 2147483648, %v8874_v25 }
0x1141   :  { %v8890_v56 = vpop.eup %6574  ;;  %6576 = vrcp.f32 %v8885_v35  ;;  %v4025_v63 = vmul.f32 %v8888_v59, %v8872_v6  ;;  %v3991_v13 = vor.u32 1.1754944e-38, %v3990_v58  ;;  %vm4030_vm2 = vweird.f32 %v8888_v59 }
0x1142   :  { %v3952_v60 = vmul.f32 %v8877_v47, %v3951_v54  ;;  %v3995_v27 = vmul.f32 %v8890_v56, %v8874_v25  ;;  %v3987_v22 = vsel %vm3986_vm12, %v6567_v36, %v3983_v14  ;;  %v4035_v54 = vand.u32 2147483648, %v8872_v6  ;;  %vm4031_vm0 = vmor %vm4029_vm11, %vm4030_vm2 }
0x1143   :  { %v4026_v43 = vsub.f32 1.0, %v4025_v63  ;;  %vm4000_vm10 = vweird.f32 %v8890_v56  ;;  %v4033_v63 = vand.u32 2147483647, %v8872_v6  ;;  %v4006_v6 = vor.u32 1.1754944e-38, %v4005_v44 }
0x1144   :  { %v3953_v7 = vadd.f32 %v8877_v47, %v3952_v60  ;;  %v3996_v21 = vsub.f32 1.0, %v3995_v27  ;;  %v4003_v60 = vand.u32 2147483647, %v8874_v25  ;;  %vm4001_vm12 = vmor %vm3999_vm9, %vm4000_vm10  ;;  %vm9366_vm11 = vcmask 261120  }
0x1145   :  { %v4027_v41 = vmul.f32 %v8888_v59, %v4026_v43  ;;  %vm4034_vm13 = vcmp.eq.f32.partialorder %v4033_v63, 8.507059e+37  ;;  %vm9368_vm9 = vmmov %vm9366_vm11 }
0x1146   :  { %v3957_v51 = vsel %vm3956_vm14, %v8877_v47, %v3953_v7  ;;  %vm4004_vm14 = vcmp.eq.f32.partialorder %v4003_v60, 8.507059e+37 }
0x1147   :  { %v8905_v1 = vpop.eup %6576  ;;  %v4028_v47 = vadd.f32 %v8888_v59, %v4027_v41 }
0x1149   :  { %v4032_v27 = vsel %vm4031_vm0, %v8888_v59, %v4028_v47  ;;  %vm9367_vm0 = vcmask 1047559  }
0x1172   :  { %v4072_v17 = vpop.permute.xlu2 %4071 }
0x1173   :  { %v4094_v26 = vmul.f32 %v4072_v17, %v8847_v0  ;;  %v3988_v17 = vand.u32 2147483647, %v8866_v29 }
0x1175   :  { %4111 = vrot.lane.b32.xlu1 %v4094_v26, %s6963_s12  ;;  %v3960_v26 = vand.u32 2147483648, %v8868_v12  ;;  %vm3989_vm15 = vcmp.eq.f32.partialorder %v3988_v17, 8.507059e+37 }
0x1176   :  { %v8918_v49 = vsel %vm3989_vm15, %v3991_v13, %v3987_v22  ;;  %vm4045_vm15 = vweird.f32 %v8905_v1 }
0x1177   :  { %v3961_v29 = vor.u32 1.1754944e-38, %v3960_v26  ;;  %v4048_v26 = vand.u32 2147483647, %v8885_v35 }
0x1179   :  { %v8922_v46 = vsel %vm3959_vm1, %v3961_v29, %v3957_v51  ;;  %vm4044_vm1 = vweird.f32 %v8885_v35  ;;  %vm4049_vm10 = vcmp.eq.f32.partialorder %v4048_v26, 8.507059e+37  ;;  %v206_v29 = vld [vmem:[#allocation10 + $0x8] sm:$0xff] }
0x117a   :  { %v4078_v5 = vpop.permute.xlu2 %4077  ;;  %vm4046_vm2 = vmor %vm4044_vm1, %vm4045_vm15 }
0x117b   :  { %v4097_v20 = vmul.f32 %v4078_v5, %v8849_v23  ;;  %v3997_v5 = vmul.f32 %v8890_v56, %v3996_v21  ;;  %vm9372_vm15 = vmmov %vm9368_vm9 }
0x117c   :  { %vm9373_vm1 = vmmov %vm9368_vm9 }
0x117d   :  { %4117 = vrot.lane.b32.xlu1 %v4097_v20, %s6963_s12  ;;  %v4040_v20 = vmul.f32 %v8905_v1, %v8885_v35  ;;  %v3998_v28 = vadd.f32 %v8890_v56, %v3997_v5  ;;  %v208_v5 = vld [vmem:[#allocation10 + $0x18] sm:$0xff] }
0x117e   :  { %4707 = vmatpush.msrb.mxu3 %v208_v5 }
0x117f   :  { %v4041_v18 = vsub.f32 1.0, %v4040_v20  ;;  %v207_v20 = vld [vmem:[#allocation10 + $0x10] sm:$0xff] }
0x1180   :  { %4708 = vmatpush.msrb.mxu3 %v207_v20 }
0x1181   :  { %v4042_v14 = vmul.f32 %v8905_v1, %v4041_v18 }
0x1182   :  { %v4084_v11 = vpop.permute.xlu2 %4083  ;;  %4709 = vmatpush.msrb.mxu3 %v206_v29 }
0x1183   :  { %v4100_v37 = vmul.f32 %v4084_v11, %v8899_v19  ;;  %v4036_v11 = vor.u32 1.1754944e-38, %v4035_v54  ;;  %v4043_v59 = vadd.f32 %v8905_v1, %v4042_v14 }
0x1185   :  { %4123 = vrot.lane.b32.xlu1 %v4100_v37, %s6963_s12  ;;  %v4002_v37 = vsel %vm4001_vm12, %v8890_v56, %v3998_v28  ;;  %v8941_v43 = vsel %vm4034_vm13, %v4036_v11, %v4032_v27  ;;  %v4050_v56 = vand.u32 2147483648, %v8885_v35  ;;  %v4047_v2 = vsel %vm4046_vm2, %v8905_v1, %v4043_v59  ;;  %v205_v35 = vld [vmem:[#allocation10] sm:$0xff]  ;;  %vm9369_vm12 = vmmov %vm9368_vm9 }
0x1186   :  { %v8944_v21 = vsel %vm4004_vm14, %v4006_v6, %v4002_v37  ;;  %4710 = vmatpush.msrb.mxu3 %v205_v35  ;;  %vm9370_vm13 = vmmov %vm9367_vm0 }
0x1187   :  { %v4051_v22 = vor.u32 1.1754944e-38, %v4050_v56  ;;  %v9000_v56 = vld [vmem:[#allocation11] ss:$0 sm:$0xff]  ;;  %vm9371_vm14 = vmmov %vm9368_vm9 }
0x1188   :  { %vm9374_vm2 = vmmov %vm9373_vm1 }
0x1189   :  { %v8955_v41 = vsel %vm4049_vm10, %v4051_v22, %v4047_v2  ;;  %v4197_v22 = vrot.slane %v8767_v57, 7  ;;  %v9012_v57 = vld [vmem:[%s9322_s7] ss:$0 sm:$0xff]  ;;  %vm9375_vm10 = vmmov %vm9373_vm1 }
0x118a   :  { %v4074_v61 = vpop.permute.xlu0 %4073 }
0x118b   :  { %v4095_v12 = vmul.f32 %v4074_v61, %v8918_v49  ;;  %v4070_v36 = vpop.permute.xlu1 %4069 }
0x118c   :  { %v4093_v55 = vmul.f32 %v4070_v36, %v8922_v46 }
0x118d   :  { %4113 = vrot.lane.b32.xlu2 %v4095_v12, %s6963_s12 }
0x118e   :  { %4109 = vrot.lane.b32.xlu0 %v4093_v55, %s6963_s12 }
0x1192   :  { %v4080_v58 = vpop.permute.xlu0 %4079 }
0x1193   :  { %v4098_v7 = vmul.f32 %v4080_v58, %v8941_v43  ;;  %v4076_v17 = vpop.permute.xlu1 %4075 }
0x1194   :  { %v4096_v25 = vmul.f32 %v4076_v17, %v8944_v21 }
0x1195   :  { %4119 = vrot.lane.b32.xlu2 %v4098_v7, %s6963_s12 }
0x1196   :  { %4115 = vrot.lane.b32.xlu0 %v4096_v25, %s6963_s12 }
0x119b   :  { %v4082_v13 = vpop.permute.xlu1 %4081 }
0x119c   :  { %v4099_v51 = vmul.f32 %v4082_v13, %v8955_v41 }
0x119d   :  { %4663 = vrot.lane.b32.xlu2 %v7439_v30, %s6964_s3 }
0x119e   :  { %4121 = vrot.lane.b32.xlu0 %v4099_v51, %s6963_s12 }
0x11e7   :  { %v4114_v1 = vpop.permute.xlu2 %4113  ;;  %v4112_v61 = vpop.permute.xlu1 %4111 }
0x11e8   :  { %v4135_v12 = vadd.f32 %v4114_v1, %v7171_v38  ;;  %v4134_v36 = vadd.f32 %v4112_v61, %v7166_v34  ;;  %v4202_v61 = vrot.slane %v8787_v32, 7 }
0x11ea   :  { %6578 = vtanh.f32 %v4135_v12 }
0x11eb   :  { %6580 = vtanh.f32 %v4134_v36  ;;  %v4152_v36 = vsub.f32 1.0, %v8944_v21 }
0x11ef   :  { %v4120_v47 = vpop.permute.xlu2 %4119  ;;  %v4118_v30 = vpop.permute.xlu1 %4117 }
0x11f0   :  { %v6579_v54 = vpop.eup %6578  ;;  %v4138_v55 = vadd.f32 %v4120_v47, %v7173_v40  ;;  %v4137_v28 = vadd.f32 %v4118_v30, %v7180_v50  ;;  %v4200_v47 = vrot.slane %v8791_v52, 7 }
0x11f1   :  { %v6581_v18 = vpop.eup %6580  ;;  %4169 = vrot.lane.b32.xlu2 %v6579_v54, %s6964_s3 }
0x11f2   :  { %6582 = vtanh.f32 %v4138_v55  ;;  %4167 = vrot.lane.b32.xlu1 %v6581_v18, %s6964_s3  ;;  %v4215_v18 = vmul.f32 %v4200_v47, %v8944_v21  ;;  %v4156_v21 = vsub.f32 1.0, %v8899_v19 }
0x11f3   :  { %6584 = vtanh.f32 %v4137_v28  ;;  %v4217_v28 = vmul.f32 %v4202_v61, %v8941_v43 }
0x11f7   :  { %v8967_v63 = vpop.permute.xlu2 %4663  ;;  %v4124_v38 = vpop.permute.xlu1 %4123 }
0x11f8   :  { %v6583_v34 = vpop.eup %6582  ;;  %v4140_v44 = vadd.f32 %v4124_v38, %v7192_v62  ;;  %6142 = vmatmul.msk.f32.vlgmr.msrb.gmra.mxu3 %vm9366_vm11, %v8967_v63  ;;  %vm9376_vm11 = vmmov %vm9373_vm1 }
0x11f9   :  { %v6585_v60 = vpop.eup %6584  ;;  %4175 = vrot.lane.b32.xlu2 %v6583_v34, %s6964_s3 }
0x11fa   :  { %6586 = vtanh.f32 %v4140_v44  ;;  %4173 = vrot.lane.b32.xlu1 %v6585_v60, %s6964_s3 }
0x1200   :  { %v6587_v40 = vpop.eup %6586  ;;  %v4110_v50 = vpop.permute.xlu0 %4109 }
0x1201   :  { %v4133_v27 = vadd.f32 %v4110_v50, %v7164_v33  ;;  %4179 = vrot.lane.b32.xlu2 %v6587_v40, %s6964_s3 }
0x1203   :  { %6588 = vtanh.f32 %v4133_v27 }
0x1208   :  { %v4116_v11 = vpop.permute.xlu0 %4115 }
0x1209   :  { %v6589_v37 = vpop.eup %6588  ;;  %v4136_v62 = vadd.f32 %v4116_v11, %v7175_v42  ;;  %4671 = vrot.lane.b32.xlu2 %v8348_v24, %s6964_s3  ;;  %v4648_v42 = vsel %vm9367_vm0, %v8820_v31, %v8818_v3  ;;  %v4151_v3 = vsub.f32 1.0, %v8918_v49  ;;  %vm9377_vm0 = vmmov %vm9373_vm1 }
0x120a   :  { %4165 = vrot.lane.b32.xlu0 %v6589_v37, %s6964_s3  ;;  %v4155_v37 = vsub.f32 1.0, %v8955_v41 }
0x120b   :  { %6590 = vtanh.f32 %v4136_v62 }
0x1210   :  { %v4122_v14 = vpop.permute.xlu0 %4121 }
0x1211   :  { %v6591_v6 = vpop.eup %6590  ;;  %v4139_v58 = vadd.f32 %v4122_v14, %v7182_v53  ;;  %v4150_v53 = vsub.f32 1.0, %v8847_v0  ;;  %v4149_v0 = vsub.f32 1.0, %v8922_v46 }
0x1212   :  { %4171 = vrot.lane.b32.xlu0 %v6591_v6, %s6964_s3 }
0x1213   :  { %6592 = vtanh.f32 %v4139_v58 }
0x1219   :  { %v6593_v33 = vpop.eup %6592 }
0x121a   :  { %4665 = vrot.lane.b32.xlu0 %v7669_v45, %s6964_s3  ;;  %4177 = vrot.lane.b32.xlu1 %v6593_v33, %s6964_s3 }
0x1222   :  { %4667 = vrot.lane.b32.xlu0 %v7902_v10, %s6964_s3  ;;  %4669 = vrot.lane.b32.xlu1 %v8124_v4, %s6964_s3  ;;  %v4153_v10 = vsub.f32 1.0, %v8849_v23 }
0x122a   :  { %4673 = vrot.lane.b32.xlu0 %v8587_v15, %s6964_s3  ;;  %4675 = vrot.lane.b32.xlu1 %v4648_v42, %s6964_s3  ;;  %v4199_v15 = vrot.slane %v8763_v48, 7  ;;  %v4154_v48 = vsub.f32 1.0, %v8941_v43  ;;  %v4203_v43 = vrot.slane %v8812_v8, 7  ;;  %v4219_v8 = vmul.f32 %v8899_v19, %v8820_v31 }
0x122c   :  { %v4218_v58 = vmul.f32 %v4203_v43, %v8955_v41 }
0x124b   :  { %v4170_v59 = vpop.permute.xlu2 %4169 }
0x124c   :  { %v4191_v26 = vmul.f32 %v4170_v59, %v4151_v3 }
0x1253   :  { %v4176_v29 = vpop.permute.xlu2 %4175 }
0x1254   :  { %v4194_v12 = vmul.f32 %v4176_v29, %v4154_v48 }
0x1256   :  { %v4225_v44 = vadd.f32 %v4217_v28, %v4194_v12 }
0x1258   :  { %v4658_v27 = vrot.slane %v4225_v44, 2 }
0x125b   :  { %v4180_v52 = vpop.permute.xlu2 %4179 }
0x1264   :  { %v4168_v45 = vpop.permute.xlu1 %4167 }
0x1265   :  { %v4190_v24 = vmul.f32 %v4168_v45, %v4150_v53  ;;  %v4196_v53 = vmul.f32 %v4180_v52, %v4156_v21  ;;  %v9086_v52 = vld [vmem:[#allocation14 + $0x10] sm:$0xff] }
0x1267   :  { %v4221_v7 = vadd.f32 %v8854_v16, %v4190_v24  ;;  %v4214_v16 = vmul.f32 %v4199_v15, %v8918_v49 }
0x1269   :  { %v4222_v5 = vadd.f32 %v4214_v16, %v4191_v26  ;;  %v4650_v35 = vrot.slane %v4221_v7, 6  ;;  %v4227_v7 = vadd.f32 %v4219_v8, %v4196_v53  ;;  %v4853_v8 = vld [vmem:[#allocation13 + $0x18] sm:$0xff] }
0x126a   :  { %4884 = vmatpush.msrb.mxu1 %v4853_v8 }
0x126b   :  { %v4652_v49 = vrot.slane %v4222_v5, 5 }
0x126c   :  { %v4174_v17 = vpop.permute.xlu1 %4173 }
0x126d   :  { %v4193_v25 = vmul.f32 %v4174_v17, %v4153_v10 }
0x126f   :  { %v4224_v4 = vadd.f32 %v8857_v39, %v4193_v25  ;;  %v4212_v39 = vmul.f32 %v4197_v22, %v8922_v46 }
0x1271   :  { %v4656_v50 = vrot.slane %v4224_v4, 3  ;;  %v9047_v4 = vpop.permute.xlu2 %4671 }
0x127b   :  { %v4712_v2 = vpop.f32.mrf.mxu3 }
0x127c   :  { %v4713_v23 = vadd.f32 %v9000_v56, %v4712_v2  ;;  %v4166_v13 = vpop.permute.xlu0 %4165 }
0x127d   :  { %v4189_v51 = vmul.f32 %v4166_v13, %v4149_v0 }
0x127e   :  { %6594 = vtanh.f32 %v4713_v23 }
0x127f   :  { %v4220_v20 = vadd.f32 %v4212_v39, %v4189_v51 }
0x1281   :  { %v4649_v1 = vrot.slane %v4220_v20, 7 }
0x1283   :  { %v4651_v46 = vsel %vm651_vm3, %v4650_v35, %v4649_v1 }
0x1284   :  { %v6595_v30 = vpop.eup %6594  ;;  %v4653_v54 = vsel %vm654_vm4, %v4652_v49, %v4651_v46  ;;  %v4172_v55 = vpop.permute.xlu0 %4171 }
0x1285   :  { %v4192_v38 = vmul.f32 %v4172_v55, %v4152_v36  ;;  %v4747_v34 = vmul.f32 %v6595_v30, %v9012_v57 }
0x1287   :  { %v4223_v32 = vadd.f32 %v4215_v18, %v4192_v38  ;;  %v4755_v60 = vsel %vm9368_vm9, %v4747_v34, 0.0  ;;  %vm9378_vm9 = vmmov %vm9377_vm0 }
0x1288   :  { %4756 = vadd.xlane.f32.xlu0 %v4755_v60 }
0x1289   :  { %v4654_v40 = vrot.slane %v4223_v32, 4 }
0x128b   :  { %v4655_v11 = vsel %vm657_vm5, %v4654_v40, %v4653_v54 }
0x128c   :  { %v4657_v62 = vsel %vm660_vm6, %v4656_v50, %v4655_v11  ;;  %v4178_v14 = vpop.permute.xlu1 %4177  ;;  %v9028_v6 = vpop.permute.xlu0 %4665  ;;  %v9089_v11 = vld [vmem:[#allocation14 + $0x8] sm:$0xff] }
0x128d   :  { %v4195_v33 = vmul.f32 %v4178_v14, %v4155_v37  ;;  %6143 = vmatmul.msk.f32.gmra.mxu3 %vm9369_vm12, %v9028_v6  ;;  %v4659_v42 = vsel %vm663_vm7, %v4658_v27, %v4657_v62  ;;  %vm9379_vm12 = vmmov %vm9377_vm0  ;;  %v9084_v27 = vld [vmem:[#allocation14 + $0x18] sm:$0xff]  ;;  %v9092_v37 = vld [vmem:[#allocation14] sm:$0xff] }
0x128e   :  { %4904 = vmatpush.msrb.mxu2 %v9084_v27 }
0x128f   :  { %v4226_v45 = vadd.f32 %v4218_v58, %v4195_v33 }
0x1290   :  { %4905 = vmatpush.msrb.mxu2 %v9086_v52 }
0x1291   :  { %v4660_v24 = vrot.slane %v4226_v45, 1 }
0x1292   :  { %4906 = vmatpush.msrb.mxu2 %v9089_v11 }
0x1293   :  { %v4661_v10 = vsel %vm666_vm8, %v4660_v24, %v4659_v42  ;;  %v4852_v24 = vld [vmem:[#allocation13 + $0x10] sm:$0xff] }
0x1294   :  { %v9037_v17 = vpop.permute.xlu0 %4667  ;;  %v4662_v25 = vsel %vm9370_vm13, %v4227_v7, %v4661_v10  ;;  %v9043_v41 = vpop.permute.xlu1 %4669  ;;  %vm9380_vm13 = vmmov %vm9377_vm0  ;;  %4907 = vmatpush.msrb.mxu2 %v9092_v37  ;;  %4885 = vmatpush.msrb.mxu1 %v4852_v24 }
0x1295   :  { %4677 = vrot.lane.b32.xlu2 %v4662_v25, %s6964_s3  ;;  %6144 = vmatmul.msk.f32.gmra.mxu3 %vm9371_vm14, %v9037_v17  ;;  %vm9381_vm14 = vmmov %vm9377_vm0  ;;  %v4851_v25 = vld [vmem:[#allocation13 + $0x8] sm:$0xff] }
0x1296   :  { %4908 = vmatmul.f32.vlgmr.msrb.gmra.mxu2 %v6962_v9  ;;  %4886 = vmatpush.msrb.mxu1 %v4851_v25 }
0x1297   :  { %5048 = vmatpush.msra.mxu2 %v9084_v27 }
0x1299   :  { %5049 = vmatpush.msra.mxu2 %v9086_v52 }
0x129b   :  { %5050 = vmatpush.msra.mxu2 %v9089_v11 }
0x129c   :  { %v9051_v31 = vpop.permute.xlu0 %4673  ;;  %v9055_v19 = vpop.permute.xlu1 %4675 }
0x129d   :  { %6145 = vmatmul.msk.f32.gmra.mxu3 %vm9372_vm15, %v9043_v41  ;;  %vm9382_vm15 = vmmov %vm9377_vm0  ;;  %5051 = vmatpush.msra.mxu2 %v9092_v37 }
0x129f   :  { %5216 = vmatpush.msrb.mxu2 %v9084_v27 }
0x12a1   :  { %5217 = vmatpush.msrb.mxu2 %v9086_v52 }
0x12a3   :  { %5218 = vmatpush.msrb.mxu2 %v9089_v11 }
0x12a5   :  { %6146 = vmatmul.msk.f32.gmra.mxu3 %vm9373_vm1, %v9047_v4  ;;  %vm9383_vm1 = vmmov %vm9377_vm0  ;;  %5219 = vmatpush.msrb.mxu2 %v9092_v37 }
0x12ad   :  { %6147 = vmatmul.msk.f32.gmra.mxu3 %vm9374_vm2, %v9051_v31  ;;  %vm9384_vm2 = vmmov %vm9377_vm0 }
0x12b5   :  { %6148 = vmatmul.msk.f32.gmra.mxu3 %vm9375_vm10, %v9055_v19  ;;  %vm9385_vm10 = vmmov %vm9377_vm0 }
0x12ef   :  { %v9059_v59 = vpop.permute.xlu2 %4677 }
0x12f0   :  { %6149 = vmatmul.msk.f32.gmra.mxu3 %vm9376_vm11, %v9059_v59  ;;  %vm9386_vm11 = vmmov %vm9377_vm0 }
0x1310   :  { %v4715_v3 = vpop.f32.mrf.mxu3 }
0x1311   :  { %v4716_v15 = vadd.f32 %v9000_v56, %v4715_v3 }
0x1313   :  { %6596 = vtanh.f32 %v4716_v15  ;;  %v4850_v15 = vld [vmem:[#allocation13] sm:$0xff] }
0x1314   :  { %4887 = vmatpush.msrb.mxu1 %v4850_v15  ;;  %v6207_v15 = vld [vmem:[%s9325_s10] ss:$0 sm:$0xff] }
0x1316   :  { %4970 = vmatpush.msra.mxu1 %v9084_v27 }
0x1318   :  { %v4718_v26 = vpop.f32.mrf.mxu3  ;;  %4971 = vmatpush.msra.mxu1 %v9086_v52 }
0x1319   :  { %v6597_v2 = vpop.eup %6596  ;;  %v4719_v0 = vadd.f32 %v9000_v56, %v4718_v26 }
0x131a   :  { %v4748_v22 = vmul.f32 %v6597_v2, %v9012_v57  ;;  %4972 = vmatpush.msra.mxu1 %v9089_v11 }
0x131b   :  { %6598 = vtanh.f32 %v4719_v0 }
0x131c   :  { %v4758_v16 = vsel %vm9377_vm0, %v4748_v22, 0.0  ;;  %4973 = vmatpush.msra.mxu1 %v9092_v37 }
0x131d   :  { %4759 = vadd.xlane.f32.xlu1 %v4758_v16 }
0x1320   :  { %v4721_v23 = vpop.f32.mrf.mxu3 }
0x1321   :  { %v6599_v13 = vpop.eup %6598  ;;  %v4722_v39 = vadd.f32 %v9000_v56, %v4721_v23 }
0x1322   :  { %v4749_v51 = vmul.f32 %v6599_v13, %v9012_v57 }
0x1323   :  { %6600 = vtanh.f32 %v4722_v39 }
0x1324   :  { %v4761_v5 = vsel %vm9378_vm9, %v4749_v51, 0.0  ;;  %vm9387_vm9 = vmmov %vm9377_vm0 }
0x1325   :  { %4762 = vadd.xlane.f32.xlu2 %v4761_v5 }
0x1328   :  { %v4724_v20 = vpop.f32.mrf.mxu3 }
0x1329   :  { %v6601_v29 = vpop.eup %6600  ;;  %v4725_v48 = vadd.f32 %v9000_v56, %v4724_v20 }
0x132a   :  { %v4750_v35 = vmul.f32 %v6601_v29, %v9012_v57 }
0x132b   :  { %6602 = vtanh.f32 %v4725_v48 }
0x132c   :  { %v4764_v1 = vsel %vm9379_vm12, %v4750_v35, 0.0  ;;  %vm9388_vm12 = vmmov %vm9377_vm0 }
0x132d   :  { %4765 = vadd.xlane.f32.xlu2 %v4764_v1 }
0x1330   :  { %v4727_v49 = vpop.f32.mrf.mxu3 }
0x1331   :  { %v6603_v61 = vpop.eup %6602  ;;  %v4728_v12 = vadd.f32 %v9000_v56, %v4727_v49 }
0x1332   :  { %v4751_v46 = vmul.f32 %v6603_v61, %v9012_v57 }
0x1333   :  { %6604 = vtanh.f32 %v4728_v12 }
0x1334   :  { %v4767_v36 = vsel %vm9380_vm13, %v4751_v46, 0.0  ;;  %vm9389_vm13 = vmmov %vm9377_vm0 }
0x1335   :  { %4768 = vadd.xlane.f32.xlu0 %v4767_v36 }
0x1338   :  { %v4730_v47 = vpop.f32.mrf.mxu3 }
0x1339   :  { %v6605_v30 = vpop.eup %6604  ;;  %v4731_v54 = vadd.f32 %v9000_v56, %v4730_v47 }
0x133a   :  { %v4752_v55 = vmul.f32 %v6605_v30, %v9012_v57 }
0x133b   :  { %6606 = vtanh.f32 %v4731_v54 }
0x133c   :  { %v4770_v28 = vsel %vm9381_vm14, %v4752_v55, 0.0  ;;  %vm9390_vm14 = vmmov %vm9377_vm0 }
0x133d   :  { %4771 = vadd.xlane.f32.xlu1 %v4770_v28 }
0x1341   :  { %v6607_v18 = vpop.eup %6606 }
0x1342   :  { %v4753_v38 = vmul.f32 %v6607_v18, %v9012_v57 }
0x1344   :  { %v4773_v34 = vsel %vm9382_vm15, %v4753_v38, 0.0  ;;  %vm9391_vm15 = vmmov %vm9377_vm0 }
0x1345   :  { %4774 = vadd.xlane.f32.xlu2 %v4773_v34 }
0x1373   :  { %v4733_v44 = vpop.f32.mrf.mxu3 }
0x1374   :  { %v4734_v32 = vadd.f32 %v9000_v56, %v4733_v44 }
0x1376   :  { %6608 = vtanh.f32 %v4734_v32 }
0x137c   :  { %v6609_v60 = vpop.eup %6608 }
0x137d   :  { %v4754_v40 = vmul.f32 %v6609_v60, %v9012_v57  ;;  %v4757_v57 = vpop.xlane.xlu0 %4756 }
0x137f   :  { %v4776_v50 = vsel %vm9383_vm1, %v4754_v40, 0.0 }
0x1380   :  { %4777 = vadd.xlane.f32.xlu0 %v4776_v50 }
0x1390   :  { %v4760_v43 = vpop.xlane.xlu1 %4759 }
0x1398   :  { %v4763_v56 = vpop.xlane.xlu2 %4762 }
0x13a0   :  { %v4766_v9 = vpop.xlane.xlu2 %4765 }
0x13a8   :  { %v4769_v21 = vpop.xlane.xlu0 %4768 }
0x13a9   :  { %v4779_v42 = vmax.f32 %v4757_v57, %v4769_v21 }
0x13b0   :  { %v4772_v62 = vpop.xlane.xlu1 %4771 }
0x13b1   :  { %v4780_v58 = vmax.f32 %v4760_v43, %v4772_v62 }
0x13b3   :  { %v4783_v7 = vmax.f32 %v4779_v42, %v4780_v58 }
0x13b8   :  { %v4775_v14 = vpop.xlane.xlu2 %4774 }
0x13b9   :  { %v4781_v53 = vmax.f32 %v4763_v56, %v4775_v14 }
0x13f3   :  { %v4778_v33 = vpop.xlane.xlu0 %4777 }
0x13f4   :  { %v4782_v45 = vmax.f32 %v4766_v9, %v4778_v33 }
0x13f6   :  { %v4784_v10 = vmax.f32 %v4781_v53, %v4782_v45 }
0x13f8   :  { %v4785_v3 = vmax.f32 %v4783_v7, %v4784_v10 }
0x13fa   :  { %v4786_v26 = vsub.f32 %v4757_v57, %v4785_v3  ;;  %v4787_v2 = vsub.f32 %v4760_v43, %v4785_v3  ;;  %v4788_v0 = vsub.f32 %v4763_v56, %v4785_v3  ;;  %v4789_v22 = vsub.f32 %v4766_v9, %v4785_v3 }
0x13fb   :  { %v4790_v16 = vsub.f32 %v4769_v21, %v4785_v3  ;;  %v4791_v23 = vsub.f32 %v4772_v62, %v4785_v3  ;;  %v4792_v29 = vsub.f32 %v4775_v14, %v4785_v3  ;;  %v4793_v35 = vsub.f32 %v4778_v33, %v4785_v3 }
0x13fc   :  { %v4794_v13 = vmul.f32 1.442695, %v4786_v26  ;;  %v4796_v39 = vmul.f32 1.442695, %v4787_v2  ;;  %v4798_v51 = vmul.f32 1.442695, %v4788_v0 }
0x13fd   :  { %v4800_v5 = vmul.f32 1.442695, %v4789_v22  ;;  %v4802_v20 = vmul.f32 1.442695, %v4790_v16  ;;  %v4804_v48 = vmul.f32 1.442695, %v4791_v23 }
0x13fe   :  { %6610 = vpow2.f32 %v4794_v13  ;;  %v4806_v1 = vmul.f32 1.442695, %v4792_v29  ;;  %v4808_v54 = vmul.f32 1.442695, %v4793_v35 }
0x13ff   :  { %6612 = vpow2.f32 %v4796_v39 }
0x1400   :  { %6614 = vpow2.f32 %v4798_v51 }
0x1401   :  { %6616 = vpow2.f32 %v4800_v5 }
0x1402   :  { %6618 = vpow2.f32 %v4802_v20 }
0x1403   :  { %6620 = vpow2.f32 %v4804_v48 }
0x1404   :  { %v6611_v49 = vpop.eup %6610  ;;  %6622 = vpow2.f32 %v4806_v1 }
0x1405   :  { %v6613_v61 = vpop.eup %6612  ;;  %v4825_v12 = vmul.f32 %v6611_v49, %v8967_v63  ;;  %6624 = vpow2.f32 %v4808_v54 }
0x1406   :  { %v6615_v46 = vpop.eup %6614  ;;  %v4810_v36 = vadd.f32 %v6613_v61, %v6611_v49  ;;  %v4826_v47 = vmul.f32 %v6613_v61, %v9028_v6 }
0x1407   :  { %v6617_v30 = vpop.eup %6616  ;;  %v4827_v55 = vmul.f32 %v6615_v46, %v9037_v17  ;;  %v4833_v28 = vsel %vm9384_vm2, %v4825_v12, 0.0 }
0x1408   :  { %v6619_v18 = vpop.eup %6618  ;;  %v4811_v38 = vadd.f32 %v6615_v46, %v4810_v36  ;;  %v4828_v34 = vmul.f32 %v6617_v30, %v9043_v41  ;;  %v4834_v44 = vsel %vm9385_vm10, %v4826_v47, 0.0 }
0x1409   :  { %v6621_v32 = vpop.eup %6620  ;;  %v4835_v60 = vadd.f32 %v4834_v44, %v4833_v28  ;;  %v4829_v40 = vmul.f32 %v6619_v18, %v9047_v4  ;;  %v4836_v6 = vsel %vm9386_vm11, %v4827_v55, 0.0 }
0x140a   :  { %v4812_v63 = vadd.f32 %v6617_v30, %v4811_v38  ;;  %v4830_v17 = vmul.f32 %v6621_v32, %v9051_v31  ;;  %v4838_v57 = vsel %vm9377_vm0, %v4828_v34, 0.0  ;;  %v6623_v43 = vpop.eup %6622 }
0x140b   :  { %v4837_v50 = vadd.f32 %v4836_v6, %v4835_v60  ;;  %v4840_v41 = vsel %vm9387_vm9, %v4829_v40, 0.0  ;;  %v4831_v58 = vmul.f32 %v6623_v43, %v9055_v19  ;;  %v6625_v33 = vpop.eup %6624  ;;  %v9134_v19 = vld [vmem:[%s9326_s11] sm:$0x1] }
0x140c   :  { %v4813_v56 = vadd.f32 %v6619_v18, %v4812_v63  ;;  %v4842_v4 = vsel %vm9388_vm12, %v4830_v17, 0.0  ;;  %v4832_v45 = vmul.f32 %v6625_v33, %v9059_v59  ;;  %v4909_v59 = vpop.f32.mrf.mxu2 }
0x140d   :  { %v4839_v9 = vadd.f32 %v4838_v57, %v4837_v50  ;;  %v4844_v31 = vsel %vm9389_vm13, %v4831_v58, 0.0  ;;  %v4910_v3 = vadd.f32 %v4909_v59, %v9134_v19 }
0x140e   :  { %v4814_v21 = vadd.f32 %v6621_v32, %v4813_v56  ;;  %v4846_v24 = vsel %vm9390_vm14, %v4832_v45, 0.0 }
0x140f   :  { %v4841_v62 = vadd.f32 %v4840_v41, %v4839_v9  ;;  %4933 = vrot.lane.b32.xlu1 %v4910_v3, %s6963_s12 }
0x1410   :  { %v4815_v14 = vadd.f32 %v6623_v43, %v4814_v21 }
0x1411   :  { %v4843_v42 = vadd.f32 %v4842_v4, %v4841_v62 }
0x1412   :  { %v4816_v53 = vadd.f32 %v6625_v33, %v4815_v14 }
0x1413   :  { %v4845_v8 = vadd.f32 %v4844_v31, %v4843_v42 }
0x1414   :  { %6626 = vrcp.f32 %v4816_v53 }
0x1415   :  { %v4847_v7 = vadd.f32 %v4846_v24, %v4845_v8 }
0x141a   :  { %v6627_v10 = vpop.eup %6626 }
0x141b   :  { %v9125_v25 = vmul.f32 %v6627_v10, %v4847_v7 }
0x141d   :  { %6150 = vmatmul.msk.f32.vlgmr.msrb.gmra.mxu1 %vm9391_vm15, %v9125_v25  ;;  %vm9392_vm15 = vmmov %vm9377_vm0 }
0x141e   :  { %5130 = vmatpush.msrb.mxu1 %v9084_v27 }
0x1420   :  { %5131 = vmatpush.msrb.mxu1 %v9086_v52 }
0x1422   :  { %5132 = vmatpush.msrb.mxu1 %v9089_v11 }
0x1424   :  { %5133 = vmatpush.msrb.mxu1 %v9092_v37 }
0x1481   :  { %v4934_v35 = vpop.permute.xlu1 %4933 }
0x149a   :  { %v4889_v26 = vpop.f32.mrf.mxu1 }
0x149b   :  { %v9143_v2 = vadd.f32 %v6207_v15, %v4889_v26 }
0x149d   :  { %v4912_v0 = vadd.f32 %v4910_v3, %v9143_v2 }
0x149f   :  { %v6151_v22 = vmul.f32 -1.442695, %v4912_v0 }
0x14a1   :  { %6628 = vpow2.f32 %v6151_v22 }
0x14a7   :  { %v6629_v16 = vpop.eup %6628 }
0x14a8   :  { %v4916_v23 = vadd.f32 1.0, %v6629_v16 }
0x14aa   :  { %6630 = vrcp.f32 %v4916_v23  ;;  %v4928_v5 = vand.u32 2147483648, %v4916_v23  ;;  %v4926_v29 = vand.u32 2147483647, %v4916_v23  ;;  %vm4922_vm2 = vweird.f32 %v4916_v23 }
0x14ac   :  { %v4929_v1 = vor.u32 1.1754944e-38, %v4928_v5  ;;  %vm4927_vm11 = vcmp.eq.f32.partialorder %v4926_v29, 8.507059e+37 }
0x14b0   :  { %v6631_v13 = vpop.eup %6630 }
0x14b1   :  { %v4918_v39 = vmul.f32 %v6631_v13, %v4916_v23  ;;  %vm4923_vm1 = vweird.f32 %v6631_v13 }
0x14b2   :  { %vm4924_vm10 = vmor %vm4922_vm2, %vm4923_vm1 }
0x14b3   :  { %v4919_v51 = vsub.f32 1.0, %v4918_v39 }
0x14b5   :  { %v4920_v20 = vmul.f32 %v6631_v13, %v4919_v51 }
0x14b7   :  { %v4921_v48 = vadd.f32 %v6631_v13, %v4920_v20 }
0x14b9   :  { %v4925_v49 = vsel %vm4924_vm10, %v6631_v13, %v4921_v48 }
0x14ba   :  { %v4930_v61 = vsel %vm4927_vm11, %v4929_v1, %v4925_v49 }
0x14bb   :  { %v4936_v12 = vmul.f32 %v4934_v35, %v4930_v61  ;;  %v4943_v30 = vsub.f32 1.0, %v4930_v61  ;;  %v4949_v55 = vmul.f32 0.0, %v4930_v61 }
0x14bd   :  { %4938 = vrot.lane.b32.xlu2 %v4936_v12, %s6963_s12 }
0x1517   :  { %v4939_v46 = vpop.permute.xlu2 %4938 }
0x1518   :  { %v4941_v36 = vadd.f32 %v4939_v46, %v9143_v2 }
0x151a   :  { %6632 = vtanh.f32 %v4941_v36 }
0x1520   :  { %v6633_v47 = vpop.eup %6632 }
0x1521   :  { %4945 = vrot.lane.b32.xlu0 %v6633_v47, %s6964_s3 }
0x1593   :  { %v4946_v54 = vpop.permute.xlu0 %4945 }
0x1594   :  { %v4948_v28 = vmul.f32 %v4946_v54, %v4943_v30 }
0x1596   :  { %v9149_v18 = vadd.f32 %v4949_v55, %v4948_v28 }
0x1598   :  { %4954 = vrot.lane.b32.xlu1 %v9149_v18, %s6964_s3  ;;  %v5017_v31 = vrot.slane %v9149_v18, 7 }
0x160a   :  { %v4955_v38 = vpop.permute.xlu1 %4954 }
0x160b   :  { %6152 = vmatmul.msk.f32.vlgmr.msra.gmra.mxu1 %vm9377_vm0, %v4955_v38 }
0x160c   :  { %5306 = vmatpush.msra.mxu1 %v9084_v27 }
0x160e   :  { %5307 = vmatpush.msra.mxu1 %v9086_v52 }
0x1610   :  { %5308 = vmatpush.msra.mxu1 %v9089_v11 }
0x1612   :  { %5309 = vmatpush.msra.mxu1 %v9092_v37 }
0x1688   :  { %v4975_v34 = vpop.f32.mrf.mxu1 }
0x1689   :  { %v4976_v44 = vadd.f32 %v4975_v34, %v9134_v19 }
0x168b   :  { %v4979_v32 = vrot.slane %v4976_v44, 7 }
0x168d   :  { %5001 = vrot.lane.b32.xlu0 %v4979_v32, %s6963_s12  ;;  %v4981_v60 = vadd.f32 %v4979_v32, %v9143_v2 }
0x168f   :  { %v6153_v63 = vmul.f32 -1.442695, %v4981_v60 }
0x1691   :  { %6634 = vpow2.f32 %v6153_v63 }
0x1697   :  { %v6635_v40 = vpop.eup %6634 }
0x1698   :  { %v4985_v6 = vadd.f32 1.0, %v6635_v40 }
0x169a   :  { %6636 = vrcp.f32 %v4985_v6  ;;  %v4997_v9 = vand.u32 2147483648, %v4985_v6  ;;  %vm4991_vm12 = vweird.f32 %v4985_v6  ;;  %v4995_v21 = vand.u32 2147483647, %v4985_v6 }
0x169c   :  { %v4998_v62 = vor.u32 1.1754944e-38, %v4997_v9  ;;  %vm4996_vm14 = vcmp.eq.f32.partialorder %v4995_v21, 8.507059e+37 }
0x16a0   :  { %v6637_v50 = vpop.eup %6636 }
0x16a1   :  { %v4987_v56 = vmul.f32 %v6637_v50, %v4985_v6  ;;  %vm4992_vm9 = vweird.f32 %v6637_v50 }
0x16a2   :  { %vm4993_vm13 = vmor %vm4991_vm12, %vm4992_vm9 }
0x16a3   :  { %v4988_v17 = vsub.f32 1.0, %v4987_v56 }
0x16a5   :  { %v4989_v57 = vmul.f32 %v6637_v50, %v4988_v17 }
0x16a7   :  { %v4990_v43 = vadd.f32 %v6637_v50, %v4989_v57 }
0x16a9   :  { %v4994_v41 = vsel %vm4993_vm13, %v6637_v50, %v4990_v43 }
0x16aa   :  { %v4999_v58 = vsel %vm4996_vm14, %v4998_v62, %v4994_v41 }
0x16ab   :  { %v5011_v45 = vsub.f32 1.0, %v4999_v58  ;;  %v5019_v7 = vmul.f32 %v5017_v31, %v4999_v58 }
0x16ff   :  { %v5002_v14 = vpop.permute.xlu0 %5001 }
0x1700   :  { %v5004_v4 = vmul.f32 %v5002_v14, %v4999_v58 }
0x1702   :  { %5006 = vrot.lane.b32.xlu2 %v5004_v4, %s6963_s12 }
0x175c   :  { %v5007_v33 = vpop.permute.xlu2 %5006 }
0x175d   :  { %v5009_v42 = vadd.f32 %v5007_v33, %v9143_v2 }
0x175f   :  { %6638 = vtanh.f32 %v5009_v42 }
0x1765   :  { %v6639_v53 = vpop.eup %6638 }
0x1766   :  { %5013 = vrot.lane.b32.xlu1 %v6639_v53, %s6964_s3 }
0x17d8   :  { %v5014_v8 = vpop.permute.xlu1 %5013 }
0x17d9   :  { %v5016_v24 = vmul.f32 %v5014_v8, %v5011_v45 }
0x17db   :  { %v9165_v10 = vadd.f32 %v5019_v7, %v5016_v24 }
0x17dd   :  { %v5031_v59 = vrot.slane %v9165_v10, 1  ;;  %v5095_v61 = vrot.slane %v9165_v10, 7 }
0x17df   :  { %5032 = vrot.lane.b32.xlu0 %v5031_v59, %s6964_s3 }
0x1851   :  { %v5033_v3 = vpop.permute.xlu0 %5032 }
0x1852   :  { %6154 = vmatmul.msk.f32.vlgmr.msra.gmra.mxu2 %vm9392_vm15, %v5033_v3  ;;  %vm9393_vm15 = vmmov %vm9377_vm0 }
0x1853   :  { %5400 = vmatpush.msra.mxu2 %v9084_v27 }
0x1855   :  { %5401 = vmatpush.msra.mxu2 %v9086_v52 }
0x1857   :  { %5402 = vmatpush.msra.mxu2 %v9089_v11 }
0x1859   :  { %5403 = vmatpush.msra.mxu2 %v9092_v37 }
0x18d5   :  { %v5053_v15 = vpop.f32.mrf.mxu2 }
0x18d6   :  { %v5054_v26 = vadd.f32 %v5053_v15, %v9134_v19 }
0x18d8   :  { %v5057_v0 = vrot.slane %v5054_v26, 6 }
0x18da   :  { %v5059_v22 = vadd.f32 %v5057_v0, %v9143_v2  ;;  %5079 = vrot.lane.b32.xlu2 %v5057_v0, %s6963_s12 }
0x18dc   :  { %v6155_v16 = vmul.f32 -1.442695, %v5059_v22 }
0x18de   :  { %6640 = vpow2.f32 %v6155_v16 }
0x18e4   :  { %v6641_v23 = vpop.eup %6640 }
0x18e5   :  { %v5063_v13 = vadd.f32 1.0, %v6641_v23 }
0x18e7   :  { %6642 = vrcp.f32 %v5063_v13  ;;  %v5075_v20 = vand.u32 2147483648, %v5063_v13  ;;  %v5073_v48 = vand.u32 2147483647, %v5063_v13  ;;  %vm5069_vm2 = vweird.f32 %v5063_v13 }
0x18e9   :  { %v5076_v1 = vor.u32 1.1754944e-38, %v5075_v20  ;;  %vm5074_vm11 = vcmp.eq.f32.partialorder %v5073_v48, 8.507059e+37 }
0x18ed   :  { %v6643_v39 = vpop.eup %6642 }
0x18ee   :  { %v5065_v51 = vmul.f32 %v6643_v39, %v5063_v13  ;;  %vm5070_vm1 = vweird.f32 %v6643_v39 }
0x18ef   :  { %vm5071_vm10 = vmor %vm5069_vm2, %vm5070_vm1 }
0x18f0   :  { %v5066_v5 = vsub.f32 1.0, %v5065_v51 }
0x18f2   :  { %v5067_v29 = vmul.f32 %v6643_v39, %v5066_v5 }
0x18f4   :  { %v5068_v35 = vadd.f32 %v6643_v39, %v5067_v29 }
0x18f6   :  { %v5072_v49 = vsel %vm5071_vm10, %v6643_v39, %v5068_v35 }
0x18f7   :  { %v5077_v12 = vsel %vm5074_vm11, %v5076_v1, %v5072_v49 }
0x18f8   :  { %v5097_v46 = vmul.f32 %v5095_v61, %v5077_v12  ;;  %v5089_v28 = vsub.f32 1.0, %v5077_v12 }
0x1934   :  { %v5080_v36 = vpop.permute.xlu2 %5079 }
0x1935   :  { %v5082_v47 = vmul.f32 %v5080_v36, %v5077_v12 }
0x1937   :  { %5084 = vrot.lane.b32.xlu1 %v5082_v47, %s6963_s12 }
0x19a9   :  { %v5085_v30 = vpop.permute.xlu1 %5084 }
0x19aa   :  { %v5087_v54 = vadd.f32 %v5085_v30, %v9143_v2 }
0x19ac   :  { %6644 = vtanh.f32 %v5087_v54 }
0x19b2   :  { %v6645_v55 = vpop.eup %6644 }
0x19b3   :  { %5091 = vrot.lane.b32.xlu0 %v6645_v55, %s6964_s3 }
0x1a25   :  { %v5092_v38 = vpop.permute.xlu0 %5091 }
0x1a26   :  { %v5094_v34 = vmul.f32 %v5092_v38, %v5089_v28 }
0x1a28   :  { %v9181_v44 = vadd.f32 %v5097_v46, %v5094_v34 }
0x1a2a   :  { %v5113_v32 = vrot.slane %v9181_v44, 2  ;;  %v5177_v31 = vrot.slane %v9181_v44, 7 }
0x1a2c   :  { %5114 = vrot.lane.b32.xlu2 %v5113_v32, %s6964_s3 }
0x1a86   :  { %v5115_v60 = vpop.permute.xlu2 %5114 }
0x1a87   :  { %6158 = vmatmul.msk.f32.vlgmr.msrb.gmra.mxu1 %vm9377_vm0, %v5115_v60 }
0x1a88   :  { %5498 = vmatpush.msrb.mxu1 %v9084_v27 }
0x1a8a   :  { %5499 = vmatpush.msrb.mxu1 %v9086_v52 }
0x1a8c   :  { %5500 = vmatpush.msrb.mxu1 %v9089_v11 }
0x1a8e   :  { %5501 = vmatpush.msrb.mxu1 %v9092_v37 }
0x1b04   :  { %v5135_v63 = vpop.f32.mrf.mxu1 }
0x1b05   :  { %v5136_v40 = vadd.f32 %v5135_v63, %v9134_v19 }
0x1b07   :  { %v5139_v6 = vrot.slane %v5136_v40, 5 }
0x1b09   :  { %5161 = vrot.lane.b32.xlu1 %v5139_v6, %s6963_s12  ;;  %v5141_v50 = vadd.f32 %v5139_v6, %v9143_v2 }
0x1b0b   :  { %v6159_v56 = vmul.f32 -1.442695, %v5141_v50 }
0x1b0d   :  { %6646 = vpow2.f32 %v6159_v56 }
0x1b13   :  { %v6647_v17 = vpop.eup %6646 }
0x1b14   :  { %v5145_v57 = vadd.f32 1.0, %v6647_v17 }
0x1b16   :  { %6648 = vrcp.f32 %v5145_v57  ;;  %v5157_v37 = vand.u32 2147483648, %v5145_v57  ;;  %vm5151_vm12 = vweird.f32 %v5145_v57  ;;  %v5155_v21 = vand.u32 2147483647, %v5145_v57 }
0x1b18   :  { %v5158_v62 = vor.u32 1.1754944e-38, %v5157_v37  ;;  %vm5156_vm14 = vcmp.eq.f32.partialorder %v5155_v21, 8.507059e+37 }
0x1b1c   :  { %v6649_v27 = vpop.eup %6648 }
0x1b1d   :  { %v5147_v43 = vmul.f32 %v6649_v27, %v5145_v57  ;;  %vm5152_vm9 = vweird.f32 %v6649_v27 }
0x1b1e   :  { %vm5153_vm13 = vmor %vm5151_vm12, %vm5152_vm9 }
0x1b1f   :  { %v5148_v52 = vsub.f32 1.0, %v5147_v43 }
0x1b21   :  { %v5149_v9 = vmul.f32 %v6649_v27, %v5148_v52 }
0x1b23   :  { %v5150_v11 = vadd.f32 %v6649_v27, %v5149_v9 }
0x1b25   :  { %v5154_v41 = vsel %vm5153_vm13, %v6649_v27, %v5150_v11 }
0x1b26   :  { %v5159_v58 = vsel %vm5156_vm14, %v5158_v62, %v5154_v41 }
0x1b27   :  { %v5171_v45 = vsub.f32 1.0, %v5159_v58  ;;  %v5179_v24 = vmul.f32 %v5177_v31, %v5159_v58 }
0x1b7b   :  { %v5162_v14 = vpop.permute.xlu1 %5161 }
0x1b7c   :  { %v5164_v4 = vmul.f32 %v5162_v14, %v5159_v58 }
0x1b7e   :  { %5166 = vrot.lane.b32.xlu0 %v5164_v4, %s6963_s12 }
0x1bf0   :  { %v5167_v33 = vpop.permute.xlu0 %5166 }
0x1bf1   :  { %v5169_v42 = vadd.f32 %v5167_v33, %v9143_v2 }
0x1bf3   :  { %6650 = vtanh.f32 %v5169_v42 }
0x1bf9   :  { %v6651_v53 = vpop.eup %6650 }
0x1bfa   :  { %5173 = vrot.lane.b32.xlu2 %v6651_v53, %s6964_s3 }
0x1c54   :  { %v5174_v8 = vpop.permute.xlu2 %5173 }
0x1c55   :  { %v5176_v7 = vmul.f32 %v5174_v8, %v5171_v45 }
0x1c57   :  { %v9197_v59 = vadd.f32 %v5179_v24, %v5176_v7 }
0x1c59   :  { %v5199_v3 = vrot.slane %v9197_v59, 3  ;;  %v5263_v28 = vrot.slane %v9197_v59, 7 }
0x1c5b   :  { %5200 = vrot.lane.b32.xlu1 %v5199_v3, %s6964_s3 }
0x1ccd   :  { %v5201_v15 = vpop.permute.xlu1 %5200 }
0x1cce   :  { %6163 = vmatmul.msk.f32.vlgmr.msrb.gmra.mxu2 %vm9393_vm15, %v5201_v15  ;;  %vm9394_vm15 = vmmov %vm9377_vm0 }
0x1d51   :  { %v5221_v26 = vpop.f32.mrf.mxu2 }
0x1d52   :  { %v5222_v0 = vadd.f32 %v5221_v26, %v9134_v19 }
0x1d54   :  { %v5225_v22 = vrot.slane %v5222_v0, 4 }
0x1d56   :  { %5247 = vrot.lane.b32.xlu0 %v5225_v22, %s6963_s12  ;;  %v5227_v16 = vadd.f32 %v5225_v22, %v9143_v2 }
0x1d58   :  { %v6164_v23 = vmul.f32 -1.442695, %v5227_v16 }
0x1d5a   :  { %6652 = vpow2.f32 %v6164_v23 }
0x1d60   :  { %v6653_v13 = vpop.eup %6652 }
0x1d61   :  { %v5231_v39 = vadd.f32 1.0, %v6653_v13 }
0x1d63   :  { %6654 = vrcp.f32 %v5231_v39  ;;  %v5243_v35 = vand.u32 2147483648, %v5231_v39  ;;  %vm5237_vm2 = vweird.f32 %v5231_v39  ;;  %v5241_v1 = vand.u32 2147483647, %v5231_v39 }
0x1d65   :  { %v5244_v61 = vor.u32 1.1754944e-38, %v5243_v35  ;;  %vm5242_vm11 = vcmp.eq.f32.partialorder %v5241_v1, 8.507059e+37 }
0x1d69   :  { %v6655_v51 = vpop.eup %6654 }
0x1d6a   :  { %v5233_v5 = vmul.f32 %v6655_v51, %v5231_v39  ;;  %vm5238_vm1 = vweird.f32 %v6655_v51 }
0x1d6b   :  { %vm5239_vm10 = vmor %vm5237_vm2, %vm5238_vm1 }
0x1d6c   :  { %v5234_v20 = vsub.f32 1.0, %v5233_v5 }
0x1d6e   :  { %v5235_v29 = vmul.f32 %v6655_v51, %v5234_v20 }
0x1d70   :  { %v5236_v48 = vadd.f32 %v6655_v51, %v5235_v29 }
0x1d72   :  { %v5240_v49 = vsel %vm5239_vm10, %v6655_v51, %v5236_v48 }
0x1d73   :  { %v5245_v46 = vsel %vm5242_vm11, %v5244_v61, %v5240_v49 }
0x1d74   :  { %v5257_v55 = vsub.f32 1.0, %v5245_v46  ;;  %v5265_v34 = vmul.f32 %v5263_v28, %v5245_v46 }
0x1dc8   :  { %v5248_v12 = vpop.permute.xlu0 %5247 }
0x1dc9   :  { %v5250_v36 = vmul.f32 %v5248_v12, %v5245_v46 }
0x1dcb   :  { %5252 = vrot.lane.b32.xlu2 %v5250_v36, %s6963_s12 }
0x1e25   :  { %v5253_v47 = vpop.permute.xlu2 %5252 }
0x1e26   :  { %v5255_v30 = vadd.f32 %v5253_v47, %v9143_v2 }
0x1e28   :  { %6656 = vtanh.f32 %v5255_v30 }
0x1e2e   :  { %v6657_v54 = vpop.eup %6656 }
0x1e2f   :  { %5259 = vrot.lane.b32.xlu1 %v6657_v54, %s6964_s3 }
0x1ea1   :  { %v5260_v38 = vpop.permute.xlu1 %5259 }
0x1ea2   :  { %v5262_v32 = vmul.f32 %v5260_v38, %v5257_v55 }
0x1ea4   :  { %v9209_v60 = vadd.f32 %v5265_v34, %v5262_v32 }
0x1ea6   :  { %v5289_v63 = vrot.slane %v9209_v60, 4  ;;  %v5353_v4 = vrot.slane %v9209_v60, 7 }
0x1ea8   :  { %5290 = vrot.lane.b32.xlu0 %v5289_v63, %s6964_s3 }
0x1f1a   :  { %v5291_v40 = vpop.permute.xlu0 %5290 }
0x1f1b   :  { %6169 = vmatmul.msk.f32.vlgmr.msra.gmra.mxu1 %vm9377_vm0, %v5291_v40 }
0x1f98   :  { %v5311_v6 = vpop.f32.mrf.mxu1 }
0x1f99   :  { %v5312_v50 = vadd.f32 %v5311_v6, %v9134_v19 }
0x1f9b   :  { %v5315_v56 = vrot.slane %v5312_v50, 3 }
0x1f9d   :  { %v5317_v17 = vadd.f32 %v5315_v56, %v9143_v2  ;;  %5337 = vrot.lane.b32.xlu2 %v5315_v56, %s6963_s12 }
0x1f9f   :  { %v6170_v57 = vmul.f32 -1.442695, %v5317_v17 }
0x1fa1   :  { %6658 = vpow2.f32 %v6170_v57 }
0x1fa7   :  { %v6659_v27 = vpop.eup %6658 }
0x1fa8   :  { %v5321_v43 = vadd.f32 1.0, %v6659_v27 }
0x1faa   :  { %6660 = vrcp.f32 %v5321_v43  ;;  %v5333_v37 = vand.u32 2147483648, %v5321_v43  ;;  %v5331_v41 = vand.u32 2147483647, %v5321_v43  ;;  %vm5327_vm12 = vweird.f32 %v5321_v43 }
0x1fac   :  { %v5334_v14 = vor.u32 1.1754944e-38, %v5333_v37  ;;  %vm5332_vm14 = vcmp.eq.f32.partialorder %v5331_v41, 8.507059e+37 }
0x1fb0   :  { %v6661_v52 = vpop.eup %6660 }
0x1fb1   :  { %v5323_v9 = vmul.f32 %v6661_v52, %v5321_v43  ;;  %vm5328_vm9 = vweird.f32 %v6661_v52 }
0x1fb2   :  { %vm5329_vm13 = vmor %vm5327_vm12, %vm5328_vm9 }
0x1fb3   :  { %v5324_v11 = vsub.f32 1.0, %v5323_v9 }
0x1fb5   :  { %v5325_v21 = vmul.f32 %v6661_v52, %v5324_v11 }
0x1fb7   :  { %v5326_v62 = vadd.f32 %v6661_v52, %v5325_v21 }
0x1fb9   :  { %v5330_v58 = vsel %vm5329_vm13, %v6661_v52, %v5326_v62 }
0x1fba   :  { %v5335_v33 = vsel %vm5332_vm14, %v5334_v14, %v5330_v58 }
0x1fbb   :  { %v5355_v42 = vmul.f32 %v5353_v4, %v5335_v33  ;;  %v5347_v7 = vsub.f32 1.0, %v5335_v33 }
0x1ff7   :  { %v5338_v53 = vpop.permute.xlu2 %5337 }
0x1ff8   :  { %v5340_v45 = vmul.f32 %v5338_v53, %v5335_v33 }
0x1ffa   :  { %5342 = vrot.lane.b32.xlu1 %v5340_v45, %s6963_s12 }
0x206c   :  { %v5343_v31 = vpop.permute.xlu1 %5342 }
0x206d   :  { %v5345_v8 = vadd.f32 %v5343_v31, %v9143_v2 }
0x206f   :  { %6662 = vtanh.f32 %v5345_v8 }
0x2075   :  { %v6663_v24 = vpop.eup %6662 }
0x2076   :  { %5349 = vrot.lane.b32.xlu0 %v6663_v24, %s6964_s3 }
0x20e8   :  { %v5350_v3 = vpop.permute.xlu0 %5349 }
0x20e9   :  { %v5352_v15 = vmul.f32 %v5350_v3, %v5347_v7  ;;  %v4863_v3 = vld [vmem:[#allocation16 + $0x18] sm:$0xff] }
0x20ea   :  { %5622 = vmatpush.msrb.mxu2 %v4863_v3 }
0x20eb   :  { %v9221_v26 = vadd.f32 %v5355_v42, %v5352_v15  ;;  %v4862_v15 = vld [vmem:[#allocation16 + $0x10] sm:$0xff] }
0x20ec   :  { %5623 = vmatpush.msrb.mxu2 %v4862_v15 }
0x20ed   :  { %v5383_v0 = vrot.slane %v9221_v26, 5  ;;  %v5447_v34 = vrot.slane %v9221_v26, 7  ;;  %v4861_v26 = vld [vmem:[#allocation16 + $0x8] sm:$0xff] }
0x20ee   :  { %5624 = vmatpush.msrb.mxu2 %v4861_v26 }
0x20ef   :  { %5384 = vrot.lane.b32.xlu2 %v5383_v0, %s6964_s3  ;;  %v4860_v0 = vld [vmem:[#allocation16] sm:$0xff] }
0x20f0   :  { %5625 = vmatpush.msrb.mxu2 %v4860_v0 }
0x2149   :  { %v5385_v22 = vpop.permute.xlu2 %5384 }
0x214a   :  { %6176 = vmatmul.msk.f32.vlgmr.msra.gmra.mxu2 %vm9394_vm15, %v5385_v22  ;;  %v6179_v22 = vrot.slane %v9165_v10, 35  ;;  %vm5777_vm15 = vcmask 57344  }
0x21cd   :  { %v5405_v16 = vpop.f32.mrf.mxu2 }
0x21ce   :  { %v5406_v23 = vadd.f32 %v5405_v16, %v9134_v19  ;;  %v6180_v16 = vrot.slane %v9181_v44, 28 }
0x21d0   :  { %v5409_v13 = vrot.slane %v5406_v23, 2  ;;  %v6181_v23 = vrot.slane %v9197_v59, 21 }
0x21d2   :  { %5431 = vrot.lane.b32.xlu1 %v5409_v13, %s6963_s12  ;;  %v5411_v39 = vadd.f32 %v5409_v13, %v9143_v2  ;;  %v6182_v13 = vrot.slane %v9209_v60, 14 }
0x21d4   :  { %v6177_v51 = vmul.f32 -1.442695, %v5411_v39  ;;  %v9247_v39 = vrot.slane %v6179_v22, 7 }
0x21d6   :  { %6664 = vpow2.f32 %v6177_v51  ;;  %v5593_v10 = vrot.slane %v9247_v39, 6 }
0x21dc   :  { %v6665_v5 = vpop.eup %6664 }
0x21dd   :  { %v5415_v20 = vadd.f32 1.0, %v6665_v5  ;;  %v9253_v5 = vrot.slane %v6181_v23, 7 }
0x21df   :  { %6666 = vrcp.f32 %v5415_v20  ;;  %v5427_v61 = vand.u32 2147483648, %v5415_v20  ;;  %vm5421_vm2 = vweird.f32 %v5415_v20  ;;  %v5425_v12 = vand.u32 2147483647, %v5415_v20 }
0x21e0   :  { %v5597_v60 = vrot.slane %v9253_v5, 4 }
0x21e1   :  { %v5428_v36 = vor.u32 1.1754944e-38, %v5427_v61  ;;  %vm5426_vm11 = vcmp.eq.f32.partialorder %v5425_v12, 8.507059e+37 }
0x21e5   :  { %v6667_v29 = vpop.eup %6666 }
0x21e6   :  { %v5417_v48 = vmul.f32 %v6667_v29, %v5415_v20  ;;  %vm5422_vm1 = vweird.f32 %v6667_v29  ;;  %v9255_v20 = vrot.slane %v6182_v13, 7 }
0x21e7   :  { %vm5423_vm10 = vmor %vm5421_vm2, %vm5422_vm1  ;;  %vm5783_vm1 = vcmask 326727  }
0x21e8   :  { %v5418_v35 = vsub.f32 1.0, %v5417_v48  ;;  %v5599_v48 = vrot.slane %v9255_v20, 3 }
0x21ea   :  { %v5419_v1 = vmul.f32 %v6667_v29, %v5418_v35 }
0x21ec   :  { %v5420_v49 = vadd.f32 %v6667_v29, %v5419_v1 }
0x21ee   :  { %v5424_v46 = vsel %vm5423_vm10, %v6667_v29, %v5420_v49  ;;  %v9258_v29 = vrot.slane %v5447_v34, 7 }
0x21ef   :  { %v5429_v30 = vsel %vm5426_vm11, %v5428_v36, %v5424_v46 }
0x21f0   :  { %v5441_v32 = vsub.f32 1.0, %v5429_v30  ;;  %v5449_v40 = vmul.f32 %v5447_v34, %v5429_v30  ;;  %v5601_v1 = vrot.slane %v9258_v29, 2 }
0x2244   :  { %v5432_v47 = vpop.permute.xlu1 %5431 }
0x2245   :  { %v5434_v54 = vmul.f32 %v5432_v47, %v5429_v30 }
0x2247   :  { %5436 = vrot.lane.b32.xlu0 %v5434_v54, %s6963_s12 }
0x22b9   :  { %v5437_v55 = vpop.permute.xlu0 %5436 }
0x22ba   :  { %v5439_v28 = vadd.f32 %v5437_v55, %v9143_v2 }
0x22bc   :  { %6668 = vtanh.f32 %v5439_v28 }
0x22c2   :  { %v6669_v38 = vpop.eup %6668 }
0x22c3   :  { %5443 = vrot.lane.b32.xlu2 %v6669_v38, %s6964_s3 }
0x231d   :  { %v5444_v63 = vpop.permute.xlu2 %5443 }
0x231e   :  { %v5446_v6 = vmul.f32 %v5444_v63, %v5441_v32  ;;  %v6208_v63 = vld [vmem:[%s9328_s13] ss:$0 sm:$0xff]  ;;  %s6965_s13 = smov 104  }
0x2320   :  { %v5450_v50 = vadd.f32 %v5449_v40, %v5446_v6 }
0x2322   :  { %v5481_v56 = vrot.slane %v5450_v50, 6  ;;  %v9261_v44 = vrot.slane %v5450_v50, 7  ;;  %v6209_v50 = vld [vmem:[%s9329_s14] ss:$0 sm:$0xff]  ;;  %s6966_s14 = smov [#allocation17]  }
0x2323   :  { %s5790_s17 = sshll.u32 %s6966_s14, 4  ;;  %s5791_s17 = int_to_ptr.vmem [resolvable:$true] %s5790_s17 }
0x2324   :  { %5482 = vrot.lane.b32.xlu1 %v5481_v56, %s6964_s3  ;;  %v5603_v12 = vrot.slane %v9261_v44, 1 }
0x2396   :  { %v5483_v17 = vpop.permute.xlu1 %5482 }
0x2397   :  { %6184 = vmatmul.msk.f32.vlgmr.msrb.gmra.mxu1 %vm9377_vm0, %v5483_v17 }
0x2414   :  { %v5503_v57 = vpop.f32.mrf.mxu1 }
0x2415   :  { %v5504_v27 = vadd.f32 %v5503_v57, %v9134_v19 }
0x2417   :  { %v5507_v43 = vrot.slane %v5504_v27, 1 }
0x2419   :  { %5529 = vrot.lane.b32.xlu0 %v5507_v43, %s6963_s12  ;;  %v5509_v52 = vadd.f32 %v5507_v43, %v9143_v2 }
0x241b   :  { %v6185_v9 = vmul.f32 -1.442695, %v5509_v52 }
0x241d   :  { %6670 = vpow2.f32 %v6185_v9 }
0x2423   :  { %v6671_v11 = vpop.eup %6670 }
0x2424   :  { %v5513_v37 = vadd.f32 1.0, %v6671_v11 }
0x2426   :  { %6672 = vrcp.f32 %v5513_v37  ;;  %v5525_v4 = vand.u32 2147483648, %v5513_v37  ;;  %vm5519_vm12 = vweird.f32 %v5513_v37  ;;  %v5523_v33 = vand.u32 2147483647, %v5513_v37 }
0x2428   :  { %v5526_v42 = vor.u32 1.1754944e-38, %v5525_v4  ;;  %vm5524_vm14 = vcmp.eq.f32.partialorder %v5523_v33, 8.507059e+37 }
0x242c   :  { %v6673_v21 = vpop.eup %6672 }
0x242d   :  { %v5515_v41 = vmul.f32 %v6673_v21, %v5513_v37  ;;  %vm5520_vm9 = vweird.f32 %v6673_v21 }
0x242e   :  { %vm5521_vm13 = vmor %vm5519_vm12, %vm5520_vm9 }
0x242f   :  { %v5516_v62 = vsub.f32 1.0, %v5515_v41 }
0x2431   :  { %v5517_v14 = vmul.f32 %v6673_v21, %v5516_v62 }
0x2433   :  { %v5518_v58 = vadd.f32 %v6673_v21, %v5517_v14 }
0x2435   :  { %v5522_v19 = vsel %vm5521_vm13, %v6673_v21, %v5518_v58 }
0x2436   :  { %v5527_v45 = vsel %vm5524_vm14, %v5526_v42, %v5522_v19 }
0x2437   :  { %v5539_v49 = vsub.f32 1.0, %v5527_v45  ;;  %v5547_v36 = vmul.f32 %v9261_v44, %v5527_v45 }
0x248b   :  { %v5530_v53 = vpop.permute.xlu0 %5529 }
0x248c   :  { %v5532_v31 = vmul.f32 %v5530_v53, %v5527_v45 }
0x248e   :  { %5534 = vrot.lane.b32.xlu2 %v5532_v31, %s6963_s12 }
0x24e8   :  { %v5535_v8 = vpop.permute.xlu2 %5534 }
0x24e9   :  { %v5537_v24 = vadd.f32 %v5535_v8, %v9143_v2  ;;  %v6178_v2 = vrot.slane %v9149_v18, 42 }
0x24eb   :  { %6674 = vtanh.f32 %v5537_v24  ;;  %v9251_v51 = vrot.slane %v6178_v2, 7 }
0x24ed   :  { %v5592_v59 = vrot.slane %v9251_v51, 7 }
0x24ef   :  { %v5594_v35 = vsel %vm651_vm3, %v5593_v10, %v5592_v59  ;;  %vm9395_vm3 = vcmask 1047559  }
0x24f1   :  { %v6675_v7 = vpop.eup %6674 }
0x24f2   :  { %5541 = vrot.lane.b32.xlu1 %v6675_v7, %s6964_s3 }
0x2527   :  { %5731 = vxpose.xlu1.b32.start.end [1/1] (short) (narrow) %v9125_v25, 32  ;;  %v9249_v25 = vrot.slane %v6180_v16, 7 }
0x2529   :  { %v5595_v18 = vrot.slane %v9249_v25, 5 }
0x252b   :  { %v5596_v61 = vsel %vm654_vm4, %v5595_v18, %v5594_v35  ;;  %vm9396_vm4 = vmmov %vm9377_vm0 }
0x252c   :  { %v5598_v30 = vsel %vm657_vm5, %v5597_v60, %v5596_v61  ;;  %vm9397_vm5 = vmmov %vm9377_vm0 }
0x252d   :  { %v5600_v54 = vsel %vm660_vm6, %v5599_v48, %v5598_v30  ;;  %vm5686_vm6 = vcmask 1040384  }
0x252e   :  { %v5602_v28 = vsel %vm663_vm7, %v5601_v1, %v5600_v54  ;;  %vm5710_vm7 = vcmask 523527  }
0x252f   :  { %v5604_v38 = vsel %vm666_vm8, %v5603_v12, %v5602_v28  ;;  %vm5763_vm8 = vcmask 64512  }
0x2564   :  { %v5542_v46 = vpop.permute.xlu1 %5541 }
0x2565   :  { %v5544_v47 = vmul.f32 %v5542_v46, %v5539_v49 }
0x2567   :  { %v9273_v55 = vadd.f32 %v5547_v36, %v5544_v47 }
0x2569   :  { %v5605_v34 = vsel %vm9395_vm3, %v9273_v55, %v5604_v38 }
0x256a   :  { %5606 = vrot.lane.b32.xlu0 %v5605_v34, %s6964_s3 }
0x25dc   :  { %v5607_v32 = vpop.permute.xlu0 %5606 }
0x25dd   :  { %6186 = vmatmul.msk.f32.vlgmr.msrb.gmra.mxu2 %vm9396_vm4, %v5607_v32 }
0x2660   :  { %v5627_v40 = vpop.f32.mrf.mxu2 }
0x2661   :  { %v5628_v6 = vadd.f32 %v6208_v63, %v5627_v40 }
0x2663   :  { %6676 = vtanh.f32 %v5628_v6 }
0x2669   :  { %v6677_v56 = vpop.eup %6676 }
0x266a   :  { %v5634_v17 = vmul.f32 %v6677_v56, %v6209_v50 }
0x266c   :  { %v5635_v57 = vsel %vm9397_vm5, %v5634_v17, 0.0 }
0x266d   :  { %5636 = vadd.xlane.f32.xlu2 %v5635_v57 }
0x26e0   :  { %v5637_v27 = vpop.xlane.xlu2 %5636 }
0x26e1   :  { %v5639_v43 = vperm.slane %v5637_v27, 0  ;;  %v5640_v52 = vperm.slane %v5637_v27, 1  ;;  %v5641_v9 = vperm.slane %v5637_v27, 2  ;;  %v5642_v11 = vperm.slane %v5637_v27, 3 }
0x26e2   :  { %v5643_v37 = vperm.slane %v5637_v27, 4  ;;  %v5644_v21 = vperm.slane %v5637_v27, 5  ;;  %v5645_v41 = vperm.slane %v5637_v27, 6  ;;  %v5646_v62 = vperm.slane %v5637_v27, 7 }
0x26e4   :  { %v5655_v14 = vmax.f32 %v5639_v43, %v5643_v37  ;;  %v5656_v58 = vmax.f32 %v5640_v52, %v5644_v21  ;;  %v5657_v4 = vmax.f32 %v5641_v9, %v5645_v41  ;;  %v5658_v33 = vmax.f32 %v5642_v11, %v5646_v62 }
0x26e6   :  { %v5659_v19 = vmax.f32 %v5655_v14, %v5656_v58  ;;  %v5660_v42 = vmax.f32 %v5657_v4, %v5658_v33 }
0x26e8   :  { %v5661_v53 = vmax.f32 %v5659_v19, %v5660_v42 }
0x26ea   :  { %v5662_v45 = vsub.f32 %v5639_v43, %v5661_v53  ;;  %v5663_v31 = vsub.f32 %v5640_v52, %v5661_v53  ;;  %v5664_v8 = vsub.f32 %v5641_v9, %v5661_v53  ;;  %v5665_v24 = vsub.f32 %v5642_v11, %v5661_v53 }
0x26eb   :  { %v5666_v7 = vsub.f32 %v5643_v37, %v5661_v53  ;;  %v5667_v0 = vsub.f32 %v5644_v21, %v5661_v53  ;;  %v5668_v2 = vsub.f32 %v5645_v41, %v5661_v53  ;;  %v5669_v23 = vsub.f32 %v5646_v62, %v5661_v53 }
0x26ec   :  { %v5670_v3 = vmul.f32 1.442695, %v5662_v45  ;;  %v5672_v15 = vmul.f32 1.442695, %v5663_v31  ;;  %v5674_v26 = vmul.f32 1.442695, %v5664_v8 }
0x26ed   :  { %v5676_v22 = vmul.f32 1.442695, %v5665_v24  ;;  %v5678_v16 = vmul.f32 1.442695, %v5666_v7  ;;  %v5680_v13 = vmul.f32 1.442695, %v5667_v0  ;;  %v5747_v24 = vpop.trf.xlu1 }
0x26ee   :  { %6678 = vpow2.f32 %v5670_v3  ;;  %v5682_v10 = vmul.f32 1.442695, %v5668_v2  ;;  %v5684_v60 = vmul.f32 1.442695, %v5669_v23  ;;  %v5764_v3 = vsel %vm5763_vm8, %v5747_v24, 0.0 }
0x26ef   :  { %6680 = vpow2.f32 %v5672_v15 }
0x26f0   :  { %6682 = vpow2.f32 %v5674_v26 }
0x26f1   :  { %6684 = vpow2.f32 %v5676_v22 }
0x26f2   :  { %6686 = vpow2.f32 %v5678_v16 }
0x26f3   :  { %6688 = vpow2.f32 %v5680_v13 }
0x26f4   :  { %v6679_v18 = vpop.eup %6678  ;;  %6690 = vpow2.f32 %v5682_v10 }
0x26f5   :  { %v6681_v59 = vpop.eup %6680  ;;  %v5687_v48 = vsel %vm5686_vm6, %v6679_v18, 0.0  ;;  %v5702_v35 = vmul.f32 %v6679_v18, %v9251_v51  ;;  %6692 = vpow2.f32 %v5684_v60  ;;  %v5748_v7 = vpop.trf.xlu1 }
0x26f6   :  { %v6683_v1 = vpop.eup %6682  ;;  %v5688_v49 = vsel %vm5686_vm6, %v6681_v59, 0.0  ;;  %v5703_v61 = vmul.f32 %v6681_v59, %v9247_v39  ;;  %v5765_v15 = vsel %vm5763_vm8, %v5748_v7, 0.0 }
0x26f7   :  { %v6685_v12 = vpop.eup %6684  ;;  %v5689_v46 = vadd.f32 %v5688_v49, %v5687_v48  ;;  %v5704_v36 = vmul.f32 %v6683_v1, %v9249_v25  ;;  %v5711_v47 = vsel %vm5710_vm7, %v5702_v35, 0.0  ;;  %v5690_v54 = vsel %vm5686_vm6, %v6683_v1, 0.0 }
0x26f8   :  { %v6687_v30 = vpop.eup %6686  ;;  %v5705_v28 = vmul.f32 %v6685_v12, %v9253_v5  ;;  %v5712_v38 = vsel %vm5710_vm7, %v5703_v61, 0.0  ;;  %v5692_v32 = vsel %vm5686_vm6, %v6685_v12, 0.0  ;;  %v5766_v26 = vadd.f32 %v5765_v15, %v5764_v3 }
0x26f9   :  { %v5691_v51 = vadd.f32 %v5690_v54, %v5689_v46  ;;  %v5713_v34 = vadd.f32 %v5712_v38, %v5711_v47  ;;  %v5714_v39 = vsel %vm5710_vm7, %v5704_v36, 0.0  ;;  %v6689_v63 = vpop.eup %6688  ;;  %v5706_v25 = vmul.f32 %v6687_v30, %v9255_v20 }
0x26fa   :  { %v5694_v50 = vsel %vm5686_vm6, %v6687_v30, 0.0  ;;  %v5716_v56 = vsel %vm5710_vm7, %v5705_v28, 0.0  ;;  %v6691_v17 = vpop.eup %6690  ;;  %v5696_v27 = vsel %vm5686_vm6, %v6689_v63, 0.0  ;;  %v5707_v9 = vmul.f32 %v6689_v63, %v9258_v29 }
0x26fb   :  { %v5693_v40 = vadd.f32 %v5692_v32, %v5691_v51  ;;  %v5715_v6 = vadd.f32 %v5714_v39, %v5713_v34  ;;  %v6693_v43 = vpop.eup %6692  ;;  %v5718_v11 = vsel %vm5710_vm7, %v5706_v25, 0.0  ;;  %v5698_v37 = vsel %vm5686_vm6, %v6691_v17, 0.0 }
0x26fc   :  { %v5700_v41 = vsel %vm5686_vm6, %v6693_v43, 0.0  ;;  %v5708_v14 = vmul.f32 %v6691_v17, %v9261_v44  ;;  %v5720_v58 = vsel %vm5710_vm7, %v5707_v9, 0.0  ;;  %v5709_v33 = vmul.f32 %v6693_v43, %v9273_v55 }
0x26fd   :  { %v5695_v5 = vadd.f32 %v5694_v50, %v5693_v40  ;;  %v5717_v57 = vadd.f32 %v5716_v56, %v5715_v6  ;;  %v5749_v44 = vpop.trf.xlu1 }
0x26fe   :  { %v5722_v19 = vsel %vm5710_vm7, %v5708_v14, 0.0  ;;  %v5724_v53 = vsel %vm5710_vm7, %v5709_v33, 0.0  ;;  %v5767_v0 = vsel %vm5763_vm8, %v5749_v44, 0.0 }
0x26ff   :  { %v5697_v52 = vadd.f32 %v5696_v27, %v5695_v5  ;;  %v5719_v21 = vadd.f32 %v5718_v11, %v5717_v57  ;;  %v5768_v22 = vadd.f32 %v5767_v0, %v5766_v26 }
0x2701   :  { %v5699_v20 = vadd.f32 %v5698_v37, %v5697_v52  ;;  %v5721_v4 = vadd.f32 %v5720_v58, %v5719_v21 }
0x2703   :  { %v5701_v62 = vadd.f32 %v5700_v41, %v5699_v20  ;;  %v5723_v29 = vadd.f32 %v5722_v19, %v5721_v4 }
0x2705   :  { %6694 = vrcp.f32 %v5701_v62  ;;  %v5725_v45 = vadd.f32 %v5724_v53, %v5723_v29  ;;  %v5750_v55 = vpop.trf.xlu1 }
0x2706   :  { %v5769_v16 = vsel %vm5763_vm8, %v5750_v55, 0.0 }
0x2707   :  { %v5770_v2 = vadd.f32 %v5769_v16, %v5768_v22 }
0x2709   :  { %v5771_v23 = vrot.slane %v5770_v2, 4 }
0x270b   :  { %v6695_v42 = vpop.eup %6694  ;;  %v5772_v13 = vadd.f32 %v5771_v23, %v5770_v2 }
0x270c   :  { %v5728_v31 = vrot.slane %v6695_v42, 1 }
0x270d   :  { %v5773_v10 = vrot.slane %v5772_v13, 2 }
0x270e   :  { %v5730_v8 = vmul.f32 %v5728_v31, %v5725_v45 }
0x270f   :  { %v5774_v18 = vadd.f32 %v5773_v10, %v5772_v13 }
0x2710   :  { %5780 = vrot.lane.b32.xlu0 %v5730_v8, %s6965_s13 }
0x2711   :  { %v5775_v59 = vrot.slane %v5774_v18, 1 }
0x2713   :  { %v5776_v60 = vadd.f32 %v5775_v59, %v5774_v18 }
0x2715   :  { %5778 = vst.msk [vmem:[#allocation17] sm:$0x1] %vm5777_vm15, %v5776_v60 }
0x2782   :  { %v5781_v48 = vpop.permute.xlu0 %5780 }
0x2783   :  { %5784 = vst.msk [vmem:[#allocation17 - $0x7] sm:$0x80] %vm5783_vm1, %v5781_v48 }
0x2784   :  { %5795 = dma.vmem_to_hbm [thread:$0]  %s5791_s17, 16, %s5793_s4, [#allocation4]  }
0x2785   :  { %6949 = dma.done.wait [#allocation4], 16  }
0x2786   :  { %6950 = vsyncadd [#allocation4], 4294967280 }
0x2787   :  { %5800 = vsyncpa [#allocation3], 1 }
0x2788   :  { %5801 = vsyncpa [#allocation6], 1 }
0x2789   :  { %5802 = vsyncpa [#allocation9], 1 }
0x278a   :  { %5803 = vsyncpa [#allocation12], 1 }
0x278b   :  { %5804 = vsyncpa [#allocation15], 1 }
0x278c   :  { %5805 = vsyncpa [#allocation4], 1 }

</bundles_post_ra>
